<compile_context>
chip_gen: v5e
topology: v5e:2x2
jax: 0.10.0
libtpu: 0.0.40
codegen_flags: <defaults>
</compile_context>

<pallas_src>
import numpy as np
import jax
import jax.numpy as jnp
from jax import lax
from jax.experimental import pallas as pl
from jax.experimental.pallas import tpu as pltpu


def _round_up(x, m):
    return (x + m - 1) // m * m


def _pick_row_tile(ho, target):
    """Largest divisor of ho that is <= target (rows of output per grid step)."""
    for d in range(min(target, ho), 0, -1):
        if ho % d == 0:
            return d
    return 1


def _conv_rows_kernel(rpe_ref, rpo_ref, rpeh_ref, w_ref, b_ref, o_ref):
    """One (batch, row-tile) grid step of conv3x3(s=2,p=1) + BN(eval) + ReLU.

    rpe_ref : (th, Wo, 3*Cp) bf16  even-padded-row width patches (kh=0; kh=2 via +1 row)
    rpo_ref : (th, Wo, 3*Cp) bf16  odd-padded-row width patches  (kh=1)
    rpeh_ref: (Wo, 3*Cp)     bf16  halo: even-row patches of the row just below the tile
    w_ref   : (3, 3*Cp, Cout_p) bf16 weights (BN scale folded), indexed by kh
    b_ref   : (1, Cout_p)    f32   folded BN bias
    o_ref   : (th, Wo, Cout_p)     output tile (lane-dense channels)
    """
    w0 = w_ref[0]
    w1 = w_ref[1]
    w2 = w_ref[2]
    bias = b_ref[...]
    th = o_ref.shape[0]
    for r in range(th):  # static unroll; th is small (<= row_tile)
        top = rpe_ref[r]                                          # padded row 2*oh
        mid = rpo_ref[r]                                          # padded row 2*oh + 1
        bot = rpe_ref[r + 1] if r + 1 < th else rpeh_ref[...]     # padded row 2*oh + 2
        acc = jnp.dot(top, w0, preferred_element_type=jnp.float32)
        acc = acc + jnp.dot(mid, w1, preferred_element_type=jnp.float32)
        acc = acc + jnp.dot(bot, w2, preferred_element_type=jnp.float32)
        o_ref[r] = jnp.maximum(acc + bias, 0.0).astype(o_ref.dtype)


def conv_block_pallas(x_nhwc, w_oihw, gamma, beta, run_mean, run_var, *,
                      eps=1e-5, out_dtype=jnp.bfloat16, row_tile=8,
                      compute_dtype=jnp.bfloat16):
    """One ConvBlock on an NHWC activation whose channel dim may be lane-padded.

    Returns (B, Ho, Wo, Cout_p) in `out_dtype`, Cout_p = round_up(Cout, 128);
    padded output channels are exact zeros (inert for the next block).
    """
    B, H, W, Cp = x_nhwc.shape
    Cout, Cin = w_oihw.shape[0], w_oihw.shape[1]
    assert Cin <= Cp, (Cin, Cp)
    Ho = (H - 1) // 2 + 1
    Wo = (W - 1) // 2 + 1
    Cout_p = _round_up(Cout, 128)
    K = 3 * Cp  # contraction depth per kernel-row tap

    # ---- host-side glue: pad, width im2col (3 taps), split by row parity ----
    xp = jnp.pad(x_nhwc.astype(compute_dtype), ((0, 0), (1, 1), (1, 1), (0, 0)))

    def width_patches(row0, nrows):
        taps = [xp[:, row0:row0 + 2 * nrows:2, kw:kw + 2 * Wo:2, :] for kw in range(3)]
        return jnp.concatenate(taps, axis=-1)        # (B, nrows, Wo, 3*Cp)

    rpe_full = width_patches(0, Ho + 1)              # even padded rows 0,2,...,2*Ho
    rpo = width_patches(1, Ho)                       # odd padded rows 1,3,...,2*Ho-1

    th = _pick_row_tile(Ho, row_tile)                # output rows per grid step
    n_tiles = Ho // th
    rpe_main = rpe_full[:, :Ho]                      # (B, Ho, Wo, 3*Cp)
    rpe_halo = rpe_full[:, th::th]                   # (B, n_tiles, Wo, 3*Cp)

    # ---- fold eval-mode BN into weights (scale) and a bias vector ----
    scale = gamma / jnp.sqrt(run_var + eps)
    bias = beta - run_mean * scale
    w_f32 = w_oihw.astype(jnp.float32) * scale[:, None, None, None]
    if Cp > Cin:                                     # inert lane-padded input channels
        w_f32 = jnp.pad(w_f32, ((0, 0), (0, Cp - Cin), (0, 0), (0, 0)))
    # (Cout, Cp, kh, kw) -> (kh, kw, cin, cout) -> (3, 3*Cp, Cout): matches the
    # (kw-major, cin-minor) column order of the width patches.
    w_k = jnp.transpose(w_f32, (2, 3, 1, 0)).reshape(3, K, Cout)
    w_k = jnp.pad(w_k, ((0, 0), (0, 0), (0, Cout_p - Cout))).astype(compute_dtype)
    bias_k = jnp.pad(bias, (0, Cout_p - Cout)).reshape(1, Cout_p).astype(jnp.float32)

    itm = jnp.dtype(compute_dtype).itemsize
    bytes_accessed = int((rpe_main.size + rpo.size + rpe_halo.size + w_k.size) * itm
                         + bias_k.size * 4
                         + B * Ho * Wo * Cout_p * jnp.dtype(out_dtype).itemsize)
    flops = 2 * B * Ho * Wo * 3 * K * Cout_p

    out = pl.pallas_call(
        _conv_rows_kernel,
        out_shape=jax.ShapeDtypeStruct((B, Ho, Wo, Cout_p), out_dtype),
        grid=(B, n_tiles),
        in_specs=[
            pl.BlockSpec((None, th, Wo, K), lambda b, i: (b, i, 0, 0)),     # even rows
            pl.BlockSpec((None, th, Wo, K), lambda b, i: (b, i, 0, 0)),     # odd rows
            pl.BlockSpec((None, None, Wo, K), lambda b, i: (b, i, 0, 0)),   # +1-row halo
            pl.BlockSpec((3, K, Cout_p), lambda b, i: (0, 0, 0)),           # resident W
            pl.BlockSpec((1, Cout_p), lambda b, i: (0, 0)),                 # resident bias
        ],
        out_specs=pl.BlockSpec((None, th, Wo, Cout_p), lambda b, i: (b, i, 0, 0)),
        compiler_params=pltpu.CompilerParams(
            dimension_semantics=("parallel", "parallel"),
            vmem_limit_bytes=32 * 1024 * 1024),
        cost_estimate=pl.CostEstimate(flops=flops, transcendentals=0,
                                      bytes_accessed=bytes_accessed),
    )(rpe_main, rpo, rpe_halo, w_k, bias_k)
    return out


def init_spatial_path_params(key, out_channels):
    """Deterministic synthetic parameters for the 3 ConvBlocks."""
    chans = [(3, out_channels // 4),
             (out_channels // 4, out_channels // 2),
             (out_channels // 2, out_channels)]
    params = []
    for i, (cin, cout) in enumerate(chans):
        kw_key, g_key, b_key, m_key, v_key = jax.random.split(
            jax.random.fold_in(key, i), 5)
        w = jax.random.normal(kw_key, (cout, cin, 3, 3), jnp.float32) * 0.1
        gamma = 1.0 + 0.1 * jax.random.normal(g_key, (cout,), jnp.float32)
        beta = 0.1 * jax.random.normal(b_key, (cout,), jnp.float32)
        run_mean = 0.1 * jax.random.normal(m_key, (cout,), jnp.float32)
        run_var = jnp.abs(jax.random.normal(v_key, (cout,), jnp.float32)) + 0.5
        params.append(dict(w=w, gamma=gamma, beta=beta,
                           run_mean=run_mean, run_var=run_var))
    return params


@jax.jit
def spatial_path_forward(x_nchw, params):
    """Equivalent of Spatial_path.forward on an NCHW input (PyTorch layout)."""
    x = jnp.transpose(x_nchw, (0, 2, 3, 1))          # NCHW -> NHWC
    n = len(params)
    for li, p in enumerate(params):
        # bf16 activations between blocks; f32 only for the final block output.
        x = conv_block_pallas(
            x, p["w"], p["gamma"], p["beta"], p["run_mean"], p["run_var"],
            out_dtype=jnp.float32 if li == n - 1 else jnp.bfloat16)
    cout = params[-1]["w"].shape[0]
    x = x[..., :cout]                                # drop lane padding once, at the end
    return jnp.transpose(x, (0, 3, 1, 2))            # NHWC -> NCHW


def _reference_forward(x_nchw, params, eps=1e-5):
    """Pure-JAX f32 reference (matches the PyTorch module in eval mode)."""
    y = x_nchw
    for p in params:
        y = lax.conv_general_dilated(
            y, p["w"], window_strides=(2, 2), padding=((1, 1), (1, 1)),
            dimension_numbers=("NCHW", "OIHW", "NCHW"),
            precision=lax.Precision.HIGHEST)
        scale = p["gamma"] / jnp.sqrt(p["run_var"] + eps)
        bias = p["beta"] - p["run_mean"] * scale
        y = y * scale[None, :, None, None] + bias[None, :, None, None]
        y = jnp.maximum(y, 0.0)
    return y


if __name__ == "__main__":
    key = jax.random.PRNGKey(0)
    x_key, p_key = jax.random.split(key)

    out_channels = 16                                    # conv1: 3->4, conv2: 4->8, conv3: 8->16
    x = jax.random.normal(x_key, (2, 3, 16, 16), jnp.float32)   # NCHW, like PyTorch
    params = init_spatial_path_params(p_key, out_channels)

    y = spatial_path_forward(x, params)
    jax.block_until_ready(y)

    assert y.shape == (2, out_channels, 2, 2), y.shape   # 16 -> 8 -> 4 -> 2 spatially
    assert bool(jnp.all(y >= 0.0))                       # ReLU output

    # Validate against the f32 reference (bf16 compute => loose tolerance).
    y_ref = _reference_forward(x, params)
    np.testing.assert_allclose(np.asarray(y), np.asarray(y_ref), rtol=5e-2, atol=5e-2)

    print("KERNEL_OK")
</pallas_src>

<mosaic_0001>
module attributes {stable_mosaic.version = 11 : i64} {
  func.func @_conv_rows_kernel(%arg0: i32, %arg1: i32, %arg2: memref<1x8x8x9xbf16, #tpu.memory_space<vmem>>, %arg3: memref<1x8x8x9xbf16, #tpu.memory_space<vmem>>, %arg4: memref<1x1x8x9xbf16, #tpu.memory_space<vmem>>, %arg5: memref<3x9x128xbf16, #tpu.memory_space<vmem>>, %arg6: memref<1x128xf32, #tpu.memory_space<vmem>>, %arg7: memref<1x8x8x128xbf16, #tpu.memory_space<vmem>>) attributes {dimension_semantics = [#tpu.dimension_semantics<parallel>, #tpu.dimension_semantics<parallel>], iteration_bounds = array<i64: 2, 1>, scalar_prefetch = 0 : i64, scratch_operands = 0 : i64, tpu.core_type = #tpu.core_type<tc>, window_params = [{transform_indices = @transform_0, window_bounds = array<i64: 1, 8, 8, 9>}, {transform_indices = @transform_1, window_bounds = array<i64: 1, 8, 8, 9>}, {transform_indices = @transform_2, window_bounds = array<i64: 1, 1, 8, 9>}, {pipeline_mode = #tpu.pipeline_mode<synchronous>, transform_indices = @transform_3, window_bounds = array<i64: 3, 9, 128>}, {pipeline_mode = #tpu.pipeline_mode<synchronous>, transform_indices = @transform_4, window_bounds = array<i64: 1, 128>}, {transform_indices = @transform_5, window_bounds = array<i64: 1, 8, 8, 128>}]} {
    %c0 = arith.constant 0 : index
    %c0_0 = arith.constant 0 : index
    %c0_1 = arith.constant 0 : index
    %0 = vector.load %arg5[%c0, %c0_0, %c0_1] : memref<3x9x128xbf16, #tpu.memory_space<vmem>>, vector<1x9x128xbf16>
    %1 = vector.shape_cast %0 : vector<1x9x128xbf16> to vector<9x128xbf16>
    %c1 = arith.constant 1 : index
    %c0_2 = arith.constant 0 : index
    %c0_3 = arith.constant 0 : index
    %2 = vector.load %arg5[%c1, %c0_2, %c0_3] : memref<3x9x128xbf16, #tpu.memory_space<vmem>>, vector<1x9x128xbf16>
    %3 = vector.shape_cast %2 : vector<1x9x128xbf16> to vector<9x128xbf16>
    %c2 = arith.constant 2 : index
    %c0_4 = arith.constant 0 : index
    %c0_5 = arith.constant 0 : index
    %4 = vector.load %arg5[%c2, %c0_4, %c0_5] : memref<3x9x128xbf16, #tpu.memory_space<vmem>>, vector<1x9x128xbf16>
    %5 = vector.shape_cast %4 : vector<1x9x128xbf16> to vector<9x128xbf16>
    %c0_6 = arith.constant 0 : index
    %c0_7 = arith.constant 0 : index
    %6 = vector.load %arg6[%c0_6, %c0_7] : memref<1x128xf32, #tpu.memory_space<vmem>>, vector<1x128xf32>
    %c0_8 = arith.constant 0 : index
    %c0_9 = arith.constant 0 : index
    %c0_10 = arith.constant 0 : index
    %c0_11 = arith.constant 0 : index
    %7 = vector.load %arg2[%c0_8, %c0_9, %c0_10, %c0_11] : memref<1x8x8x9xbf16, #tpu.memory_space<vmem>>, vector<1x1x8x9xbf16>
    %8 = vector.shape_cast %7 : vector<1x1x8x9xbf16> to vector<8x9xbf16>
    %c0_12 = arith.constant 0 : index
    %c0_13 = arith.constant 0 : index
    %c0_14 = arith.constant 0 : index
    %c0_15 = arith.constant 0 : index
    %9 = vector.load %arg3[%c0_12, %c0_13, %c0_14, %c0_15] : memref<1x8x8x9xbf16, #tpu.memory_space<vmem>>, vector<1x1x8x9xbf16>
    %10 = vector.shape_cast %9 : vector<1x1x8x9xbf16> to vector<8x9xbf16>
    %c0_16 = arith.constant 0 : index
    %c1_17 = arith.constant 1 : index
    %c0_18 = arith.constant 0 : index
    %c0_19 = arith.constant 0 : index
    %11 = vector.load %arg2[%c0_16, %c1_17, %c0_18, %c0_19] : memref<1x8x8x9xbf16, #tpu.memory_space<vmem>>, vector<1x1x8x9xbf16>
    %12 = vector.shape_cast %11 : vector<1x1x8x9xbf16> to vector<8x9xbf16>
    %cst = arith.constant dense<0.000000e+00> : vector<8x128xf32>
    %13 = tpu.matmul %8, %1, %cst {dimension_numbers = #tpu.dot_dimension_numbers<[1], [0], [0], [1], [0, 0, 1, 1], [], []>} : vector<8x9xbf16>, vector<9x128xbf16>, vector<8x128xf32> -> vector<8x128xf32>
    %cst_20 = arith.constant dense<0.000000e+00> : vector<8x128xf32>
    %14 = tpu.matmul %10, %3, %cst_20 {dimension_numbers = #tpu.dot_dimension_numbers<[1], [0], [0], [1], [0, 0, 1, 1], [], []>} : vector<8x9xbf16>, vector<9x128xbf16>, vector<8x128xf32> -> vector<8x128xf32>
    %15 = arith.addf %13, %14 : vector<8x128xf32>
    %cst_21 = arith.constant dense<0.000000e+00> : vector<8x128xf32>
    %16 = tpu.matmul %12, %5, %cst_21 {dimension_numbers = #tpu.dot_dimension_numbers<[1], [0], [0], [1], [0, 0, 1, 1], [], []>} : vector<8x9xbf16>, vector<9x128xbf16>, vector<8x128xf32> -> vector<8x128xf32>
    %17 = arith.addf %15, %16 : vector<8x128xf32>
    %18 = vector.broadcast %6 : vector<1x128xf32> to vector<8x128xf32>
    %19 = arith.addf %17, %18 : vector<8x128xf32>
    %cst_22 = arith.constant 0.000000e+00 : f32
    %20 = vector.broadcast %cst_22 : f32 to vector<8x128xf32>
    %21 = arith.maximumf %19, %20 : vector<8x128xf32>
    %22 = arith.truncf %21 : vector<8x128xf32> to vector<8x128xbf16>
    %c0_23 = arith.constant 0 : index
    %c0_24 = arith.constant 0 : index
    %c0_25 = arith.constant 0 : index
    %c0_26 = arith.constant 0 : index
    %23 = vector.load %arg7[%c0_23, %c0_24, %c0_25, %c0_26] : memref<1x8x8x128xbf16, #tpu.memory_space<vmem>>, vector<1x1x8x128xbf16>
    %24 = vector.shape_cast %23 : vector<1x1x8x128xbf16> to vector<8x128xbf16>
    %25 = vector.shape_cast %22 : vector<8x128xbf16> to vector<1x1x8x128xbf16>
    tpu.vector_store %arg7[%c0_23, %c0_24, %c0_25, %c0_26], %25 {strides = array<i32>} : memref<1x8x8x128xbf16, #tpu.memory_space<vmem>>, vector<1x1x8x128xbf16>,
    %c0_27 = arith.constant 0 : index
    %c1_28 = arith.constant 1 : index
    %c0_29 = arith.constant 0 : index
    %c0_30 = arith.constant 0 : index
    %26 = vector.load %arg2[%c0_27, %c1_28, %c0_29, %c0_30] : memref<1x8x8x9xbf16, #tpu.memory_space<vmem>>, vector<1x1x8x9xbf16>
    %27 = vector.shape_cast %26 : vector<1x1x8x9xbf16> to vector<8x9xbf16>
    %c0_31 = arith.constant 0 : index
    %c1_32 = arith.constant 1 : index
    %c0_33 = arith.constant 0 : index
    %c0_34 = arith.constant 0 : index
    %28 = vector.load %arg3[%c0_31, %c1_32, %c0_33, %c0_34] : memref<1x8x8x9xbf16, #tpu.memory_space<vmem>>, vector<1x1x8x9xbf16>
    %29 = vector.shape_cast %28 : vector<1x1x8x9xbf16> to vector<8x9xbf16>
    %c0_35 = arith.constant 0 : index
    %c2_36 = arith.constant 2 : index
    %c0_37 = arith.constant 0 : index
    %c0_38 = arith.constant 0 : index
    %30 = vector.load %arg2[%c0_35, %c2_36, %c0_37, %c0_38] : memref<1x8x8x9xbf16, #tpu.memory_space<vmem>>, vector<1x1x8x9xbf16>
    %31 = vector.shape_cast %30 : vector<1x1x8x9xbf16> to vector<8x9xbf16>
    %cst_39 = arith.constant dense<0.000000e+00> : vector<8x128xf32>
    %32 = tpu.matmul %27, %1, %cst_39 {dimension_numbers = #tpu.dot_dimension_numbers<[1], [0], [0], [1], [0, 0, 1, 1], [], []>} : vector<8x9xbf16>, vector<9x128xbf16>, vector<8x128xf32> -> vector<8x128xf32>
    %cst_40 = arith.constant dense<0.000000e+00> : vector<8x128xf32>
    %33 = tpu.matmul %29, %3, %cst_40 {dimension_numbers = #tpu.dot_dimension_numbers<[1], [0], [0], [1], [0, 0, 1, 1], [], []>} : vector<8x9xbf16>, vector<9x128xbf16>, vector<8x128xf32> -> vector<8x128xf32>
    %34 = arith.addf %32, %33 : vector<8x128xf32>
    %cst_41 = arith.constant dense<0.000000e+00> : vector<8x128xf32>
    %35 = tpu.matmul %31, %5, %cst_41 {dimension_numbers = #tpu.dot_dimension_numbers<[1], [0], [0], [1], [0, 0, 1, 1], [], []>} : vector<8x9xbf16>, vector<9x128xbf16>, vector<8x128xf32> -> vector<8x128xf32>
    %36 = arith.addf %34, %35 : vector<8x128xf32>
    %37 = vector.broadcast %6 : vector<1x128xf32> to vector<8x128xf32>
    %38 = arith.addf %36, %37 : vector<8x128xf32>
    %cst_42 = arith.constant 0.000000e+00 : f32
    %39 = vector.broadcast %cst_42 : f32 to vector<8x128xf32>
    %40 = arith.maximumf %38, %39 : vector<8x128xf32>
    %41 = arith.truncf %40 : vector<8x128xf32> to vector<8x128xbf16>
    %c0_43 = arith.constant 0 : index
    %c1_44 = arith.constant 1 : index
    %c0_45 = arith.constant 0 : index
    %c0_46 = arith.constant 0 : index
    %42 = vector.load %arg7[%c0_43, %c1_44, %c0_45, %c0_46] : memref<1x8x8x128xbf16, #tpu.memory_space<vmem>>, vector<1x1x8x128xbf16>
    %43 = vector.shape_cast %42 : vector<1x1x8x128xbf16> to vector<8x128xbf16>
    %44 = vector.shape_cast %41 : vector<8x128xbf16> to vector<1x1x8x128xbf16>
    tpu.vector_store %arg7[%c0_43, %c1_44, %c0_45, %c0_46], %44 {strides = array<i32>} : memref<1x8x8x128xbf16, #tpu.memory_space<vmem>>, vector<1x1x8x128xbf16>,
    %c0_47 = arith.constant 0 : index
    %c2_48 = arith.constant 2 : index
    %c0_49 = arith.constant 0 : index
    %c0_50 = arith.constant 0 : index
    %45 = vector.load %arg2[%c0_47, %c2_48, %c0_49, %c0_50] : memref<1x8x8x9xbf16, #tpu.memory_space<vmem>>, vector<1x1x8x9xbf16>
    %46 = vector.shape_cast %45 : vector<1x1x8x9xbf16> to vector<8x9xbf16>
    %c0_51 = arith.constant 0 : index
    %c2_52 = arith.constant 2 : index
    %c0_53 = arith.constant 0 : index
    %c0_54 = arith.constant 0 : index
    %47 = vector.load %arg3[%c0_51, %c2_52, %c0_53, %c0_54] : memref<1x8x8x9xbf16, #tpu.memory_space<vmem>>, vector<1x1x8x9xbf16>
    %48 = vector.shape_cast %47 : vector<1x1x8x9xbf16> to vector<8x9xbf16>
    %c0_55 = arith.constant 0 : index
    %c3 = arith.constant 3 : index
    %c0_56 = arith.constant 0 : index
    %c0_57 = arith.constant 0 : index
    %49 = vector.load %arg2[%c0_55, %c3, %c0_56, %c0_57] : memref<1x8x8x9xbf16, #tpu.memory_space<vmem>>, vector<1x1x8x9xbf16>
    %50 = vector.shape_cast %49 : vector<1x1x8x9xbf16> to vector<8x9xbf16>
    %cst_58 = arith.constant dense<0.000000e+00> : vector<8x128xf32>
    %51 = tpu.matmul %46, %1, %cst_58 {dimension_numbers = #tpu.dot_dimension_numbers<[1], [0], [0], [1], [0, 0, 1, 1], [], []>} : vector<8x9xbf16>, vector<9x128xbf16>, vector<8x128xf32> -> vector<8x128xf32>
    %cst_59 = arith.constant dense<0.000000e+00> : vector<8x128xf32>
    %52 = tpu.matmul %48, %3, %cst_59 {dimension_numbers = #tpu.dot_dimension_numbers<[1], [0], [0], [1], [0, 0, 1, 1], [], []>} : vector<8x9xbf16>, vector<9x128xbf16>, vector<8x128xf32> -> vector<8x128xf32>
    %53 = arith.addf %51, %52 : vector<8x128xf32>
    %cst_60 = arith.constant dense<0.000000e+00> : vector<8x128xf32>
    %54 = tpu.matmul %50, %5, %cst_60 {dimension_numbers = #tpu.dot_dimension_numbers<[1], [0], [0], [1], [0, 0, 1, 1], [], []>} : vector<8x9xbf16>, vector<9x128xbf16>, vector<8x128xf32> -> vector<8x128xf32>
    %55 = arith.addf %53, %54 : vector<8x128xf32>
    %56 = vector.broadcast %6 : vector<1x128xf32> to vector<8x128xf32>
    %57 = arith.addf %55, %56 : vector<8x128xf32>
    %cst_61 = arith.constant 0.000000e+00 : f32
    %58 = vector.broadcast %cst_61 : f32 to vector<8x128xf32>
    %59 = arith.maximumf %57, %58 : vector<8x128xf32>
    %60 = arith.truncf %59 : vector<8x128xf32> to vector<8x128xbf16>
    %c0_62 = arith.constant 0 : index
    %c2_63 = arith.constant 2 : index
    %c0_64 = arith.constant 0 : index
    %c0_65 = arith.constant 0 : index
    %61 = vector.load %arg7[%c0_62, %c2_63, %c0_64, %c0_65] : memref<1x8x8x128xbf16, #tpu.memory_space<vmem>>, vector<1x1x8x128xbf16>
    %62 = vector.shape_cast %61 : vector<1x1x8x128xbf16> to vector<8x128xbf16>
    %63 = vector.shape_cast %60 : vector<8x128xbf16> to vector<1x1x8x128xbf16>
    tpu.vector_store %arg7[%c0_62, %c2_63, %c0_64, %c0_65], %63 {strides = array<i32>} : memref<1x8x8x128xbf16, #tpu.memory_space<vmem>>, vector<1x1x8x128xbf16>,
    %c0_66 = arith.constant 0 : index
    %c3_67 = arith.constant 3 : index
    %c0_68 = arith.constant 0 : index
    %c0_69 = arith.constant 0 : index
    %64 = vector.load %arg2[%c0_66, %c3_67, %c0_68, %c0_69] : memref<1x8x8x9xbf16, #tpu.memory_space<vmem>>, vector<1x1x8x9xbf16>
    %65 = vector.shape_cast %64 : vector<1x1x8x9xbf16> to vector<8x9xbf16>
    %c0_70 = arith.constant 0 : index
    %c3_71 = arith.constant 3 : index
    %c0_72 = arith.constant 0 : index
    %c0_73 = arith.constant 0 : index
    %66 = vector.load %arg3[%c0_70, %c3_71, %c0_72, %c0_73] : memref<1x8x8x9xbf16, #tpu.memory_space<vmem>>, vector<1x1x8x9xbf16>
    %67 = vector.shape_cast %66 : vector<1x1x8x9xbf16> to vector<8x9xbf16>
    %c0_74 = arith.constant 0 : index
    %c4 = arith.constant 4 : index
    %c0_75 = arith.constant 0 : index
    %c0_76 = arith.constant 0 : index
    %68 = vector.load %arg2[%c0_74, %c4, %c0_75, %c0_76] : memref<1x8x8x9xbf16, #tpu.memory_space<vmem>>, vector<1x1x8x9xbf16>
    %69 = vector.shape_cast %68 : vector<1x1x8x9xbf16> to vector<8x9xbf16>
    %cst_77 = arith.constant dense<0.000000e+00> : vector<8x128xf32>
    %70 = tpu.matmul %65, %1, %cst_77 {dimension_numbers = #tpu.dot_dimension_numbers<[1], [0], [0], [1], [0, 0, 1, 1], [], []>} : vector<8x9xbf16>, vector<9x128xbf16>, vector<8x128xf32> -> vector<8x128xf32>
    %cst_78 = arith.constant dense<0.000000e+00> : vector<8x128xf32>
    %71 = tpu.matmul %67, %3, %cst_78 {dimension_numbers = #tpu.dot_dimension_numbers<[1], [0], [0], [1], [0, 0, 1, 1], [], []>} : vector<8x9xbf16>, vector<9x128xbf16>, vector<8x128xf32> -> vector<8x128xf32>
    %72 = arith.addf %70, %71 : vector<8x128xf32>
    %cst_79 = arith.constant dense<0.000000e+00> : vector<8x128xf32>
    %73 = tpu.matmul %69, %5, %cst_79 {dimension_numbers = #tpu.dot_dimension_numbers<[1], [0], [0], [1], [0, 0, 1, 1], [], []>} : vector<8x9xbf16>, vector<9x128xbf16>, vector<8x128xf32> -> vector<8x128xf32>
    %74 = arith.addf %72, %73 : vector<8x128xf32>
    %75 = vector.broadcast %6 : vector<1x128xf32> to vector<8x128xf32>
    %76 = arith.addf %74, %75 : vector<8x128xf32>
    %cst_80 = arith.constant 0.000000e+00 : f32
    %77 = vector.broadcast %cst_80 : f32 to vector<8x128xf32>
    %78 = arith.maximumf %76, %77 : vector<8x128xf32>
    %79 = arith.truncf %78 : vector<8x128xf32> to vector<8x128xbf16>
    %c0_81 = arith.constant 0 : index
    %c3_82 = arith.constant 3 : index
    %c0_83 = arith.constant 0 : index
    %c0_84 = arith.constant 0 : index
    %80 = vector.load %arg7[%c0_81, %c3_82, %c0_83, %c0_84] : memref<1x8x8x128xbf16, #tpu.memory_space<vmem>>, vector<1x1x8x128xbf16>
    %81 = vector.shape_cast %80 : vector<1x1x8x128xbf16> to vector<8x128xbf16>
    %82 = vector.shape_cast %79 : vector<8x128xbf16> to vector<1x1x8x128xbf16>
    tpu.vector_store %arg7[%c0_81, %c3_82, %c0_83, %c0_84], %82 {strides = array<i32>} : memref<1x8x8x128xbf16, #tpu.memory_space<vmem>>, vector<1x1x8x128xbf16>,
    %c0_85 = arith.constant 0 : index
    %c4_86 = arith.constant 4 : index
    %c0_87 = arith.constant 0 : index
    %c0_88 = arith.constant 0 : index
    %83 = vector.load %arg2[%c0_85, %c4_86, %c0_87, %c0_88] : memref<1x8x8x9xbf16, #tpu.memory_space<vmem>>, vector<1x1x8x9xbf16>
    %84 = vector.shape_cast %83 : vector<1x1x8x9xbf16> to vector<8x9xbf16>
    %c0_89 = arith.constant 0 : index
    %c4_90 = arith.constant 4 : index
    %c0_91 = arith.constant 0 : index
    %c0_92 = arith.constant 0 : index
    %85 = vector.load %arg3[%c0_89, %c4_90, %c0_91, %c0_92] : memref<1x8x8x9xbf16, #tpu.memory_space<vmem>>, vector<1x1x8x9xbf16>
    %86 = vector.shape_cast %85 : vector<1x1x8x9xbf16> to vector<8x9xbf16>
    %c0_93 = arith.constant 0 : index
    %c5 = arith.constant 5 : index
    %c0_94 = arith.constant 0 : index
    %c0_95 = arith.constant 0 : index
    %87 = vector.load %arg2[%c0_93, %c5, %c0_94, %c0_95] : memref<1x8x8x9xbf16, #tpu.memory_space<vmem>>, vector<1x1x8x9xbf16>
    %88 = vector.shape_cast %87 : vector<1x1x8x9xbf16> to vector<8x9xbf16>
    %cst_96 = arith.constant dense<0.000000e+00> : vector<8x128xf32>
    %89 = tpu.matmul %84, %1, %cst_96 {dimension_numbers = #tpu.dot_dimension_numbers<[1], [0], [0], [1], [0, 0, 1, 1], [], []>} : vector<8x9xbf16>, vector<9x128xbf16>, vector<8x128xf32> -> vector<8x128xf32>
    %cst_97 = arith.constant dense<0.000000e+00> : vector<8x128xf32>
    %90 = tpu.matmul %86, %3, %cst_97 {dimension_numbers = #tpu.dot_dimension_numbers<[1], [0], [0], [1], [0, 0, 1, 1], [], []>} : vector<8x9xbf16>, vector<9x128xbf16>, vector<8x128xf32> -> vector<8x128xf32>
    %91 = arith.addf %89, %90 : vector<8x128xf32>
    %cst_98 = arith.constant dense<0.000000e+00> : vector<8x128xf32>
    %92 = tpu.matmul %88, %5, %cst_98 {dimension_numbers = #tpu.dot_dimension_numbers<[1], [0], [0], [1], [0, 0, 1, 1], [], []>} : vector<8x9xbf16>, vector<9x128xbf16>, vector<8x128xf32> -> vector<8x128xf32>
    %93 = arith.addf %91, %92 : vector<8x128xf32>
    %94 = vector.broadcast %6 : vector<1x128xf32> to vector<8x128xf32>
    %95 = arith.addf %93, %94 : vector<8x128xf32>
    %cst_99 = arith.constant 0.000000e+00 : f32
    %96 = vector.broadcast %cst_99 : f32 to vector<8x128xf32>
    %97 = arith.maximumf %95, %96 : vector<8x128xf32>
    %98 = arith.truncf %97 : vector<8x128xf32> to vector<8x128xbf16>
    %c0_100 = arith.constant 0 : index
    %c4_101 = arith.constant 4 : index
    %c0_102 = arith.constant 0 : index
    %c0_103 = arith.constant 0 : index
    %99 = vector.load %arg7[%c0_100, %c4_101, %c0_102, %c0_103] : memref<1x8x8x128xbf16, #tpu.memory_space<vmem>>, vector<1x1x8x128xbf16>
    %100 = vector.shape_cast %99 : vector<1x1x8x128xbf16> to vector<8x128xbf16>
    %101 = vector.shape_cast %98 : vector<8x128xbf16> to vector<1x1x8x128xbf16>
    tpu.vector_store %arg7[%c0_100, %c4_101, %c0_102, %c0_103], %101 {strides = array<i32>} : memref<1x8x8x128xbf16, #tpu.memory_space<vmem>>, vector<1x1x8x128xbf16>,
    %c0_104 = arith.constant 0 : index
    %c5_105 = arith.constant 5 : index
    %c0_106 = arith.constant 0 : index
    %c0_107 = arith.constant 0 : index
    %102 = vector.load %arg2[%c0_104, %c5_105, %c0_106, %c0_107] : memref<1x8x8x9xbf16, #tpu.memory_space<vmem>>, vector<1x1x8x9xbf16>
    %103 = vector.shape_cast %102 : vector<1x1x8x9xbf16> to vector<8x9xbf16>
    %c0_108 = arith.constant 0 : index
    %c5_109 = arith.constant 5 : index
    %c0_110 = arith.constant 0 : index
    %c0_111 = arith.constant 0 : index
    %104 = vector.load %arg3[%c0_108, %c5_109, %c0_110, %c0_111] : memref<1x8x8x9xbf16, #tpu.memory_space<vmem>>, vector<1x1x8x9xbf16>
    %105 = vector.shape_cast %104 : vector<1x1x8x9xbf16> to vector<8x9xbf16>
    %c0_112 = arith.constant 0 : index
    %c6 = arith.constant 6 : index
    %c0_113 = arith.constant 0 : index
    %c0_114 = arith.constant 0 : index
    %106 = vector.load %arg2[%c0_112, %c6, %c0_113, %c0_114] : memref<1x8x8x9xbf16, #tpu.memory_space<vmem>>, vector<1x1x8x9xbf16>
    %107 = vector.shape_cast %106 : vector<1x1x8x9xbf16> to vector<8x9xbf16>
    %cst_115 = arith.constant dense<0.000000e+00> : vector<8x128xf32>
    %108 = tpu.matmul %103, %1, %cst_115 {dimension_numbers = #tpu.dot_dimension_numbers<[1], [0], [0], [1], [0, 0, 1, 1], [], []>} : vector<8x9xbf16>, vector<9x128xbf16>, vector<8x128xf32> -> vector<8x128xf32>
    %cst_116 = arith.constant dense<0.000000e+00> : vector<8x128xf32>
    %109 = tpu.matmul %105, %3, %cst_116 {dimension_numbers = #tpu.dot_dimension_numbers<[1], [0], [0], [1], [0, 0, 1, 1], [], []>} : vector<8x9xbf16>, vector<9x128xbf16>, vector<8x128xf32> -> vector<8x128xf32>
    %110 = arith.addf %108, %109 : vector<8x128xf32>
    %cst_117 = arith.constant dense<0.000000e+00> : vector<8x128xf32>
    %111 = tpu.matmul %107, %5, %cst_117 {dimension_numbers = #tpu.dot_dimension_numbers<[1], [0], [0], [1], [0, 0, 1, 1], [], []>} : vector<8x9xbf16>, vector<9x128xbf16>, vector<8x128xf32> -> vector<8x128xf32>
    %112 = arith.addf %110, %111 : vector<8x128xf32>
    %113 = vector.broadcast %6 : vector<1x128xf32> to vector<8x128xf32>
    %114 = arith.addf %112, %113 : vector<8x128xf32>
    %cst_118 = arith.constant 0.000000e+00 : f32
    %115 = vector.broadcast %cst_118 : f32 to vector<8x128xf32>
    %116 = arith.maximumf %114, %115 : vector<8x128xf32>
    %117 = arith.truncf %116 : vector<8x128xf32> to vector<8x128xbf16>
    %c0_119 = arith.constant 0 : index
    %c5_120 = arith.constant 5 : index
    %c0_121 = arith.constant 0 : index
    %c0_122 = arith.constant 0 : index
    %118 = vector.load %arg7[%c0_119, %c5_120, %c0_121, %c0_122] : memref<1x8x8x128xbf16, #tpu.memory_space<vmem>>, vector<1x1x8x128xbf16>
    %119 = vector.shape_cast %118 : vector<1x1x8x128xbf16> to vector<8x128xbf16>
    %120 = vector.shape_cast %117 : vector<8x128xbf16> to vector<1x1x8x128xbf16>
    tpu.vector_store %arg7[%c0_119, %c5_120, %c0_121, %c0_122], %120 {strides = array<i32>} : memref<1x8x8x128xbf16, #tpu.memory_space<vmem>>, vector<1x1x8x128xbf16>,
    %c0_123 = arith.constant 0 : index
    %c6_124 = arith.constant 6 : index
    %c0_125 = arith.constant 0 : index
    %c0_126 = arith.constant 0 : index
    %121 = vector.load %arg2[%c0_123, %c6_124, %c0_125, %c0_126] : memref<1x8x8x9xbf16, #tpu.memory_space<vmem>>, vector<1x1x8x9xbf16>
    %122 = vector.shape_cast %121 : vector<1x1x8x9xbf16> to vector<8x9xbf16>
    %c0_127 = arith.constant 0 : index
    %c6_128 = arith.constant 6 : index
    %c0_129 = arith.constant 0 : index
    %c0_130 = arith.constant 0 : index
    %123 = vector.load %arg3[%c0_127, %c6_128, %c0_129, %c0_130] : memref<1x8x8x9xbf16, #tpu.memory_space<vmem>>, vector<1x1x8x9xbf16>
    %124 = vector.shape_cast %123 : vector<1x1x8x9xbf16> to vector<8x9xbf16>
    %c0_131 = arith.constant 0 : index
    %c7 = arith.constant 7 : index
    %c0_132 = arith.constant 0 : index
    %c0_133 = arith.constant 0 : index
    %125 = vector.load %arg2[%c0_131, %c7, %c0_132, %c0_133] : memref<1x8x8x9xbf16, #tpu.memory_space<vmem>>, vector<1x1x8x9xbf16>
    %126 = vector.shape_cast %125 : vector<1x1x8x9xbf16> to vector<8x9xbf16>
    %cst_134 = arith.constant dense<0.000000e+00> : vector<8x128xf32>
    %127 = tpu.matmul %122, %1, %cst_134 {dimension_numbers = #tpu.dot_dimension_numbers<[1], [0], [0], [1], [0, 0, 1, 1], [], []>} : vector<8x9xbf16>, vector<9x128xbf16>, vector<8x128xf32> -> vector<8x128xf32>
    %cst_135 = arith.constant dense<0.000000e+00> : vector<8x128xf32>
    %128 = tpu.matmul %124, %3, %cst_135 {dimension_numbers = #tpu.dot_dimension_numbers<[1], [0], [0], [1], [0, 0, 1, 1], [], []>} : vector<8x9xbf16>, vector<9x128xbf16>, vector<8x128xf32> -> vector<8x128xf32>
    %129 = arith.addf %127, %128 : vector<8x128xf32>
    %cst_136 = arith.constant dense<0.000000e+00> : vector<8x128xf32>
    %130 = tpu.matmul %126, %5, %cst_136 {dimension_numbers = #tpu.dot_dimension_numbers<[1], [0], [0], [1], [0, 0, 1, 1], [], []>} : vector<8x9xbf16>, vector<9x128xbf16>, vector<8x128xf32> -> vector<8x128xf32>
    %131 = arith.addf %129, %130 : vector<8x128xf32>
    %132 = vector.broadcast %6 : vector<1x128xf32> to vector<8x128xf32>
    %133 = arith.addf %131, %132 : vector<8x128xf32>
    %cst_137 = arith.constant 0.000000e+00 : f32
    %134 = vector.broadcast %cst_137 : f32 to vector<8x128xf32>
    %135 = arith.maximumf %133, %134 : vector<8x128xf32>
    %136 = arith.truncf %135 : vector<8x128xf32> to vector<8x128xbf16>
    %c0_138 = arith.constant 0 : index
    %c6_139 = arith.constant 6 : index
    %c0_140 = arith.constant 0 : index
    %c0_141 = arith.constant 0 : index
    %137 = vector.load %arg7[%c0_138, %c6_139, %c0_140, %c0_141] : memref<1x8x8x128xbf16, #tpu.memory_space<vmem>>, vector<1x1x8x128xbf16>
    %138 = vector.shape_cast %137 : vector<1x1x8x128xbf16> to vector<8x128xbf16>
    %139 = vector.shape_cast %136 : vector<8x128xbf16> to vector<1x1x8x128xbf16>
    tpu.vector_store %arg7[%c0_138, %c6_139, %c0_140, %c0_141], %139 {strides = array<i32>} : memref<1x8x8x128xbf16, #tpu.memory_space<vmem>>, vector<1x1x8x128xbf16>,
    %c0_142 = arith.constant 0 : index
    %c7_143 = arith.constant 7 : index
    %c0_144 = arith.constant 0 : index
    %c0_145 = arith.constant 0 : index
    %140 = vector.load %arg2[%c0_142, %c7_143, %c0_144, %c0_145] : memref<1x8x8x9xbf16, #tpu.memory_space<vmem>>, vector<1x1x8x9xbf16>
    %141 = vector.shape_cast %140 : vector<1x1x8x9xbf16> to vector<8x9xbf16>
    %c0_146 = arith.constant 0 : index
    %c7_147 = arith.constant 7 : index
    %c0_148 = arith.constant 0 : index
    %c0_149 = arith.constant 0 : index
    %142 = vector.load %arg3[%c0_146, %c7_147, %c0_148, %c0_149] : memref<1x8x8x9xbf16, #tpu.memory_space<vmem>>, vector<1x1x8x9xbf16>
    %143 = vector.shape_cast %142 : vector<1x1x8x9xbf16> to vector<8x9xbf16>
    %c0_150 = arith.constant 0 : index
    %c0_151 = arith.constant 0 : index
    %c0_152 = arith.constant 0 : index
    %c0_153 = arith.constant 0 : index
    %144 = vector.load %arg4[%c0_150, %c0_151, %c0_152, %c0_153] : memref<1x1x8x9xbf16, #tpu.memory_space<vmem>>, vector<1x1x8x9xbf16>
    %145 = vector.shape_cast %144 : vector<1x1x8x9xbf16> to vector<8x9xbf16>
    %cst_154 = arith.constant dense<0.000000e+00> : vector<8x128xf32>
    %146 = tpu.matmul %141, %1, %cst_154 {dimension_numbers = #tpu.dot_dimension_numbers<[1], [0], [0], [1], [0, 0, 1, 1], [], []>} : vector<8x9xbf16>, vector<9x128xbf16>, vector<8x128xf32> -> vector<8x128xf32>
    %cst_155 = arith.constant dense<0.000000e+00> : vector<8x128xf32>
    %147 = tpu.matmul %143, %3, %cst_155 {dimension_numbers = #tpu.dot_dimension_numbers<[1], [0], [0], [1], [0, 0, 1, 1], [], []>} : vector<8x9xbf16>, vector<9x128xbf16>, vector<8x128xf32> -> vector<8x128xf32>
    %148 = arith.addf %146, %147 : vector<8x128xf32>
    %cst_156 = arith.constant dense<0.000000e+00> : vector<8x128xf32>
    %149 = tpu.matmul %145, %5, %cst_156 {dimension_numbers = #tpu.dot_dimension_numbers<[1], [0], [0], [1], [0, 0, 1, 1], [], []>} : vector<8x9xbf16>, vector<9x128xbf16>, vector<8x128xf32> -> vector<8x128xf32>
    %150 = arith.addf %148, %149 : vector<8x128xf32>
    %151 = vector.broadcast %6 : vector<1x128xf32> to vector<8x128xf32>
    %152 = arith.addf %150, %151 : vector<8x128xf32>
    %cst_157 = arith.constant 0.000000e+00 : f32
    %153 = vector.broadcast %cst_157 : f32 to vector<8x128xf32>
    %154 = arith.maximumf %152, %153 : vector<8x128xf32>
    %155 = arith.truncf %154 : vector<8x128xf32> to vector<8x128xbf16>
    %c0_158 = arith.constant 0 : index
    %c7_159 = arith.constant 7 : index
    %c0_160 = arith.constant 0 : index
    %c0_161 = arith.constant 0 : index
    %156 = vector.load %arg7[%c0_158, %c7_159, %c0_160, %c0_161] : memref<1x8x8x128xbf16, #tpu.memory_space<vmem>>, vector<1x1x8x128xbf16>
    %157 = vector.shape_cast %156 : vector<1x1x8x128xbf16> to vector<8x128xbf16>
    %158 = vector.shape_cast %155 : vector<8x128xbf16> to vector<1x1x8x128xbf16>
    tpu.vector_store %arg7[%c0_158, %c7_159, %c0_160, %c0_161], %158 {strides = array<i32>} : memref<1x8x8x128xbf16, #tpu.memory_space<vmem>>, vector<1x1x8x128xbf16>,
    return
  }
  func.func @transform_0(%arg0: i32, %arg1: i32) -> (i32, i32, i32, i32) {
    %c0_i32 = arith.constant 0 : i32
    %c0_i32_0 = arith.constant 0 : i32
    %c0_i32_1 = arith.constant 0 : i32
    return %arg0, %arg1, %c0_i32, %c0_i32_0 : i32, i32, i32, i32
  }
  func.func @transform_1(%arg0: i32, %arg1: i32) -> (i32, i32, i32, i32) {
    %c0_i32 = arith.constant 0 : i32
    %c0_i32_0 = arith.constant 0 : i32
    %c0_i32_1 = arith.constant 0 : i32
    return %arg0, %arg1, %c0_i32, %c0_i32_0 : i32, i32, i32, i32
  }
  func.func @transform_2(%arg0: i32, %arg1: i32) -> (i32, i32, i32, i32) {
    %c0_i32 = arith.constant 0 : i32
    %c0_i32_0 = arith.constant 0 : i32
    %c0_i32_1 = arith.constant 0 : i32
    return %arg0, %arg1, %c0_i32, %c0_i32_0 : i32, i32, i32, i32
  }
  func.func @transform_3(%arg0: i32, %arg1: i32) -> (i32, i32, i32) {
    %c0_i32 = arith.constant 0 : i32
    %c0_i32_0 = arith.constant 0 : i32
    %c0_i32_1 = arith.constant 0 : i32
    %c0_i32_2 = arith.constant 0 : i32
    return %c0_i32, %c0_i32_0, %c0_i32_1 : i32, i32, i32
  }
  func.func @transform_4(%arg0: i32, %arg1: i32) -> (i32, i32) {
    %c0_i32 = arith.constant 0 : i32
    %c0_i32_0 = arith.constant 0 : i32
    %c0_i32_1 = arith.constant 0 : i32
    return %c0_i32, %c0_i32_0 : i32, i32
  }
  func.func @transform_5(%arg0: i32, %arg1: i32) -> (i32, i32, i32, i32) {
    %c0_i32 = arith.constant 0 : i32
    %c0_i32_0 = arith.constant 0 : i32
    %c0_i32_1 = arith.constant 0 : i32
    return %arg0, %arg1, %c0_i32, %c0_i32_0 : i32, i32, i32, i32
  }
}

module attributes {stable_mosaic.version = 11 : i64} {
  func.func @_conv_rows_kernel(%arg0: i32, %arg1: i32, %arg2: memref<1x4x4x384xbf16, #tpu.memory_space<vmem>>, %arg3: memref<1x4x4x384xbf16, #tpu.memory_space<vmem>>, %arg4: memref<1x1x4x384xbf16, #tpu.memory_space<vmem>>, %arg5: memref<3x384x128xbf16, #tpu.memory_space<vmem>>, %arg6: memref<1x128xf32, #tpu.memory_space<vmem>>, %arg7: memref<1x4x4x128xbf16, #tpu.memory_space<vmem>>) attributes {dimension_semantics = [#tpu.dimension_semantics<parallel>, #tpu.dimension_semantics<parallel>], iteration_bounds = array<i64: 2, 1>, scalar_prefetch = 0 : i64, scratch_operands = 0 : i64, tpu.core_type = #tpu.core_type<tc>, window_params = [{transform_indices = @transform_0, window_bounds = array<i64: 1, 4, 4, 384>}, {transform_indices = @transform_1, window_bounds = array<i64: 1, 4, 4, 384>}, {transform_indices = @transform_2, window_bounds = array<i64: 1, 1, 4, 384>}, {pipeline_mode = #tpu.pipeline_mode<synchronous>, transform_indices = @transform_3, window_bounds = array<i64: 3, 384, 128>}, {pipeline_mode = #tpu.pipeline_mode<synchronous>, transform_indices = @transform_4, window_bounds = array<i64: 1, 128>}, {transform_indices = @transform_5, window_bounds = array<i64: 1, 4, 4, 128>}]} {
    %c0 = arith.constant 0 : index
    %c0_0 = arith.constant 0 : index
    %c0_1 = arith.constant 0 : index
    %0 = vector.load %arg5[%c0, %c0_0, %c0_1] : memref<3x384x128xbf16, #tpu.memory_space<vmem>>, vector<1x384x128xbf16>
    %1 = vector.shape_cast %0 : vector<1x384x128xbf16> to vector<384x128xbf16>
    %c1 = arith.constant 1 : index
    %c0_2 = arith.constant 0 : index
    %c0_3 = arith.constant 0 : index
    %2 = vector.load %arg5[%c1, %c0_2, %c0_3] : memref<3x384x128xbf16, #tpu.memory_space<vmem>>, vector<1x384x128xbf16>
    %3 = vector.shape_cast %2 : vector<1x384x128xbf16> to vector<384x128xbf16>
    %c2 = arith.constant 2 : index
    %c0_4 = arith.constant 0 : index
    %c0_5 = arith.constant 0 : index
    %4 = vector.load %arg5[%c2, %c0_4, %c0_5] : memref<3x384x128xbf16, #tpu.memory_space<vmem>>, vector<1x384x128xbf16>
    %5 = vector.shape_cast %4 : vector<1x384x128xbf16> to vector<384x128xbf16>
    %c0_6 = arith.constant 0 : index
    %c0_7 = arith.constant 0 : index
    %6 = vector.load %arg6[%c0_6, %c0_7] : memref<1x128xf32, #tpu.memory_space<vmem>>, vector<1x128xf32>
    %c0_8 = arith.constant 0 : index
    %c0_9 = arith.constant 0 : index
    %c0_10 = arith.constant 0 : index
    %c0_11 = arith.constant 0 : index
    %7 = vector.load %arg2[%c0_8, %c0_9, %c0_10, %c0_11] : memref<1x4x4x384xbf16, #tpu.memory_space<vmem>>, vector<1x1x4x384xbf16>
    %8 = vector.shape_cast %7 : vector<1x1x4x384xbf16> to vector<4x384xbf16>
    %c0_12 = arith.constant 0 : index
    %c0_13 = arith.constant 0 : index
    %c0_14 = arith.constant 0 : index
    %c0_15 = arith.constant 0 : index
    %9 = vector.load %arg3[%c0_12, %c0_13, %c0_14, %c0_15] : memref<1x4x4x384xbf16, #tpu.memory_space<vmem>>, vector<1x1x4x384xbf16>
    %10 = vector.shape_cast %9 : vector<1x1x4x384xbf16> to vector<4x384xbf16>
    %c0_16 = arith.constant 0 : index
    %c1_17 = arith.constant 1 : index
    %c0_18 = arith.constant 0 : index
    %c0_19 = arith.constant 0 : index
    %11 = vector.load %arg2[%c0_16, %c1_17, %c0_18, %c0_19] : memref<1x4x4x384xbf16, #tpu.memory_space<vmem>>, vector<1x1x4x384xbf16>
    %12 = vector.shape_cast %11 : vector<1x1x4x384xbf16> to vector<4x384xbf16>
    %cst = arith.constant dense<0.000000e+00> : vector<4x128xf32>
    %13 = tpu.matmul %8, %1, %cst {dimension_numbers = #tpu.dot_dimension_numbers<[1], [0], [0], [1], [0, 0, 1, 1], [], []>} : vector<4x384xbf16>, vector<384x128xbf16>, vector<4x128xf32> -> vector<4x128xf32>
    %cst_20 = arith.constant dense<0.000000e+00> : vector<4x128xf32>
    %14 = tpu.matmul %10, %3, %cst_20 {dimension_numbers = #tpu.dot_dimension_numbers<[1], [0], [0], [1], [0, 0, 1, 1], [], []>} : vector<4x384xbf16>, vector<384x128xbf16>, vector<4x128xf32> -> vector<4x128xf32>
    %15 = arith.addf %13, %14 : vector<4x128xf32>
    %cst_21 = arith.constant dense<0.000000e+00> : vector<4x128xf32>
    %16 = tpu.matmul %12, %5, %cst_21 {dimension_numbers = #tpu.dot_dimension_numbers<[1], [0], [0], [1], [0, 0, 1, 1], [], []>} : vector<4x384xbf16>, vector<384x128xbf16>, vector<4x128xf32> -> vector<4x128xf32>
    %17 = arith.addf %15, %16 : vector<4x128xf32>
    %18 = vector.broadcast %6 : vector<1x128xf32> to vector<4x128xf32>
    %19 = arith.addf %17, %18 : vector<4x128xf32>
    %cst_22 = arith.constant 0.000000e+00 : f32
    %20 = vector.broadcast %cst_22 : f32 to vector<4x128xf32>
    %21 = arith.maximumf %19, %20 : vector<4x128xf32>
    %22 = arith.truncf %21 : vector<4x128xf32> to vector<4x128xbf16>
    %c0_23 = arith.constant 0 : index
    %c0_24 = arith.constant 0 : index
    %c0_25 = arith.constant 0 : index
    %c0_26 = arith.constant 0 : index
    %23 = vector.load %arg7[%c0_23, %c0_24, %c0_25, %c0_26] : memref<1x4x4x128xbf16, #tpu.memory_space<vmem>>, vector<1x1x4x128xbf16>
    %24 = vector.shape_cast %23 : vector<1x1x4x128xbf16> to vector<4x128xbf16>
    %25 = vector.shape_cast %22 : vector<4x128xbf16> to vector<1x1x4x128xbf16>
    tpu.vector_store %arg7[%c0_23, %c0_24, %c0_25, %c0_26], %25 {strides = array<i32>} : memref<1x4x4x128xbf16, #tpu.memory_space<vmem>>, vector<1x1x4x128xbf16>,
    %c0_27 = arith.constant 0 : index
    %c1_28 = arith.constant 1 : index
    %c0_29 = arith.constant 0 : index
    %c0_30 = arith.constant 0 : index
    %26 = vector.load %arg2[%c0_27, %c1_28, %c0_29, %c0_30] : memref<1x4x4x384xbf16, #tpu.memory_space<vmem>>, vector<1x1x4x384xbf16>
    %27 = vector.shape_cast %26 : vector<1x1x4x384xbf16> to vector<4x384xbf16>
    %c0_31 = arith.constant 0 : index
    %c1_32 = arith.constant 1 : index
    %c0_33 = arith.constant 0 : index
    %c0_34 = arith.constant 0 : index
    %28 = vector.load %arg3[%c0_31, %c1_32, %c0_33, %c0_34] : memref<1x4x4x384xbf16, #tpu.memory_space<vmem>>, vector<1x1x4x384xbf16>
    %29 = vector.shape_cast %28 : vector<1x1x4x384xbf16> to vector<4x384xbf16>
    %c0_35 = arith.constant 0 : index
    %c2_36 = arith.constant 2 : index
    %c0_37 = arith.constant 0 : index
    %c0_38 = arith.constant 0 : index
    %30 = vector.load %arg2[%c0_35, %c2_36, %c0_37, %c0_38] : memref<1x4x4x384xbf16, #tpu.memory_space<vmem>>, vector<1x1x4x384xbf16>
    %31 = vector.shape_cast %30 : vector<1x1x4x384xbf16> to vector<4x384xbf16>
    %cst_39 = arith.constant dense<0.000000e+00> : vector<4x128xf32>
    %32 = tpu.matmul %27, %1, %cst_39 {dimension_numbers = #tpu.dot_dimension_numbers<[1], [0], [0], [1], [0, 0, 1, 1], [], []>} : vector<4x384xbf16>, vector<384x128xbf16>, vector<4x128xf32> -> vector<4x128xf32>
    %cst_40 = arith.constant dense<0.000000e+00> : vector<4x128xf32>
    %33 = tpu.matmul %29, %3, %cst_40 {dimension_numbers = #tpu.dot_dimension_numbers<[1], [0], [0], [1], [0, 0, 1, 1], [], []>} : vector<4x384xbf16>, vector<384x128xbf16>, vector<4x128xf32> -> vector<4x128xf32>
    %34 = arith.addf %32, %33 : vector<4x128xf32>
    %cst_41 = arith.constant dense<0.000000e+00> : vector<4x128xf32>
    %35 = tpu.matmul %31, %5, %cst_41 {dimension_numbers = #tpu.dot_dimension_numbers<[1], [0], [0], [1], [0, 0, 1, 1], [], []>} : vector<4x384xbf16>, vector<384x128xbf16>, vector<4x128xf32> -> vector<4x128xf32>
    %36 = arith.addf %34, %35 : vector<4x128xf32>
    %37 = vector.broadcast %6 : vector<1x128xf32> to vector<4x128xf32>
    %38 = arith.addf %36, %37 : vector<4x128xf32>
    %cst_42 = arith.constant 0.000000e+00 : f32
    %39 = vector.broadcast %cst_42 : f32 to vector<4x128xf32>
    %40 = arith.maximumf %38, %39 : vector<4x128xf32>
    %41 = arith.truncf %40 : vector<4x128xf32> to vector<4x128xbf16>
    %c0_43 = arith.constant 0 : index
    %c1_44 = arith.constant 1 : index
    %c0_45 = arith.constant 0 : index
    %c0_46 = arith.constant 0 : index
    %42 = vector.load %arg7[%c0_43, %c1_44, %c0_45, %c0_46] : memref<1x4x4x128xbf16, #tpu.memory_space<vmem>>, vector<1x1x4x128xbf16>
    %43 = vector.shape_cast %42 : vector<1x1x4x128xbf16> to vector<4x128xbf16>
    %44 = vector.shape_cast %41 : vector<4x128xbf16> to vector<1x1x4x128xbf16>
    tpu.vector_store %arg7[%c0_43, %c1_44, %c0_45, %c0_46], %44 {strides = array<i32>} : memref<1x4x4x128xbf16, #tpu.memory_space<vmem>>, vector<1x1x4x128xbf16>,
    %c0_47 = arith.constant 0 : index
    %c2_48 = arith.constant 2 : index
    %c0_49 = arith.constant 0 : index
    %c0_50 = arith.constant 0 : index
    %45 = vector.load %arg2[%c0_47, %c2_48, %c0_49, %c0_50] : memref<1x4x4x384xbf16, #tpu.memory_space<vmem>>, vector<1x1x4x384xbf16>
    %46 = vector.shape_cast %45 : vector<1x1x4x384xbf16> to vector<4x384xbf16>
    %c0_51 = arith.constant 0 : index
    %c2_52 = arith.constant 2 : index
    %c0_53 = arith.constant 0 : index
    %c0_54 = arith.constant 0 : index
    %47 = vector.load %arg3[%c0_51, %c2_52, %c0_53, %c0_54] : memref<1x4x4x384xbf16, #tpu.memory_space<vmem>>, vector<1x1x4x384xbf16>
    %48 = vector.shape_cast %47 : vector<1x1x4x384xbf16> to vector<4x384xbf16>
    %c0_55 = arith.constant 0 : index
    %c3 = arith.constant 3 : index
    %c0_56 = arith.constant 0 : index
    %c0_57 = arith.constant 0 : index
    %49 = vector.load %arg2[%c0_55, %c3, %c0_56, %c0_57] : memref<1x4x4x384xbf16, #tpu.memory_space<vmem>>, vector<1x1x4x384xbf16>
    %50 = vector.shape_cast %49 : vector<1x1x4x384xbf16> to vector<4x384xbf16>
    %cst_58 = arith.constant dense<0.000000e+00> : vector<4x128xf32>
    %51 = tpu.matmul %46, %1, %cst_58 {dimension_numbers = #tpu.dot_dimension_numbers<[1], [0], [0], [1], [0, 0, 1, 1], [], []>} : vector<4x384xbf16>, vector<384x128xbf16>, vector<4x128xf32> -> vector<4x128xf32>
    %cst_59 = arith.constant dense<0.000000e+00> : vector<4x128xf32>
    %52 = tpu.matmul %48, %3, %cst_59 {dimension_numbers = #tpu.dot_dimension_numbers<[1], [0], [0], [1], [0, 0, 1, 1], [], []>} : vector<4x384xbf16>, vector<384x128xbf16>, vector<4x128xf32> -> vector<4x128xf32>
    %53 = arith.addf %51, %52 : vector<4x128xf32>
    %cst_60 = arith.constant dense<0.000000e+00> : vector<4x128xf32>
    %54 = tpu.matmul %50, %5, %cst_60 {dimension_numbers = #tpu.dot_dimension_numbers<[1], [0], [0], [1], [0, 0, 1, 1], [], []>} : vector<4x384xbf16>, vector<384x128xbf16>, vector<4x128xf32> -> vector<4x128xf32>
    %55 = arith.addf %53, %54 : vector<4x128xf32>
    %56 = vector.broadcast %6 : vector<1x128xf32> to vector<4x128xf32>
    %57 = arith.addf %55, %56 : vector<4x128xf32>
    %cst_61 = arith.constant 0.000000e+00 : f32
    %58 = vector.broadcast %cst_61 : f32 to vector<4x128xf32>
    %59 = arith.maximumf %57, %58 : vector<4x128xf32>
    %60 = arith.truncf %59 : vector<4x128xf32> to vector<4x128xbf16>
    %c0_62 = arith.constant 0 : index
    %c2_63 = arith.constant 2 : index
    %c0_64 = arith.constant 0 : index
    %c0_65 = arith.constant 0 : index
    %61 = vector.load %arg7[%c0_62, %c2_63, %c0_64, %c0_65] : memref<1x4x4x128xbf16, #tpu.memory_space<vmem>>, vector<1x1x4x128xbf16>
    %62 = vector.shape_cast %61 : vector<1x1x4x128xbf16> to vector<4x128xbf16>
    %63 = vector.shape_cast %60 : vector<4x128xbf16> to vector<1x1x4x128xbf16>
    tpu.vector_store %arg7[%c0_62, %c2_63, %c0_64, %c0_65], %63 {strides = array<i32>} : memref<1x4x4x128xbf16, #tpu.memory_space<vmem>>, vector<1x1x4x128xbf16>,
    %c0_66 = arith.constant 0 : index
    %c3_67 = arith.constant 3 : index
    %c0_68 = arith.constant 0 : index
    %c0_69 = arith.constant 0 : index
    %64 = vector.load %arg2[%c0_66, %c3_67, %c0_68, %c0_69] : memref<1x4x4x384xbf16, #tpu.memory_space<vmem>>, vector<1x1x4x384xbf16>
    %65 = vector.shape_cast %64 : vector<1x1x4x384xbf16> to vector<4x384xbf16>
    %c0_70 = arith.constant 0 : index
    %c3_71 = arith.constant 3 : index
    %c0_72 = arith.constant 0 : index
    %c0_73 = arith.constant 0 : index
    %66 = vector.load %arg3[%c0_70, %c3_71, %c0_72, %c0_73] : memref<1x4x4x384xbf16, #tpu.memory_space<vmem>>, vector<1x1x4x384xbf16>
    %67 = vector.shape_cast %66 : vector<1x1x4x384xbf16> to vector<4x384xbf16>
    %c0_74 = arith.constant 0 : index
    %c0_75 = arith.constant 0 : index
    %c0_76 = arith.constant 0 : index
    %c0_77 = arith.constant 0 : index
    %68 = vector.load %arg4[%c0_74, %c0_75, %c0_76, %c0_77] : memref<1x1x4x384xbf16, #tpu.memory_space<vmem>>, vector<1x1x4x384xbf16>
    %69 = vector.shape_cast %68 : vector<1x1x4x384xbf16> to vector<4x384xbf16>
    %cst_78 = arith.constant dense<0.000000e+00> : vector<4x128xf32>
    %70 = tpu.matmul %65, %1, %cst_78 {dimension_numbers = #tpu.dot_dimension_numbers<[1], [0], [0], [1], [0, 0, 1, 1], [], []>} : vector<4x384xbf16>, vector<384x128xbf16>, vector<4x128xf32> -> vector<4x128xf32>
    %cst_79 = arith.constant dense<0.000000e+00> : vector<4x128xf32>
    %71 = tpu.matmul %67, %3, %cst_79 {dimension_numbers = #tpu.dot_dimension_numbers<[1], [0], [0], [1], [0, 0, 1, 1], [], []>} : vector<4x384xbf16>, vector<384x128xbf16>, vector<4x128xf32> -> vector<4x128xf32>
    %72 = arith.addf %70, %71 : vector<4x128xf32>
    %cst_80 = arith.constant dense<0.000000e+00> : vector<4x128xf32>
    %73 = tpu.matmul %69, %5, %cst_80 {dimension_numbers = #tpu.dot_dimension_numbers<[1], [0], [0], [1], [0, 0, 1, 1], [], []>} : vector<4x384xbf16>, vector<384x128xbf16>, vector<4x128xf32> -> vector<4x128xf32>
    %74 = arith.addf %72, %73 : vector<4x128xf32>
    %75 = vector.broadcast %6 : vector<1x128xf32> to vector<4x128xf32>
    %76 = arith.addf %74, %75 : vector<4x128xf32>
    %cst_81 = arith.constant 0.000000e+00 : f32
    %77 = vector.broadcast %cst_81 : f32 to vector<4x128xf32>
    %78 = arith.maximumf %76, %77 : vector<4x128xf32>
    %79 = arith.truncf %78 : vector<4x128xf32> to vector<4x128xbf16>
    %c0_82 = arith.constant 0 : index
    %c3_83 = arith.constant 3 : index
    %c0_84 = arith.constant 0 : index
    %c0_85 = arith.constant 0 : index
    %80 = vector.load %arg7[%c0_82, %c3_83, %c0_84, %c0_85] : memref<1x4x4x128xbf16, #tpu.memory_space<vmem>>, vector<1x1x4x128xbf16>
    %81 = vector.shape_cast %80 : vector<1x1x4x128xbf16> to vector<4x128xbf16>
    %82 = vector.shape_cast %79 : vector<4x128xbf16> to vector<1x1x4x128xbf16>
    tpu.vector_store %arg7[%c0_82, %c3_83, %c0_84, %c0_85], %82 {strides = array<i32>} : memref<1x4x4x128xbf16, #tpu.memory_space<vmem>>, vector<1x1x4x128xbf16>,
    return
  }
  func.func @transform_0(%arg0: i32, %arg1: i32) -> (i32, i32, i32, i32) {
    %c0_i32 = arith.constant 0 : i32
    %c0_i32_0 = arith.constant 0 : i32
    %c0_i32_1 = arith.constant 0 : i32
    return %arg0, %arg1, %c0_i32, %c0_i32_0 : i32, i32, i32, i32
  }
  func.func @transform_1(%arg0: i32, %arg1: i32) -> (i32, i32, i32, i32) {
    %c0_i32 = arith.constant 0 : i32
    %c0_i32_0 = arith.constant 0 : i32
    %c0_i32_1 = arith.constant 0 : i32
    return %arg0, %arg1, %c0_i32, %c0_i32_0 : i32, i32, i32, i32
  }
  func.func @transform_2(%arg0: i32, %arg1: i32) -> (i32, i32, i32, i32) {
    %c0_i32 = arith.constant 0 : i32
    %c0_i32_0 = arith.constant 0 : i32
    %c0_i32_1 = arith.constant 0 : i32
    return %arg0, %arg1, %c0_i32, %c0_i32_0 : i32, i32, i32, i32
  }
  func.func @transform_3(%arg0: i32, %arg1: i32) -> (i32, i32, i32) {
    %c0_i32 = arith.constant 0 : i32
    %c0_i32_0 = arith.constant 0 : i32
    %c0_i32_1 = arith.constant 0 : i32
    %c0_i32_2 = arith.constant 0 : i32
    return %c0_i32, %c0_i32_0, %c0_i32_1 : i32, i32, i32
  }
  func.func @transform_4(%arg0: i32, %arg1: i32) -> (i32, i32) {
    %c0_i32 = arith.constant 0 : i32
    %c0_i32_0 = arith.constant 0 : i32
    %c0_i32_1 = arith.constant 0 : i32
    return %c0_i32, %c0_i32_0 : i32, i32
  }
  func.func @transform_5(%arg0: i32, %arg1: i32) -> (i32, i32, i32, i32) {
    %c0_i32 = arith.constant 0 : i32
    %c0_i32_0 = arith.constant 0 : i32
    %c0_i32_1 = arith.constant 0 : i32
    return %arg0, %arg1, %c0_i32, %c0_i32_0 : i32, i32, i32, i32
  }
}

module attributes {stable_mosaic.version = 11 : i64} {
  func.func @_conv_rows_kernel(%arg0: i32, %arg1: i32, %arg2: memref<1x2x2x384xbf16, #tpu.memory_space<vmem>>, %arg3: memref<1x2x2x384xbf16, #tpu.memory_space<vmem>>, %arg4: memref<1x1x2x384xbf16, #tpu.memory_space<vmem>>, %arg5: memref<3x384x128xbf16, #tpu.memory_space<vmem>>, %arg6: memref<1x128xf32, #tpu.memory_space<vmem>>, %arg7: memref<1x2x2x128xf32, #tpu.memory_space<vmem>>) attributes {dimension_semantics = [#tpu.dimension_semantics<parallel>, #tpu.dimension_semantics<parallel>], iteration_bounds = array<i64: 2, 1>, scalar_prefetch = 0 : i64, scratch_operands = 0 : i64, tpu.core_type = #tpu.core_type<tc>, window_params = [{transform_indices = @transform_0, window_bounds = array<i64: 1, 2, 2, 384>}, {transform_indices = @transform_1, window_bounds = array<i64: 1, 2, 2, 384>}, {transform_indices = @transform_2, window_bounds = array<i64: 1, 1, 2, 384>}, {pipeline_mode = #tpu.pipeline_mode<synchronous>, transform_indices = @transform_3, window_bounds = array<i64: 3, 384, 128>}, {pipeline_mode = #tpu.pipeline_mode<synchronous>, transform_indices = @transform_4, window_bounds = array<i64: 1, 128>}, {transform_indices = @transform_5, window_bounds = array<i64: 1, 2, 2, 128>}]} {
    %c0 = arith.constant 0 : index
    %c0_0 = arith.constant 0 : index
    %c0_1 = arith.constant 0 : index
    %0 = vector.load %arg5[%c0, %c0_0, %c0_1] : memref<3x384x128xbf16, #tpu.memory_space<vmem>>, vector<1x384x128xbf16>
    %1 = vector.shape_cast %0 : vector<1x384x128xbf16> to vector<384x128xbf16>
    %c1 = arith.constant 1 : index
    %c0_2 = arith.constant 0 : index
    %c0_3 = arith.constant 0 : index
    %2 = vector.load %arg5[%c1, %c0_2, %c0_3] : memref<3x384x128xbf16, #tpu.memory_space<vmem>>, vector<1x384x128xbf16>
    %3 = vector.shape_cast %2 : vector<1x384x128xbf16> to vector<384x128xbf16>
    %c2 = arith.constant 2 : index
    %c0_4 = arith.constant 0 : index
    %c0_5 = arith.constant 0 : index
    %4 = vector.load %arg5[%c2, %c0_4, %c0_5] : memref<3x384x128xbf16, #tpu.memory_space<vmem>>, vector<1x384x128xbf16>
    %5 = vector.shape_cast %4 : vector<1x384x128xbf16> to vector<384x128xbf16>
    %c0_6 = arith.constant 0 : index
    %c0_7 = arith.constant 0 : index
    %6 = vector.load %arg6[%c0_6, %c0_7] : memref<1x128xf32, #tpu.memory_space<vmem>>, vector<1x128xf32>
    %c0_8 = arith.constant 0 : index
    %c0_9 = arith.constant 0 : index
    %c0_10 = arith.constant 0 : index
    %c0_11 = arith.constant 0 : index
    %7 = vector.load %arg2[%c0_8, %c0_9, %c0_10, %c0_11] : memref<1x2x2x384xbf16, #tpu.memory_space<vmem>>, vector<1x1x2x384xbf16>
    %8 = vector.shape_cast %7 : vector<1x1x2x384xbf16> to vector<2x384xbf16>
    %c0_12 = arith.constant 0 : index
    %c0_13 = arith.constant 0 : index
    %c0_14 = arith.constant 0 : index
    %c0_15 = arith.constant 0 : index
    %9 = vector.load %arg3[%c0_12, %c0_13, %c0_14, %c0_15] : memref<1x2x2x384xbf16, #tpu.memory_space<vmem>>, vector<1x1x2x384xbf16>
    %10 = vector.shape_cast %9 : vector<1x1x2x384xbf16> to vector<2x384xbf16>
    %c0_16 = arith.constant 0 : index
    %c1_17 = arith.constant 1 : index
    %c0_18 = arith.constant 0 : index
    %c0_19 = arith.constant 0 : index
    %11 = vector.load %arg2[%c0_16, %c1_17, %c0_18, %c0_19] : memref<1x2x2x384xbf16, #tpu.memory_space<vmem>>, vector<1x1x2x384xbf16>
    %12 = vector.shape_cast %11 : vector<1x1x2x384xbf16> to vector<2x384xbf16>
    %cst = arith.constant dense<0.000000e+00> : vector<2x128xf32>
    %13 = tpu.matmul %8, %1, %cst {dimension_numbers = #tpu.dot_dimension_numbers<[1], [0], [0], [1], [0, 0, 1, 1], [], []>} : vector<2x384xbf16>, vector<384x128xbf16>, vector<2x128xf32> -> vector<2x128xf32>
    %cst_20 = arith.constant dense<0.000000e+00> : vector<2x128xf32>
    %14 = tpu.matmul %10, %3, %cst_20 {dimension_numbers = #tpu.dot_dimension_numbers<[1], [0], [0], [1], [0, 0, 1, 1], [], []>} : vector<2x384xbf16>, vector<384x128xbf16>, vector<2x128xf32> -> vector<2x128xf32>
    %15 = arith.addf %13, %14 : vector<2x128xf32>
    %cst_21 = arith.constant dense<0.000000e+00> : vector<2x128xf32>
    %16 = tpu.matmul %12, %5, %cst_21 {dimension_numbers = #tpu.dot_dimension_numbers<[1], [0], [0], [1], [0, 0, 1, 1], [], []>} : vector<2x384xbf16>, vector<384x128xbf16>, vector<2x128xf32> -> vector<2x128xf32>
    %17 = arith.addf %15, %16 : vector<2x128xf32>
    %18 = vector.broadcast %6 : vector<1x128xf32> to vector<2x128xf32>
    %19 = arith.addf %17, %18 : vector<2x128xf32>
    %cst_22 = arith.constant 0.000000e+00 : f32
    %20 = vector.broadcast %cst_22 : f32 to vector<2x128xf32>
    %21 = arith.maximumf %19, %20 : vector<2x128xf32>
    %c0_23 = arith.constant 0 : index
    %c0_24 = arith.constant 0 : index
    %c0_25 = arith.constant 0 : index
    %c0_26 = arith.constant 0 : index
    %22 = vector.load %arg7[%c0_23, %c0_24, %c0_25, %c0_26] : memref<1x2x2x128xf32, #tpu.memory_space<vmem>>, vector<1x1x2x128xf32>
    %23 = vector.shape_cast %22 : vector<1x1x2x128xf32> to vector<2x128xf32>
    %24 = vector.shape_cast %21 : vector<2x128xf32> to vector<1x1x2x128xf32>
    tpu.vector_store %arg7[%c0_23, %c0_24, %c0_25, %c0_26], %24 {strides = array<i32>} : memref<1x2x2x128xf32, #tpu.memory_space<vmem>>, vector<1x1x2x128xf32>,
    %c0_27 = arith.constant 0 : index
    %c1_28 = arith.constant 1 : index
    %c0_29 = arith.constant 0 : index
    %c0_30 = arith.constant 0 : index
    %25 = vector.load %arg2[%c0_27, %c1_28, %c0_29, %c0_30] : memref<1x2x2x384xbf16, #tpu.memory_space<vmem>>, vector<1x1x2x384xbf16>
    %26 = vector.shape_cast %25 : vector<1x1x2x384xbf16> to vector<2x384xbf16>
    %c0_31 = arith.constant 0 : index
    %c1_32 = arith.constant 1 : index
    %c0_33 = arith.constant 0 : index
    %c0_34 = arith.constant 0 : index
    %27 = vector.load %arg3[%c0_31, %c1_32, %c0_33, %c0_34] : memref<1x2x2x384xbf16, #tpu.memory_space<vmem>>, vector<1x1x2x384xbf16>
    %28 = vector.shape_cast %27 : vector<1x1x2x384xbf16> to vector<2x384xbf16>
    %c0_35 = arith.constant 0 : index
    %c0_36 = arith.constant 0 : index
    %c0_37 = arith.constant 0 : index
    %c0_38 = arith.constant 0 : index
    %29 = vector.load %arg4[%c0_35, %c0_36, %c0_37, %c0_38] : memref<1x1x2x384xbf16, #tpu.memory_space<vmem>>, vector<1x1x2x384xbf16>
    %30 = vector.shape_cast %29 : vector<1x1x2x384xbf16> to vector<2x384xbf16>
    %cst_39 = arith.constant dense<0.000000e+00> : vector<2x128xf32>
    %31 = tpu.matmul %26, %1, %cst_39 {dimension_numbers = #tpu.dot_dimension_numbers<[1], [0], [0], [1], [0, 0, 1, 1], [], []>} : vector<2x384xbf16>, vector<384x128xbf16>, vector<2x128xf32> -> vector<2x128xf32>
    %cst_40 = arith.constant dense<0.000000e+00> : vector<2x128xf32>
    %32 = tpu.matmul %28, %3, %cst_40 {dimension_numbers = #tpu.dot_dimension_numbers<[1], [0], [0], [1], [0, 0, 1, 1], [], []>} : vector<2x384xbf16>, vector<384x128xbf16>, vector<2x128xf32> -> vector<2x128xf32>
    %33 = arith.addf %31, %32 : vector<2x128xf32>
    %cst_41 = arith.constant dense<0.000000e+00> : vector<2x128xf32>
    %34 = tpu.matmul %30, %5, %cst_41 {dimension_numbers = #tpu.dot_dimension_numbers<[1], [0], [0], [1], [0, 0, 1, 1], [], []>} : vector<2x384xbf16>, vector<384x128xbf16>, vector<2x128xf32> -> vector<2x128xf32>
    %35 = arith.addf %33, %34 : vector<2x128xf32>
    %36 = vector.broadcast %6 : vector<1x128xf32> to vector<2x128xf32>
    %37 = arith.addf %35, %36 : vector<2x128xf32>
    %cst_42 = arith.constant 0.000000e+00 : f32
    %38 = vector.broadcast %cst_42 : f32 to vector<2x128xf32>
    %39 = arith.maximumf %37, %38 : vector<2x128xf32>
    %c0_43 = arith.constant 0 : index
    %c1_44 = arith.constant 1 : index
    %c0_45 = arith.constant 0 : index
    %c0_46 = arith.constant 0 : index
    %40 = vector.load %arg7[%c0_43, %c1_44, %c0_45, %c0_46] : memref<1x2x2x128xf32, #tpu.memory_space<vmem>>, vector<1x1x2x128xf32>
    %41 = vector.shape_cast %40 : vector<1x1x2x128xf32> to vector<2x128xf32>
    %42 = vector.shape_cast %39 : vector<2x128xf32> to vector<1x1x2x128xf32>
    tpu.vector_store %arg7[%c0_43, %c1_44, %c0_45, %c0_46], %42 {strides = array<i32>} : memref<1x2x2x128xf32, #tpu.memory_space<vmem>>, vector<1x1x2x128xf32>,
    return
  }
  func.func @transform_0(%arg0: i32, %arg1: i32) -> (i32, i32, i32, i32) {
    %c0_i32 = arith.constant 0 : i32
    %c0_i32_0 = arith.constant 0 : i32
    %c0_i32_1 = arith.constant 0 : i32
    return %arg0, %arg1, %c0_i32, %c0_i32_0 : i32, i32, i32, i32
  }
  func.func @transform_1(%arg0: i32, %arg1: i32) -> (i32, i32, i32, i32) {
    %c0_i32 = arith.constant 0 : i32
    %c0_i32_0 = arith.constant 0 : i32
    %c0_i32_1 = arith.constant 0 : i32
    return %arg0, %arg1, %c0_i32, %c0_i32_0 : i32, i32, i32, i32
  }
  func.func @transform_2(%arg0: i32, %arg1: i32) -> (i32, i32, i32, i32) {
    %c0_i32 = arith.constant 0 : i32
    %c0_i32_0 = arith.constant 0 : i32
    %c0_i32_1 = arith.constant 0 : i32
    return %arg0, %arg1, %c0_i32, %c0_i32_0 : i32, i32, i32, i32
  }
  func.func @transform_3(%arg0: i32, %arg1: i32) -> (i32, i32, i32) {
    %c0_i32 = arith.constant 0 : i32
    %c0_i32_0 = arith.constant 0 : i32
    %c0_i32_1 = arith.constant 0 : i32
    %c0_i32_2 = arith.constant 0 : i32
    return %c0_i32, %c0_i32_0, %c0_i32_1 : i32, i32, i32
  }
  func.func @transform_4(%arg0: i32, %arg1: i32) -> (i32, i32) {
    %c0_i32 = arith.constant 0 : i32
    %c0_i32_0 = arith.constant 0 : i32
    %c0_i32_1 = arith.constant 0 : i32
    return %c0_i32, %c0_i32_0 : i32, i32
  }
  func.func @transform_5(%arg0: i32, %arg1: i32) -> (i32, i32, i32, i32) {
    %c0_i32 = arith.constant 0 : i32
    %c0_i32_0 = arith.constant 0 : i32
    %c0_i32_1 = arith.constant 0 : i32
    return %arg0, %arg1, %c0_i32, %c0_i32_0 : i32, i32, i32, i32
  }
}

</mosaic_0001>

<bundles_post_ra>
// kernel: spatial_path_forward.3
= control target key start
LH: loop header
LB: loop body
LE: loop exit
PB: predicated region body
PF: predicated region fallthrough
CT: control target
= control target key end

     0   :  { %s1128_s18 = smov 0   ;;  %s1130_s19 = smov 0   ;;  %s1268_s0 = inlined_call_operand.vmem [shape: bf16[2,8,8,9], index: 0, kind: input, shape index: {}]   ;;  %s1269_s1 = inlined_call_operand.vmem [shape: bf16[2,8,8,9], index: 1, kind: input, shape index: {}]   ;;  %s1270_s2 = inlined_call_operand.vmem [shape: bf16[2,1,8,9], index: 2, kind: input, shape index: {}]   ;;  %s1271_s3 = inlined_call_operand.vmem [shape: bf16[3,9,128], index: 3, kind: input, shape index: {}]   ;;  %s1272_s4 = inlined_call_operand.vmem [shape: f32[1,128], index: 4, kind: input, shape index: {}]   ;;  %s1273_s5 = inlined_call_operand.vmem [shape: bf16[2,8,8,128], index: 5, kind: output, shape index: {}]  }
   0x1   :  { %s1132_s20 = smov 0  }
   0x2 LB: > { %s27_s21 = sadd.s32 1, %s1091_s19  ;;  %p963_p0 = scmp.ge.s32.totalorder %s1095_s20, 1  ;;  %s1095_s20 = sphi %s1132_s20, %s15_s20   ;;  %s1091_s19 = sphi %s1130_s19, %s1275_s19   ;;  %s1087_s18 = sphi %s1128_s18, %s1274_s18  }
   0x3   : > { %p29_p1 = scmp.ge.s32.totalorder %s27_s21, 2  ;;  %p239_p2 = scmp.lt.s32.totalorder %s1095_s20, 3 }
   0x5   : > { %s1277_s21 = smov (%p29_p1, %s27_s21), 0  ;;  %p240_p3 = pnand %p963_p0, %p239_p2 }
   0x6   : > { %p292_p4 = scmp.lt.s32.totalorder (!%p240_p3), %s1087_s18, 1 }
   0x7   : > { %243 = sbr.rel (%p240_p3) target bundleno = 245 (0xf5), region = 40 }
   0xc   : > { %v978_v0 = vld [vmem:[%s1271_s3 + $0x8] sm:$0xf]  ;;  %v1045_v1 = vld [vmem:[%s1271_s3 + $0x8] sm:$0x10]  ;;  %vm351_vm0 = vcmask 1043456   ;;  %vm352_vm1 = vcmask 1044480  }
   0xd   : > { %v979_v2 = vor.u32 %v1045_v1, %v978_v0  ;;  %v983_v3 = vld [vmem:[%s1271_s3] sm:$0xf]  ;;  %v1044_v4 = vld [vmem:[%s1271_s3] sm:$0x10]  ;;  %v1097_v5 = vmov 65535   ;;  %s1279_s18 = smov (!%p292_p4, %s1087_s18), 1 }
   0xe   : > { %v353_v6 = vsel %vm351_vm0, 4294967295, %v1097_v5  ;;  %v984_v7 = vor.u32 %v1044_v4, %v983_v3  ;;  %v988_v8 = vld [vmem:[%s1271_s3 + $0x10] sm:$0xf]  ;;  %v1046_v9 = vld [vmem:[%s1271_s3 + $0x10] sm:$0x10]  ;;  %s1167_s9 = sshll.u32 %s1279_s18, 5 }
   0xf   : > { %v354_v10 = vsel %vm352_vm1, %v353_v6, 0  ;;  %v989_v11 = vor.u32 %v1046_v9, %v988_v8  ;;  %s1173_s12 = scalar_lea.vmem %s1268_s0, %s1167_s9  ;;  %s1179_s15 = scalar_lea.vmem %s1269_s1, %s1167_s9  ;;  %vm347_vm2 = vcmask 72704   ;;  %v1235_v42 = vld [vmem:[%s1272_s4] ss:$0 sm:$0xff] }
  0x10   : > { %v356_v12 = vand.u32 %v979_v2, %v354_v10  ;;  %v380_v13 = vand.u32 %v984_v7, %v354_v10  ;;  %v339_v15 = vld [vmem:[%s1179_s15] sm:$0xf]  ;;  %v975_v17 = vld [vmem:[%s1173_s12 + $0x4] sm:$0xf]  ;;  %v993_v20 = vld [vmem:[%s1173_s12 + $0x8] sm:$0xf]  ;;  %s1242_s27 = scalar_lea.vmem %s1273_s5, %s1167_s9 }
  0x11   : > { %v404_v14 = vand.u32 %v989_v11, %v354_v10  ;;  %v338_v16 = vld [vmem:[%s1173_s12] sm:$0xf]  ;;  %v992_v18 = vld [vmem:[%s1179_s15 + $0x4] sm:$0xf]  ;;  %v999_v21 = vld [vmem:[%s1179_s15 + $0x8] sm:$0xf] }
  0x12   : > { %365 = vmatpush.bf16.msra.mxu0 %v356_v12  ;;  %389 = vmatpush.bf16.msra.mxu1 %v380_v13  ;;  %v991_v19 = vld [vmem:[%s1173_s12 + $0x4] sm:$0xf]  ;;  %v998_v22 = vld [vmem:[%s1173_s12 + $0x8] sm:$0xf]  ;;  %v1000_v23 = vld [vmem:[%s1173_s12 + $0xc] sm:$0xf] }
  0x13   : > { %413 = vmatpush.bf16.msra.mxu2 %v404_v14  ;;  %442 = vmatpush.bf16.msra.mxu3 %v356_v12  ;;  %v1006_v24 = vld [vmem:[%s1179_s15 + $0xc] sm:$0xf]  ;;  %v1007_v26 = vld [vmem:[%s1173_s12 + $0x10] sm:$0xf]  ;;  %v1014_v29 = vld [vmem:[%s1173_s12 + $0x14] sm:$0xf] }
  0x14   : > { %v1005_v25 = vld [vmem:[%s1173_s12 + $0xc] sm:$0xf]  ;;  %v1013_v27 = vld [vmem:[%s1179_s15 + $0x10] sm:$0xf]  ;;  %v1020_v30 = vld [vmem:[%s1179_s15 + $0x14] sm:$0xf] }
  0x15   : > { %980 = vmatmul.msk.bf16.vlgmr.msra.gmra.mxu0 %vm347_vm2, %v339_v15  ;;  %985 = vmatmul.msk.bf16.vlgmr.msra.gmra.mxu1 %vm347_vm2, %v338_v16  ;;  %v1012_v28 = vld [vmem:[%s1173_s12 + $0x10] sm:$0xf]  ;;  %v1019_v31 = vld [vmem:[%s1173_s12 + $0x14] sm:$0xf]  ;;  %v1021_v32 = vld [vmem:[%s1173_s12 + $0x18] sm:$0xf] }
  0x16   : > { %990 = vmatmul.msk.bf16.vlgmr.msra.gmra.mxu2 %vm347_vm2, %v975_v17  ;;  %994 = vmatmul.msk.bf16.vlgmr.msra.gmra.mxu3 %vm347_vm2, %v992_v18  ;;  %v1027_v33 = vld [vmem:[%s1179_s15 + $0x18] sm:$0xf]  ;;  %s968_s16 = sshll.u32 %s1279_s18, 2  ;;  %v1028_v35 = vld [vmem:[%s1173_s12 + $0x1c] sm:$0xf] }
  0x17   : > { %501 = vmatpush.bf16.msrb.mxu2 %v356_v12  ;;  %517 = vmatpush.bf16.msrb.mxu3 %v380_v13  ;;  %v1026_v34 = vld [vmem:[%s1173_s12 + $0x18] sm:$0xf]  ;;  %s317_s23 = scalar_lea.vmem %s1270_s2, %s968_s16  ;;  %v1034_v36 = vld [vmem:[%s1179_s15 + $0x1c] sm:$0xf] }
  0x18   : > { %474 = vmatpush.bf16.msrb.mxu1 %v404_v14  ;;  %458 = vmatpush.bf16.msrb.mxu0 %v380_v13  ;;  %v1033_v37 = vld [vmem:[%s1173_s12 + $0x1c] sm:$0xf]  ;;  %v784_v38 = vld [vmem:[%s317_s23] sm:$0xf] }
  0x1b   : > { %576 = vmatpush.bf16.msra.mxu2 %v380_v13  ;;  %592 = vmatpush.bf16.msra.mxu3 %v404_v14 }
  0x1c   : > { %560 = vmatpush.bf16.msra.mxu1 %v356_v12  ;;  %533 = vmatpush.bf16.msra.mxu0 %v404_v14 }
  0x25   : > { %995 = vmatmul.msk.bf16.vlgmr.msrb.gmra.mxu0 %vm347_vm2, %v991_v19  ;;  %996 = vmatmul.msk.bf16.vlgmr.msrb.gmra.mxu1 %vm347_vm2, %v993_v20 }
  0x26   : > { %1001 = vmatmul.msk.bf16.vlgmr.msrb.gmra.mxu2 %vm347_vm2, %v999_v21  ;;  %1002 = vmatmul.msk.bf16.vlgmr.msrb.gmra.mxu3 %vm347_vm2, %v998_v22 }
  0x27   : > { %651 = vmatpush.bf16.msrb.mxu2 %v404_v14  ;;  %678 = vmatpush.bf16.msrb.mxu3 %v356_v12 }
  0x28   : > { %635 = vmatpush.bf16.msrb.mxu1 %v380_v13  ;;  %619 = vmatpush.bf16.msrb.mxu0 %v356_v12 }
  0x35   : > { %1003 = vmatmul.msk.bf16.vlgmr.msra.gmra.mxu0 %vm347_vm2, %v1000_v23  ;;  %1008 = vmatmul.msk.bf16.vlgmr.msra.gmra.mxu1 %vm347_vm2, %v1006_v24 }
  0x36   : > { %1009 = vmatmul.msk.bf16.vlgmr.msra.gmra.mxu2 %vm347_vm2, %v1005_v25  ;;  %1010 = vmatmul.msk.bf16.vlgmr.msra.gmra.mxu3 %vm347_vm2, %v1007_v26 }
  0x37   : > { %737 = vmatpush.bf16.msra.mxu2 %v356_v12  ;;  %753 = vmatpush.bf16.msra.mxu3 %v380_v13 }
  0x38   : > { %710 = vmatpush.bf16.msra.mxu1 %v404_v14  ;;  %694 = vmatpush.bf16.msra.mxu0 %v380_v13 }
  0x45   : > { %1015 = vmatmul.msk.bf16.vlgmr.msrb.gmra.mxu0 %vm347_vm2, %v1013_v27  ;;  %1016 = vmatmul.msk.bf16.vlgmr.msrb.gmra.mxu1 %vm347_vm2, %v1012_v28 }
  0x46   : > { %1017 = vmatmul.msk.bf16.vlgmr.msrb.gmra.mxu2 %vm347_vm2, %v1014_v29  ;;  %1022 = vmatmul.msk.bf16.vlgmr.msrb.gmra.mxu3 %vm347_vm2, %v1020_v30 }
  0x47   : > { %811 = vmatpush.bf16.msrb.mxu2 %v380_v13  ;;  %827 = vmatpush.bf16.msrb.mxu3 %v404_v14 }
  0x48   : > { %795 = vmatpush.bf16.msrb.mxu1 %v356_v12  ;;  %769 = vmatpush.bf16.msrb.mxu0 %v404_v14 }
  0x55   : > { %1023 = vmatmul.msk.bf16.vlgmr.msra.gmra.mxu0 %vm347_vm2, %v1019_v31  ;;  %1024 = vmatmul.msk.bf16.vlgmr.msra.gmra.mxu1 %vm347_vm2, %v1021_v32 }
  0x56   : > { %1029 = vmatmul.msk.bf16.vlgmr.msra.gmra.mxu2 %vm347_vm2, %v1027_v33  ;;  %1030 = vmatmul.msk.bf16.vlgmr.msra.gmra.mxu3 %vm347_vm2, %v1026_v34 }
  0x65   : > { %1031 = vmatmul.msk.bf16.vlgmr.msrb.gmra.mxu0 %vm347_vm2, %v1028_v35  ;;  %1035 = vmatmul.msk.bf16.vlgmr.msrb.gmra.mxu1 %vm347_vm2, %v1034_v36 }
  0x66   : > { %1036 = vmatmul.msk.bf16.vlgmr.msrb.gmra.mxu2 %vm347_vm2, %v1033_v37  ;;  %1037 = vmatmul.msk.bf16.vlgmr.msrb.gmra.mxu3 %vm347_vm2, %v784_v38 }
  0x92   : > { %v367_v39 = vpop.f32.mrf.mxu0  ;;  %v391_v40 = vpop.f32.mrf.mxu1 }
  0x93   : > { %v392_v41 = vadd.f32 %v391_v40, %v367_v39 }
  0x99   : > { %v415_v43 = vpop.f32.mrf.mxu2  ;;  %v444_v44 = vpop.f32.mrf.mxu3 }
  0x9a   : > { %v419_v45 = vadd.f32 %v415_v43, %v392_v41  ;;  %v369_v46 = vpop.f32.mrf.mxu0  ;;  %v393_v47 = vpop.f32.mrf.mxu1 }
  0x9c   : > { %v423_v48 = vadd.f32 %v1235_v42, %v419_v45 }
  0x9e   : > { %v424_v49 = vmax.f32 %v423_v48, 0.0 }
  0xa0   : > { %v425_v50 = vpack.c.bf16 %v424_v49, %v424_v49 }
  0xa1   : > { %v417_v51 = vpop.f32.mrf.mxu2  ;;  %v446_v52 = vpop.f32.mrf.mxu3 }
  0xa2   : > { %426 = vst [vmem:[%s1242_s27] sm:$0xf] %v425_v50  ;;  %v460_v53 = vpop.f32.mrf.mxu0  ;;  %v476_v54 = vpop.f32.mrf.mxu1 }
  0xa3   : > { %v461_v55 = vadd.f32 %v460_v53, %v444_v44 }
  0xa5   : > { %v480_v56 = vadd.f32 %v476_v54, %v461_v55 }
  0xa7   : > { %v481_v57 = vadd.f32 %v1235_v42, %v480_v56 }
  0xa9   : > { %v482_v58 = vmax.f32 %v481_v57, 0.0  ;;  %v503_v59 = vpop.f32.mrf.mxu2  ;;  %v519_v60 = vpop.f32.mrf.mxu3 }
  0xaa   : > { %v462_v61 = vpop.f32.mrf.mxu0  ;;  %v478_v62 = vpop.f32.mrf.mxu1  ;;  %v520_v0 = vadd.f32 %v519_v60, %v503_v59 }
  0xab   : > { %v483_v63 = vpack.c.bf16 %v482_v58, %v482_v58 }
  0xad   : > { %997 = vst [vmem:[%s1242_s27 + $0x4] sm:$0xf] %v483_v63 }
  0xb1   : > { %v505_v1 = vpop.f32.mrf.mxu2  ;;  %v521_v2 = vpop.f32.mrf.mxu3 }
  0xb2   : > { %v535_v3 = vpop.f32.mrf.mxu0  ;;  %v562_v4 = vpop.f32.mrf.mxu1 }
  0xb3   : > { %v539_v5 = vadd.f32 %v535_v3, %v520_v0 }
  0xb5   : > { %v540_v6 = vadd.f32 %v1235_v42, %v539_v5 }
  0xb7   : > { %v541_v7 = vmax.f32 %v540_v6, 0.0 }
  0xb9   : > { %v542_v8 = vpack.c.bf16 %v541_v7, %v541_v7  ;;  %v578_v9 = vpop.f32.mrf.mxu2  ;;  %v594_v10 = vpop.f32.mrf.mxu3 }
  0xba   : > { %v579_v11 = vadd.f32 %v578_v9, %v562_v4  ;;  %v537_v12 = vpop.f32.mrf.mxu0  ;;  %v564_v13 = vpop.f32.mrf.mxu1 }
  0xbb   : > { %1004 = vst [vmem:[%s1242_s27 + $0x8] sm:$0xf] %v542_v8 }
  0xbc   : > { %v598_v14 = vadd.f32 %v594_v10, %v579_v11 }
  0xbe   : > { %v599_v15 = vadd.f32 %v1235_v42, %v598_v14 }
  0xc0   : > { %v600_v16 = vmax.f32 %v599_v15, 0.0 }
  0xc1   : > { %v580_v17 = vpop.f32.mrf.mxu2  ;;  %v596_v18 = vpop.f32.mrf.mxu3 }
  0xc2   : > { %v601_v19 = vpack.c.bf16 %v600_v16, %v600_v16  ;;  %v621_v20 = vpop.f32.mrf.mxu0  ;;  %v637_v21 = vpop.f32.mrf.mxu1 }
  0xc3   : > { %v638_v22 = vadd.f32 %v637_v21, %v621_v20 }
  0xc4   : > { %1011 = vst [vmem:[%s1242_s27 + $0xc] sm:$0xf] %v601_v19 }
  0xc9   : > { %v653_v23 = vpop.f32.mrf.mxu2  ;;  %v680_v24 = vpop.f32.mrf.mxu3 }
  0xca   : > { %v657_v25 = vadd.f32 %v653_v23, %v638_v22  ;;  %v623_v26 = vpop.f32.mrf.mxu0  ;;  %v639_v27 = vpop.f32.mrf.mxu1 }
  0xcc   : > { %v658_v28 = vadd.f32 %v1235_v42, %v657_v25 }
  0xce   : > { %v659_v29 = vmax.f32 %v658_v28, 0.0 }
  0xd0   : > { %v660_v30 = vpack.c.bf16 %v659_v29, %v659_v29 }
  0xd1   : > { %v655_v31 = vpop.f32.mrf.mxu2  ;;  %v682_v32 = vpop.f32.mrf.mxu3 }
  0xd2   : > { %1018 = vst [vmem:[%s1242_s27 + $0x10] sm:$0xf] %v660_v30  ;;  %v696_v33 = vpop.f32.mrf.mxu0  ;;  %v712_v34 = vpop.f32.mrf.mxu1 }
  0xd3   : > { %v697_v35 = vadd.f32 %v696_v33, %v680_v24 }
  0xd5   : > { %v716_v36 = vadd.f32 %v712_v34, %v697_v35 }
  0xd7   : > { %v717_v37 = vadd.f32 %v1235_v42, %v716_v36 }
  0xd9   : > { %v718_v38 = vmax.f32 %v717_v37, 0.0  ;;  %v739_v39 = vpop.f32.mrf.mxu2  ;;  %v755_v40 = vpop.f32.mrf.mxu3 }
  0xda   : > { %v698_v41 = vpop.f32.mrf.mxu0  ;;  %v714_v43 = vpop.f32.mrf.mxu1  ;;  %v756_v45 = vadd.f32 %v755_v40, %v739_v39 }
  0xdb   : > { %v719_v44 = vpack.c.bf16 %v718_v38, %v718_v38 }
  0xdd   : > { %1025 = vst [vmem:[%s1242_s27 + $0x14] sm:$0xf] %v719_v44 }
  0xe1   : > { %v741_v46 = vpop.f32.mrf.mxu2  ;;  %v757_v47 = vpop.f32.mrf.mxu3 }
  0xe2   : > { %v771_v48 = vpop.f32.mrf.mxu0  ;;  %v797_v49 = vpop.f32.mrf.mxu1 }
  0xe3   : > { %v775_v50 = vadd.f32 %v771_v48, %v756_v45 }
  0xe5   : > { %v776_v51 = vadd.f32 %v1235_v42, %v775_v50 }
  0xe7   : > { %v777_v52 = vmax.f32 %v776_v51, 0.0 }
  0xe9   : > { %v778_v53 = vpack.c.bf16 %v777_v52, %v777_v52  ;;  %v813_v54 = vpop.f32.mrf.mxu2  ;;  %v829_v55 = vpop.f32.mrf.mxu3 }
  0xea   : > { %v814_v56 = vadd.f32 %v813_v54, %v797_v49  ;;  %v773_v57 = vpop.f32.mrf.mxu0  ;;  %v799_v58 = vpop.f32.mrf.mxu1 }
  0xeb   : > { %1032 = vst [vmem:[%s1242_s27 + $0x18] sm:$0xf] %v778_v53 }
  0xec   : > { %v833_v59 = vadd.f32 %v829_v55, %v814_v56 }
  0xee   : > { %v834_v60 = vadd.f32 %v1235_v42, %v833_v59 }
  0xf0   : > { %v835_v61 = vmax.f32 %v834_v60, 0.0 }
  0xf1   : > { %v815_v62 = vpop.f32.mrf.mxu2  ;;  %v831_v63 = vpop.f32.mrf.mxu3 }
  0xf2   : > { %v836_v0 = vpack.c.bf16 %v835_v61, %v835_v61 }
  0xf4   : > { %1038 = vst [vmem:[%s1242_s27 + $0x1c] sm:$0xf] %v836_v0 }
  0xf5 PF: > { %s15_s20 = sadd.s32 1, %s1095_s20   ;;  %s1274_s18 = smov %s1091_s19 }
  0xf6   : > { %p12_p5 = scmp.ge.s32.totalorder %s15_s20, 4   ;;  %s1275_s19 = smov %s1277_s21 }
  0xf8   :  { %14 = sbr.rel (!%p12_p5) target bundleno = 2 (0x2), region = 99 }

// kernel: spatial_path_forward.4
= control target key start
LH: loop header
LB: loop body
LE: loop exit
PB: predicated region body
PF: predicated region fallthrough
CT: control target
= control target key end

     0   :  { %s2221_s18 = smov 0   ;;  %s2223_s19 = smov 0   ;;  %s2973_s0 = inlined_call_operand.vmem [shape: bf16[2,4,4,384], index: 0, kind: input, shape index: {}]   ;;  %s2974_s1 = inlined_call_operand.vmem [shape: bf16[2,4,4,384], index: 1, kind: input, shape index: {}]   ;;  %s2975_s2 = inlined_call_operand.vmem [shape: bf16[2,1,4,384], index: 2, kind: input, shape index: {}]   ;;  %s2976_s3 = inlined_call_operand.vmem [shape: bf16[3,384,128], index: 3, kind: input, shape index: {}]   ;;  %s2977_s4 = inlined_call_operand.vmem [shape: f32[1,128], index: 4, kind: input, shape index: {}]   ;;  %s2978_s5 = inlined_call_operand.vmem [shape: bf16[2,4,4,128], index: 5, kind: output, shape index: {}]  }
   0x1   :  { %s2225_s20 = smov 0  }
   0x2 LB: > { %s27_s21 = sadd.s32 1, %s2185_s19  ;;  %p1663_p0 = scmp.ge.s32.totalorder %s2189_s20, 1  ;;  %s2189_s20 = sphi %s2225_s20, %s15_s20   ;;  %s2185_s19 = sphi %s2223_s19, %s3118_s19   ;;  %s2181_s18 = sphi %s2221_s18, %s3117_s18  }
   0x3   : > { %p29_p1 = scmp.ge.s32.totalorder %s27_s21, 2  ;;  %p243_p2 = scmp.lt.s32.totalorder %s2189_s20, 3 }
   0x5   : > { %s3120_s21 = smov (%p29_p1, %s27_s21), 0  ;;  %p244_p3 = pnand %p1663_p0, %p243_p2 }
   0x7   : > { %247 = sbr.rel (%p244_p3) target bundleno = 447 (0x1bf), region = 40 }
   0xc   : > { %v2242_v0 = vld [vmem:[%s2976_s3 + $0xf8] sm:$0xff]  ;;  %v2264_v4 = vld [vmem:[%s2976_s3 + $0xf0] sm:$0xff]  ;;  %p300_p4 = scmp.lt.s32.totalorder %s2181_s18, 1  ;;  %v2288_v8 = vld [vmem:[%s2976_s3 + $0xe8] sm:$0xff] }
   0xd   : > { %v2247_v1 = vld [vmem:[%s2976_s3 + $0x138] sm:$0xff]  ;;  %643 = vmatpush.bf16.msra.mxu0 %v2242_v0  ;;  %v2269_v5 = vld [vmem:[%s2976_s3 + $0x130] sm:$0xff]  ;;  %v2293_v9 = vld [vmem:[%s2976_s3 + $0x128] sm:$0xff] }
   0xe   : > { %v2252_v2 = vld [vmem:[%s2976_s3 + $0x178] sm:$0xff]  ;;  %656 = vmatpush.bf16.msra.mxu1 %v2247_v1  ;;  %3040 = vst [vmem:[#allocation4_spill] sm:$0xff] %v2269_v5  ;;  %v2276_v6 = vld [vmem:[%s2976_s3 + $0x170] sm:$0xff]  ;;  %s3122_s18 = smov (!%p300_p4, %s2181_s18), 1  ;;  %v2302_v10 = vld [vmem:[%s2976_s3 + $0x168] sm:$0xff] }
   0xf   : > { %3038 = vst [vmem:[#allocation2_spill] sm:$0xff] %v2252_v2  ;;  %v2257_v3 = vld [vmem:[%s2976_s3 + $0x38] sm:$0xff]  ;;  %669 = vmatpush.bf16.msra.mxu2 %v2252_v2  ;;  %v2281_v7 = vld [vmem:[%s2976_s3 + $0x30] sm:$0xff]  ;;  %v2307_v11 = vld [vmem:[%s2976_s3 + $0x28] sm:$0xff]  ;;  %s2140_s29 = smul.u32 24, %s3122_s18  ;;  %s2067_s13 = sshll.u32 %s3122_s18, 3 }
  0x10   : > { %3039 = vst [vmem:[#allocation3_spill] sm:$0xff] %v2257_v3  ;;  %834 = vmatpush.bf16.msra.mxu3 %v2257_v3  ;;  %v2314_v12 = vld [vmem:[%s2976_s3 + $0xe0] sm:$0xff]  ;;  %v2339_v16 = vld [vmem:[%s2976_s3 + $0xd8] sm:$0xff]  ;;  %v2369_v21 = vld [vmem:[%s2976_s3 + $0xd0] sm:$0xff]  ;;  %s2141_s12 = smul.u32 6, %s3122_s18  ;;  %s2899_s16 = scalar_lea.vmem %s2978_s5, %s2067_s13 }
  0x11   : > { %3041 = vst [vmem:[#allocation5_spill] sm:$0xff] %v2276_v6  ;;  %644 = vmatpush.bf16.msra.mxu0 %v2264_v4  ;;  %v2319_v13 = vld [vmem:[%s2976_s3 + $0x120] sm:$0xff]  ;;  %v2344_v17 = vld [vmem:[%s2976_s3 + $0x118] sm:$0xff]  ;;  %s2349_s15 = scalar_lea.vmem %s2974_s1, %s2140_s29  ;;  %v2374_v22 = vld [vmem:[%s2976_s3 + $0x110] sm:$0xff]  ;;  %s2391_s10 = scalar_lea.vmem %s2973_s0, %s2140_s29 }
  0x12   : > { %657 = vmatpush.bf16.msra.mxu1 %v2269_v5  ;;  %3042 = vst [vmem:[#allocation6_spill] sm:$0xff] %v2293_v9  ;;  %v2327_v14 = vld [vmem:[%s2976_s3 + $0x160] sm:$0xff]  ;;  %v2356_v18 = vld [vmem:[%s2976_s3 + $0x158] sm:$0xff]  ;;  %v2381_v23 = vld [vmem:[%s2976_s3 + $0x150] sm:$0xff]  ;;  %s329_s22 = scalar_lea.vmem %s2975_s2, %s2141_s12 }
  0x13   : > { %670 = vmatpush.bf16.msra.mxu2 %v2276_v6  ;;  %3043 = vst [vmem:[#allocation7_spill] sm:$0xff] %v2302_v10  ;;  %v2332_v15 = vld [vmem:[%s2976_s3 + $0x20] sm:$0xff]  ;;  %v2361_v19 = vld [vmem:[%s2976_s3 + $0x18] sm:$0xff]  ;;  %v2386_v24 = vld [vmem:[%s2976_s3 + $0x10] sm:$0xff] }
  0x14   : > { %835 = vmatpush.bf16.msra.mxu3 %v2281_v7  ;;  %3044 = vst [vmem:[#allocation8_spill] sm:$0xff] %v2319_v13  ;;  %v488_v20 = vld [vmem:[%s2349_s15] sm:$0x3f]  ;;  %v2398_v25 = vld [vmem:[%s2976_s3 + $0xc8] sm:$0xff]  ;;  %v2445_v37 = vld [vmem:[%s2976_s3 + $0x78] sm:$0xff] }
  0x15   : > { %645 = vmatpush.bf16.msra.mxu0 %v2288_v8  ;;  %3045 = vst [vmem:[#allocation9_spill] sm:$0xff] %v2327_v14  ;;  %v2403_v26 = vld [vmem:[%s2976_s3 + $0x108] sm:$0xff]  ;;  %v487_v29 = vld [vmem:[%s2391_s10] sm:$0x3f]  ;;  %v2450_v38 = vld [vmem:[%s2976_s3 + $0xb8] sm:$0xff] }
  0x16   : > { %658 = vmatpush.bf16.msra.mxu1 %v2293_v9  ;;  %3046 = vst [vmem:[#allocation10_spill] sm:$0xff] %v2344_v17  ;;  %v2410_v27 = vld [vmem:[%s2976_s3 + $0x148] sm:$0xff]  ;;  %v2423_v32 = vld [vmem:[%s2976_s3 + $0xc0] sm:$0xff]  ;;  %v2455_v39 = vld [vmem:[%s2976_s3 + $0x1b8] sm:$0xff] }
  0x17   : > { %671 = vmatpush.bf16.msra.mxu2 %v2302_v10  ;;  %3047 = vst [vmem:[#allocation11_spill] sm:$0xff] %v2356_v18  ;;  %v2415_v28 = vld [vmem:[%s2976_s3 + $0x8] sm:$0xff]  ;;  %v2428_v33 = vld [vmem:[%s2976_s3 + $0x100] sm:$0xff]  ;;  %v2460_v40 = vld [vmem:[%s2976_s3 + $0x1f8] sm:$0xff] }
  0x18   : > { %836 = vmatpush.bf16.msra.mxu3 %v2307_v11  ;;  %3048 = vst [vmem:[#allocation12_spill] sm:$0xff] %v2374_v22  ;;  %v2435_v35 = vld [vmem:[%s2976_s3 + $0x140] sm:$0xff]  ;;  %v2471_v41 = vld [vmem:[%s2976_s3 + $0x70] sm:$0xff]  ;;  %v2495_v46 = vld [vmem:[%s2976_s3 + $0x68] sm:$0xff] }
  0x19   : > { %646 = vmatpush.bf16.msra.mxu0 %v2314_v12  ;;  %492 = vst [vmem:[#allocation1] ss:$4 sm:$0xff] %v488_v20  ;;  %v2440_v36 = vld [vmem:[%s2976_s3] sm:$0xff]  ;;  %v2476_v42 = vld [vmem:[%s2976_s3 + $0xb0] sm:$0xff]  ;;  %v2500_v47 = vld [vmem:[%s2976_s3 + $0xa8] sm:$0xff] }
  0x1a   : > { %659 = vmatpush.bf16.msra.mxu1 %v2319_v13  ;;  %3049 = vst [vmem:[#allocation13_spill] sm:$0xff] %v2381_v23  ;;  %v2483_v43 = vld [vmem:[%s2976_s3 + $0x1b0] sm:$0xff]  ;;  %v2507_v48 = vld [vmem:[%s2976_s3 + $0x1a8] sm:$0xff]  ;;  %v2519_v50 = vld [vmem:[%s2976_s3 + $0x60] sm:$0xff] }
  0x1b   : > { %672 = vmatpush.bf16.msra.mxu2 %v2327_v14  ;;  %3050 = vst [vmem:[#allocation14_spill] sm:$0xff] %v2403_v26  ;;  %v2488_v44 = vld [vmem:[%s2976_s3 + $0x1f0] sm:$0xff]  ;;  %v2512_v49 = vld [vmem:[%s2976_s3 + $0x1e8] sm:$0xff]  ;;  %v2524_v51 = vld [vmem:[%s2976_s3 + $0xa0] sm:$0xff] }
  0x1c   : > { %837 = vmatpush.bf16.msra.mxu3 %v2332_v15  ;;  %3051 = vst [vmem:[#allocation15_spill] sm:$0xff] %v2410_v27  ;;  %v2531_v52 = vld [vmem:[%s2976_s3 + $0x1a0] sm:$0xff]  ;;  %v2544_v57 = vld [vmem:[%s2976_s3 + $0x58] sm:$0xff]  ;;  %v2568_v61 = vld [vmem:[%s2976_s3 + $0x50] sm:$0xff] }
  0x1d   : > { %647 = vmatpush.bf16.msra.mxu0 %v2339_v16  ;;  %3052 = vst [vmem:[#allocation16_spill] sm:$0xff] %v2428_v33  ;;  %v2536_v53 = vld [vmem:[%s2976_s3 + $0x1e0] sm:$0xff]  ;;  %v2549_v58 = vld [vmem:[%s2976_s3 + $0x98] sm:$0xff]  ;;  %v2573_v62 = vld [vmem:[%s2976_s3 + $0x90] sm:$0xff] }
  0x1e   : > { %660 = vmatpush.bf16.msra.mxu1 %v2344_v17  ;;  %3053 = vst [vmem:[#allocation17_spill] sm:$0xff] %v2435_v35  ;;  %v1765_v56 = vld [vmem:[%s2391_s10 + $0x6] sm:$0x3f]  ;;  %v2556_v59 = vld [vmem:[%s2976_s3 + $0x198] sm:$0xff]  ;;  %v2580_v63 = vld [vmem:[%s2976_s3 + $0x190] sm:$0xff] }
  0x1f   : > { %673 = vmatpush.bf16.msra.mxu2 %v2356_v18  ;;  %3054 = vst [vmem:[#allocation18_spill] sm:$0xff] %v2440_v36  ;;  %v2561_v60 = vld [vmem:[%s2976_s3 + $0x1d8] sm:$0xff]  ;;  %v2585_v20 = vld [vmem:[%s2976_s3 + $0x1d0] sm:$0xff] }
  0x20   : > { %838 = vmatpush.bf16.msra.mxu3 %v2361_v19  ;;  %v495_v30 = vld.sshfl [vmem:[#allocation1 + $0x10] sm:$0xff pattern:$0x73625140]  ;;  %v493_v31 = vld.sshfl [vmem:[#allocation1] sm:$0xff pattern:$0x73625140] }
  0x21   : > { %648 = vmatpush.bf16.msra.mxu0 %v2369_v21  ;;  %v494_v34 = vld.sshfl [vmem:[#allocation1 + $0x8] sm:$0xff pattern:$0x73625140]  ;;  %3055 = vst [vmem:[#allocation19_spill] sm:$0xff] %v2445_v37 }
  0x22   : > { %661 = vmatpush.bf16.msra.mxu1 %v2374_v22  ;;  %683 = vst [vmem:[#allocation1] ss:$4 sm:$0xff] %v487_v29  ;;  %v2592_v29 = vld [vmem:[%s2976_s3 + $0x48] sm:$0xff] }
  0x23   : > { %674 = vmatpush.bf16.msra.mxu2 %v2381_v23  ;;  %3056 = vst [vmem:[#allocation20_spill] sm:$0xff] %v2450_v38 }
  0x24   : > { %839 = vmatpush.bf16.msra.mxu3 %v2386_v24  ;;  %3057 = vst [vmem:[#allocation21_spill] sm:$0xff] %v2460_v40 }
  0x25   : > { %649 = vmatpush.bf16.msra.mxu0 %v2398_v25  ;;  %3058 = vst [vmem:[#allocation22_spill] sm:$0xff] %v2476_v42 }
  0x26   : > { %662 = vmatpush.bf16.msra.mxu1 %v2403_v26  ;;  %3059 = vst [vmem:[#allocation23_spill] sm:$0xff] %v2488_v44 }
  0x27   : > { %675 = vmatpush.bf16.msra.mxu2 %v2410_v27  ;;  %3060 = vst [vmem:[#allocation24_spill] sm:$0xff] %v2500_v47 }
  0x28   : > { %840 = vmatpush.bf16.msra.mxu3 %v2415_v28  ;;  %3061 = vst [vmem:[#allocation25_spill] sm:$0xff] %v2512_v49 }
  0x29   : > { %650 = vmatpush.bf16.msra.mxu0 %v2423_v32  ;;  %v684_v45 = vld.sshfl [vmem:[#allocation1] sm:$0xff pattern:$0x73625140]  ;;  %3062 = vst [vmem:[#allocation26_spill] sm:$0xff] %v2519_v50 }
  0x2a   : > { %663 = vmatpush.bf16.msra.mxu1 %v2428_v33  ;;  %3063 = vst [vmem:[#allocation27_spill] sm:$0xff] %v2524_v51  ;;  %v686_v54 = vld.sshfl [vmem:[#allocation1 + $0x10] sm:$0xff pattern:$0x73625140] }
  0x2b   : > { %676 = vmatpush.bf16.msra.mxu2 %v2435_v35  ;;  %3064 = vst [vmem:[#allocation28_spill] sm:$0xff] %v2536_v53  ;;  %v685_v55 = vld.sshfl [vmem:[#allocation1 + $0x8] sm:$0xff pattern:$0x73625140] }
  0x2c   : > { %841 = vmatpush.bf16.msra.mxu3 %v2440_v36  ;;  %651 = vmatmul.bf16.vlgmr.msra.gmra.mxu0 %v493_v31  ;;  %3065 = vst [vmem:[#allocation29_spill] sm:$0xff] %v2549_v58  ;;  %v2604_v31 = vld [vmem:[%s2976_s3 + $0x188] sm:$0xff]  ;;  %v2650_v36 = vld [vmem:[%s2976_s3 + $0x230] sm:$0xff] }
  0x2d   : > { %847 = vmatpush.bf16.msrb.mxu0 %v2445_v37  ;;  %664 = vmatmul.bf16.vlgmr.msra.gmra.mxu1 %v494_v34  ;;  %874 = vst [vmem:[#allocation1] ss:$4 sm:$0xff] %v1765_v56  ;;  %v2609_v34 = vld [vmem:[%s2976_s3 + $0x1c8] sm:$0xff]  ;;  %v2621_v56 = vld [vmem:[%s2976_s3 + $0x80] sm:$0xff] }
  0x2e   : > { %860 = vmatpush.bf16.msrb.mxu1 %v2450_v38  ;;  %677 = vmatmul.bf16.vlgmr.msra.gmra.mxu2 %v495_v30  ;;  %3066 = vst [vmem:[#allocation30_spill] sm:$0xff] %v2561_v60  ;;  %v2597_v30 = vld [vmem:[%s2976_s3 + $0x88] sm:$0xff] }
  0x2f   : > { %1025 = vmatpush.bf16.msrb.mxu2 %v2455_v39  ;;  %842 = vmatmul.bf16.vlgmr.msra.gmra.mxu3 %v684_v45  ;;  %3067 = vst [vmem:[#allocation31_spill] sm:$0xff] %v2573_v62  ;;  %v2616_v45 = vld [vmem:[%s2976_s3 + $0x40] sm:$0xff] }
  0x30   : > { %1038 = vmatpush.bf16.msrb.mxu3 %v2460_v40  ;;  %3068 = vst [vmem:[#allocation32_spill] sm:$0xff] %v2580_v63 }
  0x31   : > { %848 = vmatpush.bf16.msrb.mxu0 %v2471_v41  ;;  %3069 = vst [vmem:[#allocation33_spill] sm:$0xff] %v2585_v20 }
  0x32   : > { %861 = vmatpush.bf16.msrb.mxu1 %v2476_v42  ;;  %3070 = vst [vmem:[#allocation34_spill] sm:$0xff] %v2597_v30 }
  0x33   : > { %1026 = vmatpush.bf16.msrb.mxu2 %v2483_v43  ;;  %3071 = vst [vmem:[#allocation35_spill] sm:$0xff] %v2604_v31 }
  0x34   : > { %1039 = vmatpush.bf16.msrb.mxu3 %v2488_v44  ;;  %3072 = vst [vmem:[#allocation36_spill] sm:$0xff] %v2609_v34  ;;  %v876_v44 = vld.sshfl [vmem:[#allocation1 + $0x8] sm:$0xff pattern:$0x73625140] }
  0x35   : > { %849 = vmatpush.bf16.msrb.mxu0 %v2495_v46  ;;  %3073 = vst [vmem:[#allocation37_spill] sm:$0xff] %v2621_v56  ;;  %v877_v40 = vld.sshfl [vmem:[#allocation1 + $0x10] sm:$0xff pattern:$0x73625140] }
  0x36   : > { %862 = vmatpush.bf16.msrb.mxu1 %v2500_v47 }
  0x37   : > { %1027 = vmatpush.bf16.msrb.mxu2 %v2507_v48 }
  0x38   : > { %1040 = vmatpush.bf16.msrb.mxu3 %v2512_v49  ;;  %v2055_v49 = vld [vmem:[%s2349_s15 + $0x6] sm:$0x3f] }
  0x39   : > { %850 = vmatpush.bf16.msrb.mxu0 %v2519_v50 }
  0x3a   : > { %863 = vmatpush.bf16.msrb.mxu1 %v2524_v51 }
  0x3b   : > { %1028 = vmatpush.bf16.msrb.mxu2 %v2531_v52 }
  0x3c   : > { %1041 = vmatpush.bf16.msrb.mxu3 %v2536_v53  ;;  %v2638_v53 = vld [vmem:[%s2976_s3 + $0x238] sm:$0xff] }
  0x3d   : > { %851 = vmatpush.bf16.msrb.mxu0 %v2544_v57 }
  0x3e   : > { %864 = vmatpush.bf16.msrb.mxu1 %v2549_v58 }
  0x3f   : > { %1029 = vmatpush.bf16.msrb.mxu2 %v2556_v59 }
  0x40   : > { %1042 = vmatpush.bf16.msrb.mxu3 %v2561_v60  ;;  %v2633_v60 = vld [vmem:[%s2976_s3 + $0x1c0] sm:$0xff] }
  0x41   : > { %852 = vmatpush.bf16.msrb.mxu0 %v2568_v61  ;;  %3075 = vst [vmem:[#allocation39_spill] sm:$0xff] %v2633_v60 }
  0x42   : > { %865 = vmatpush.bf16.msrb.mxu1 %v2573_v62 }
  0x43   : > { %1030 = vmatpush.bf16.msrb.mxu2 %v2580_v63 }
  0x44   : > { %1043 = vmatpush.bf16.msrb.mxu3 %v2585_v20  ;;  %v2628_v20 = vld [vmem:[%s2976_s3 + $0x180] sm:$0xff] }
  0x45   : > { %853 = vmatpush.bf16.msrb.mxu0 %v2592_v29  ;;  %3074 = vst [vmem:[#allocation38_spill] sm:$0xff] %v2628_v20 }
  0x46   : > { %866 = vmatpush.bf16.msrb.mxu1 %v2597_v30 }
  0x47   : > { %1031 = vmatpush.bf16.msrb.mxu2 %v2604_v31 }
  0x48   : > { %1044 = vmatpush.bf16.msrb.mxu3 %v2609_v34  ;;  %v875_v34 = vld.sshfl [vmem:[#allocation1] sm:$0xff pattern:$0x73625140] }
  0x49   : > { %854 = vmatpush.bf16.msrb.mxu0 %v2616_v45  ;;  %1078 = vst [vmem:[#allocation1] ss:$4 sm:$0xff] %v2055_v49  ;;  %v2677_v49 = vld [vmem:[%s2976_s3 + $0x218] sm:$0xff] }
  0x4a   : > { %867 = vmatpush.bf16.msrb.mxu1 %v2621_v56  ;;  %3076 = vst [vmem:[#allocation40_spill] sm:$0xff] %v2677_v49 }
  0x4b   : > { %1032 = vmatpush.bf16.msrb.mxu2 %v2628_v20 }
  0x4c   : > { %1045 = vmatpush.bf16.msrb.mxu3 %v2633_v60  ;;  %855 = vmatmul.bf16.vlgmr.msrb.gmra.mxu0 %v685_v55  ;;  %v2659_v60 = vld [vmem:[%s2976_s3 + $0x228] sm:$0xff] }
  0x4d   : > { %1051 = vmatpush.bf16.msra.mxu0 %v2638_v53  ;;  %868 = vmatmul.bf16.vlgmr.msrb.gmra.mxu1 %v686_v54  ;;  %v2686_v54 = vld [vmem:[%s2976_s3 + $0x210] sm:$0xff]  ;;  %v2695_v55 = vld [vmem:[%s2976_s3 + $0x208] sm:$0xff] }
  0x4e   : > { %1085 = vmatpush.bf16.msra.mxu1 %v2242_v0  ;;  %1033 = vmatmul.bf16.vlgmr.msrb.gmra.mxu2 %v875_v34  ;;  %v2054_v34 = vld [vmem:[%s2391_s10 + $0x6] sm:$0x3f] }
  0x4f   : > { %1098 = vmatpush.bf16.msra.mxu2 %v2247_v1  ;;  %1046 = vmatmul.bf16.vlgmr.msrb.gmra.mxu3 %v876_v44  ;;  %v2668_v44 = vld [vmem:[%s2976_s3 + $0x220] sm:$0xff] }
  0x50   : > { %1111 = vmatpush.bf16.msra.mxu3 %v2252_v2 }
  0x51   : > { %1052 = vmatpush.bf16.msra.mxu0 %v2650_v36 }
  0x52   : > { %1086 = vmatpush.bf16.msra.mxu1 %v2264_v4 }
  0x53   : > { %1099 = vmatpush.bf16.msra.mxu2 %v2269_v5 }
  0x54   : > { %1112 = vmatpush.bf16.msra.mxu3 %v2276_v6  ;;  %v1079_v6 = vld.sshfl [vmem:[#allocation1] sm:$0xff pattern:$0x73625140] }
  0x55   : > { %1053 = vmatpush.bf16.msra.mxu0 %v2659_v60 }
  0x56   : > { %1087 = vmatpush.bf16.msra.mxu1 %v2288_v8 }
  0x57   : > { %1100 = vmatpush.bf16.msra.mxu2 %v2293_v9 }
  0x58   : > { %1113 = vmatpush.bf16.msra.mxu3 %v2302_v10  ;;  %v1081_v10 = vld.sshfl [vmem:[#allocation1 + $0x10] sm:$0xff pattern:$0x73625140] }
  0x59   : > { %1054 = vmatpush.bf16.msra.mxu0 %v2668_v44 }
  0x5a   : > { %1088 = vmatpush.bf16.msra.mxu1 %v2314_v12 }
  0x5b   : > { %1101 = vmatpush.bf16.msra.mxu2 %v2319_v13 }
  0x5c   : > { %1114 = vmatpush.bf16.msra.mxu3 %v2327_v14  ;;  %v1080_v14 = vld.sshfl [vmem:[#allocation1 + $0x8] sm:$0xff pattern:$0x73625140] }
  0x5d   : > { %1055 = vmatpush.bf16.msra.mxu0 %v2677_v49  ;;  %1125 = vst [vmem:[#allocation1] ss:$4 sm:$0xff] %v2054_v34  ;;  %v2056_v34 = vld [vmem:[%s2391_s10 + $0xc] sm:$0x3f] }
  0x5e   : > { %1089 = vmatpush.bf16.msra.mxu1 %v2339_v16 }
  0x5f   : > { %1102 = vmatpush.bf16.msra.mxu2 %v2344_v17 }
  0x60   : > { %1115 = vmatpush.bf16.msra.mxu3 %v2356_v18  ;;  %v2705_v18 = vld [vmem:[%s2976_s3 + $0x200] sm:$0xff] }
  0x61   : > { %1056 = vmatpush.bf16.msra.mxu0 %v2686_v54 }
  0x62   : > { %1090 = vmatpush.bf16.msra.mxu1 %v2369_v21 }
  0x63   : > { %1103 = vmatpush.bf16.msra.mxu2 %v2374_v22 }
  0x64   : > { %1116 = vmatpush.bf16.msra.mxu3 %v2381_v23  ;;  %v1127_v23 = vld.sshfl [vmem:[#allocation1 + $0x8] sm:$0xff pattern:$0x73625140] }
  0x65   : > { %1057 = vmatpush.bf16.msra.mxu0 %v2695_v55 }
  0x66   : > { %1091 = vmatpush.bf16.msra.mxu1 %v2398_v25 }
  0x67   : > { %1104 = vmatpush.bf16.msra.mxu2 %v2403_v26 }
  0x68   : > { %1117 = vmatpush.bf16.msra.mxu3 %v2410_v27  ;;  %v1126_v27 = vld.sshfl [vmem:[#allocation1] sm:$0xff pattern:$0x73625140] }
  0x69   : > { %1058 = vmatpush.bf16.msra.mxu0 %v2705_v18 }
  0x6a   : > { %1092 = vmatpush.bf16.msra.mxu1 %v2423_v32 }
  0x6b   : > { %1105 = vmatpush.bf16.msra.mxu2 %v2428_v33 }
  0x6c   : > { %1118 = vmatpush.bf16.msra.mxu3 %v2435_v35  ;;  %1059 = vmatmul.bf16.vlgmr.msra.gmra.mxu0 %v877_v40  ;;  %v1128_v35 = vld.sshfl [vmem:[#allocation1 + $0x10] sm:$0xff pattern:$0x73625140]  ;;  %v3078_v40 = vld [vmem:[#allocation21_spill] sm:$0xff] }
  0x6d   : > { %1132 = vmatpush.bf16.msrb.mxu0 %v2257_v3  ;;  %1093 = vmatmul.bf16.vlgmr.msra.gmra.mxu1 %v1079_v6  ;;  %1172 = vst [vmem:[#allocation1] ss:$4 sm:$0xff] %v2056_v34  ;;  %v2059_v6 = vld [vmem:[%s2349_s15 + $0xc] sm:$0x3f] }
  0x6e   : > { %1145 = vmatpush.bf16.msrb.mxu1 %v2445_v37  ;;  %1106 = vmatmul.bf16.vlgmr.msra.gmra.mxu2 %v1080_v14 }
  0x6f   : > { %1158 = vmatpush.bf16.msrb.mxu2 %v2450_v38  ;;  %1119 = vmatmul.bf16.vlgmr.msra.gmra.mxu3 %v1081_v10  ;;  %v3077_v10 = vld [vmem:[#allocation18_spill] sm:$0xff] }
  0x70   : > { %1179 = vmatpush.bf16.msrb.mxu3 %v2455_v39 }
  0x71   : > { %1133 = vmatpush.bf16.msrb.mxu0 %v2281_v7 }
  0x72   : > { %1146 = vmatpush.bf16.msrb.mxu1 %v2471_v41 }
  0x73   : > { %1159 = vmatpush.bf16.msrb.mxu2 %v2476_v42 }
  0x74   : > { %1180 = vmatpush.bf16.msrb.mxu3 %v2483_v43  ;;  %v1173_v14 = vld.sshfl [vmem:[#allocation1] sm:$0xff pattern:$0x73625140]  ;;  %v1174_v34 = vld.sshfl [vmem:[#allocation1 + $0x8] sm:$0xff pattern:$0x73625140] }
  0x75   : > { %1134 = vmatpush.bf16.msrb.mxu0 %v2307_v11 }
  0x76   : > { %1147 = vmatpush.bf16.msrb.mxu1 %v2495_v46 }
  0x77   : > { %1160 = vmatpush.bf16.msrb.mxu2 %v2500_v47 }
  0x78   : > { %1181 = vmatpush.bf16.msrb.mxu3 %v2507_v48 }
  0x79   : > { %1135 = vmatpush.bf16.msrb.mxu0 %v2332_v15 }
  0x7a   : > { %1148 = vmatpush.bf16.msrb.mxu1 %v2519_v50 }
  0x7b   : > { %1161 = vmatpush.bf16.msrb.mxu2 %v2524_v51 }
  0x7c   : > { %1182 = vmatpush.bf16.msrb.mxu3 %v2531_v52 }
  0x7d   : > { %1136 = vmatpush.bf16.msrb.mxu0 %v2361_v19 }
  0x7e   : > { %1149 = vmatpush.bf16.msrb.mxu1 %v2544_v57 }
  0x7f   : > { %1162 = vmatpush.bf16.msrb.mxu2 %v2549_v58 }
  0x80   : > { %1183 = vmatpush.bf16.msrb.mxu3 %v2556_v59 }
  0x81   : > { %1137 = vmatpush.bf16.msrb.mxu0 %v2386_v24 }
  0x82   : > { %1150 = vmatpush.bf16.msrb.mxu1 %v2568_v61 }
  0x83   : > { %1163 = vmatpush.bf16.msrb.mxu2 %v2573_v62 }
  0x84   : > { %1184 = vmatpush.bf16.msrb.mxu3 %v2580_v63  ;;  %v1175_v63 = vld.sshfl [vmem:[#allocation1 + $0x10] sm:$0xff pattern:$0x73625140] }
  0x85   : > { %1138 = vmatpush.bf16.msrb.mxu0 %v2415_v28  ;;  %1230 = vst [vmem:[#allocation1] ss:$4 sm:$0xff] %v2059_v6 }
  0x86   : > { %1151 = vmatpush.bf16.msrb.mxu1 %v2592_v29 }
  0x87   : > { %1164 = vmatpush.bf16.msrb.mxu2 %v2597_v30 }
  0x88   : > { %1185 = vmatpush.bf16.msrb.mxu3 %v2604_v31  ;;  %v3079_v31 = vld [vmem:[#allocation23_spill] sm:$0xff] }
  0x89   : > { %1139 = vmatpush.bf16.msrb.mxu0 %v3077_v10 }
  0x8a   : > { %1152 = vmatpush.bf16.msrb.mxu1 %v2616_v45 }
  0x8b   : > { %1165 = vmatpush.bf16.msrb.mxu2 %v2621_v56 }
  0x8c   : > { %1186 = vmatpush.bf16.msrb.mxu3 %v2628_v20  ;;  %1140 = vmatmul.bf16.vlgmr.msrb.gmra.mxu0 %v1126_v27  ;;  %v3080_v20 = vld [vmem:[#allocation25_spill] sm:$0xff]  ;;  %v3081_v27 = vld [vmem:[#allocation28_spill] sm:$0xff]  ;;  %v2768_v6 = vld.sshfl [vmem:[#allocation1 + $0x10] sm:$0xff pattern:$0x73625140] }
  0x8d   : > { %1192 = vmatpush.bf16.msra.mxu0 %v3078_v40  ;;  %1153 = vmatmul.bf16.vlgmr.msrb.gmra.mxu1 %v1127_v23  ;;  %v3082_v23 = vld [vmem:[#allocation30_spill] sm:$0xff] }
  0x8e   : > { %1205 = vmatpush.bf16.msra.mxu1 %v2638_v53  ;;  %1166 = vmatmul.bf16.vlgmr.msrb.gmra.mxu2 %v1128_v35  ;;  %v2058_v35 = vld [vmem:[%s2391_s10 + $0xc] sm:$0x3f] }
  0x8f   : > { %1237 = vmatpush.bf16.msra.mxu2 %v2242_v0  ;;  %1187 = vmatmul.bf16.vlgmr.msrb.gmra.mxu3 %v1173_v14  ;;  %v1231_v14 = vld.sshfl [vmem:[#allocation1] sm:$0xff pattern:$0x73625140] }
  0x90   : > { %1250 = vmatpush.bf16.msra.mxu3 %v2247_v1 }
  0x91   : > { %1193 = vmatpush.bf16.msra.mxu0 %v3079_v31 }
  0x92   : > { %1206 = vmatpush.bf16.msra.mxu1 %v2650_v36 }
  0x93   : > { %1238 = vmatpush.bf16.msra.mxu2 %v2264_v4 }
  0x94   : > { %1251 = vmatpush.bf16.msra.mxu3 %v2269_v5  ;;  %v3083_v5 = vld [vmem:[#allocation33_spill] sm:$0xff] }
  0x95   : > { %1194 = vmatpush.bf16.msra.mxu0 %v3080_v20 }
  0x96   : > { %1207 = vmatpush.bf16.msra.mxu1 %v2659_v60 }
  0x97   : > { %1239 = vmatpush.bf16.msra.mxu2 %v2288_v8 }
  0x98   : > { %1252 = vmatpush.bf16.msra.mxu3 %v2293_v9  ;;  %v1232_v9 = vld.sshfl [vmem:[#allocation1 + $0x8] sm:$0xff pattern:$0x73625140] }
  0x99   : > { %1195 = vmatpush.bf16.msra.mxu0 %v3081_v27  ;;  %1277 = vst [vmem:[#allocation1] ss:$4 sm:$0xff] %v2058_v35  ;;  %v3086_v35 = vld [vmem:[#allocation5_spill] sm:$0xff] }
  0x9a   : > { %1208 = vmatpush.bf16.msra.mxu1 %v2668_v44 }
  0x9b   : > { %1240 = vmatpush.bf16.msra.mxu2 %v2314_v12 }
  0x9c   : > { %1253 = vmatpush.bf16.msra.mxu3 %v2319_v13  ;;  %v3084_v13 = vld [vmem:[#allocation36_spill] sm:$0xff] }
  0x9d   : > { %1196 = vmatpush.bf16.msra.mxu0 %v3082_v23 }
  0x9e   : > { %1209 = vmatpush.bf16.msra.mxu1 %v2677_v49 }
  0x9f   : > { %1241 = vmatpush.bf16.msra.mxu2 %v2339_v16 }
  0xa0   : > { %1254 = vmatpush.bf16.msra.mxu3 %v2344_v17  ;;  %v3085_v17 = vld [vmem:[#allocation39_spill] sm:$0xff] }
  0xa1   : > { %1197 = vmatpush.bf16.msra.mxu0 %v3083_v5 }
  0xa2   : > { %1210 = vmatpush.bf16.msra.mxu1 %v2686_v54 }
  0xa3   : > { %1242 = vmatpush.bf16.msra.mxu2 %v2369_v21 }
  0xa4   : > { %1255 = vmatpush.bf16.msra.mxu3 %v2374_v22 }
  0xa5   : > { %1198 = vmatpush.bf16.msra.mxu0 %v3084_v13 }
  0xa6   : > { %1211 = vmatpush.bf16.msra.mxu1 %v2695_v55 }
  0xa7   : > { %1243 = vmatpush.bf16.msra.mxu2 %v2398_v25 }
  0xa8   : > { %1256 = vmatpush.bf16.msra.mxu3 %v2403_v26  ;;  %v2060_v26 = vld [vmem:[%s2391_s10 + $0x12] sm:$0x3f] }
  0xa9   : > { %1199 = vmatpush.bf16.msra.mxu0 %v3085_v17  ;;  %v2791_v22 = vpop.f32.mrf.mxu0 }
  0xaa   : > { %1212 = vmatpush.bf16.msra.mxu1 %v2705_v18 }
  0xab   : > { %1244 = vmatpush.bf16.msra.mxu2 %v2423_v32 }
  0xac   : > { %1257 = vmatpush.bf16.msra.mxu3 %v2428_v33  ;;  %1200 = vmatmul.bf16.vlgmr.msra.gmra.mxu0 %v1174_v34  ;;  %v1279_v33 = vld.sshfl [vmem:[#allocation1 + $0x8] sm:$0xff pattern:$0x73625140] }
  0xad   : > { %1263 = vmatpush.bf16.msrb.mxu0 %v2252_v2  ;;  %1213 = vmatmul.bf16.vlgmr.msra.gmra.mxu1 %v1175_v63  ;;  %v3087_v2 = vld [vmem:[#allocation7_spill] sm:$0xff]  ;;  %v2795_v63 = vpop.f32.mrf.mxu1 }
  0xae   : > { %1284 = vmatpush.bf16.msrb.mxu1 %v2257_v3  ;;  %1245 = vmatmul.bf16.vlgmr.msra.gmra.mxu2 %v1231_v14  ;;  %v1280_v3 = vld.sshfl [vmem:[#allocation1 + $0x10] sm:$0xff pattern:$0x73625140] }
  0xaf   : > { %1297 = vmatpush.bf16.msrb.mxu2 %v2445_v37  ;;  %1258 = vmatmul.bf16.vlgmr.msra.gmra.mxu3 %v1232_v9  ;;  %v1278_v37 = vld.sshfl [vmem:[#allocation1] sm:$0xff pattern:$0x73625140] }
  0xb0   : > { %1310 = vmatpush.bf16.msrb.mxu3 %v2450_v38  ;;  %1324 = vst [vmem:[#allocation1] ss:$4 sm:$0xff] %v2060_v26  ;;  %v3088_v9 = vld [vmem:[#allocation9_spill] sm:$0xff]  ;;  %v3089_v38 = vld [vmem:[#allocation11_spill] sm:$0xff] }
  0xb1   : > { %1264 = vmatpush.bf16.msrb.mxu0 %v3086_v35  ;;  %v2803_v34 = vpop.f32.mrf.mxu2 }
  0xb2   : > { %1285 = vmatpush.bf16.msrb.mxu1 %v2281_v7  ;;  %v2805_v14 = vpop.f32.mrf.mxu3 }
  0xb3   : > { %1298 = vmatpush.bf16.msrb.mxu2 %v2471_v41 }
  0xb4   : > { %1311 = vmatpush.bf16.msrb.mxu3 %v2476_v42  ;;  %v654_v42 = vpop.f32.mrf.mxu0 }
  0xb5   : > { %1265 = vmatpush.bf16.msrb.mxu0 %v3087_v2  ;;  %v667_v26 = vpop.f32.mrf.mxu1 }
  0xb6   : > { %1286 = vmatpush.bf16.msrb.mxu1 %v2307_v11  ;;  %v3092_v26 = vld [vmem:[#allocation17_spill] sm:$0xff] }
  0xb7   : > { %1299 = vmatpush.bf16.msrb.mxu2 %v2495_v46 }
  0xb8   : > { %1312 = vmatpush.bf16.msrb.mxu3 %v2500_v47  ;;  %v3090_v47 = vld [vmem:[#allocation13_spill] sm:$0xff] }
  0xb9   : > { %1266 = vmatpush.bf16.msrb.mxu0 %v3088_v9 }
  0xba   : > { %1287 = vmatpush.bf16.msrb.mxu1 %v2332_v15  ;;  %v845_v42 = vpop.f32.mrf.mxu3 }
  0xbb   : > { %1300 = vmatpush.bf16.msrb.mxu2 %v2519_v50  ;;  %v3091_v50 = vld [vmem:[#allocation15_spill] sm:$0xff] }
  0xbc   : > { %1313 = vmatpush.bf16.msrb.mxu3 %v2524_v51  ;;  %v680_v51 = vpop.f32.mrf.mxu2  ;;  %v1327_v42 = vld.sshfl [vmem:[#allocation1 + $0x10] sm:$0xff pattern:$0x73625140] }
  0xbd   : > { %1267 = vmatpush.bf16.msrb.mxu0 %v3089_v38  ;;  %v2063_v51 = vld [vmem:[%s2349_s15 + $0x12] sm:$0x3f] }
  0xbe   : > { %1288 = vmatpush.bf16.msrb.mxu1 %v2361_v19 }
  0xbf   : > { %1301 = vmatpush.bf16.msrb.mxu2 %v2544_v57 }
  0xc0   : > { %1314 = vmatpush.bf16.msrb.mxu3 %v2549_v58 }
  0xc1   : > { %1268 = vmatpush.bf16.msrb.mxu0 %v3090_v47 }
  0xc2   : > { %1289 = vmatpush.bf16.msrb.mxu1 %v2386_v24 }
  0xc3   : > { %1302 = vmatpush.bf16.msrb.mxu2 %v2568_v61 }
  0xc4   : > { %1315 = vmatpush.bf16.msrb.mxu3 %v2573_v62  ;;  %v1326_v62 = vld.sshfl [vmem:[#allocation1 + $0x8] sm:$0xff pattern:$0x73625140] }
  0xc5   : > { %1269 = vmatpush.bf16.msrb.mxu0 %v3091_v50 }
  0xc6   : > { %1290 = vmatpush.bf16.msrb.mxu1 %v2415_v28 }
  0xc7   : > { %1303 = vmatpush.bf16.msrb.mxu2 %v2592_v29 }
  0xc8   : > { %1316 = vmatpush.bf16.msrb.mxu3 %v2597_v30  ;;  %v1325_v30 = vld.sshfl [vmem:[#allocation1] sm:$0xff pattern:$0x73625140] }
  0xc9   : > { %1270 = vmatpush.bf16.msrb.mxu0 %v3092_v26  ;;  %1381 = vst [vmem:[#allocation1] ss:$4 sm:$0xff] %v2063_v51 }
  0xca   : > { %1291 = vmatpush.bf16.msrb.mxu1 %v3077_v10 }
  0xcb   : > { %1304 = vmatpush.bf16.msrb.mxu2 %v2616_v45 }
  0xcc   : > { %1317 = vmatpush.bf16.msrb.mxu3 %v2621_v56  ;;  %1271 = vmatmul.bf16.vlgmr.msrb.gmra.mxu0 %v2768_v6  ;;  %v856_v56 = vpop.f32.mrf.mxu0 }
  0xcd   : > { %1331 = vmatpush.bf16.msra.mxu0 %v2455_v39  ;;  %1292 = vmatmul.bf16.vlgmr.msrb.gmra.mxu1 %v1278_v37 }
  0xce   : > { %1344 = vmatpush.bf16.msra.mxu1 %v3078_v40  ;;  %1305 = vmatmul.bf16.vlgmr.msrb.gmra.mxu2 %v1279_v33  ;;  %v2062_v33 = vld [vmem:[%s2391_s10 + $0x12] sm:$0x3f] }
  0xcf   : > { %1357 = vmatpush.bf16.msra.mxu2 %v2638_v53  ;;  %1318 = vmatmul.bf16.vlgmr.msrb.gmra.mxu3 %v1280_v3 }
  0xd0   : > { %1388 = vmatpush.bf16.msra.mxu3 %v2242_v0  ;;  %v869_v0 = vpop.f32.mrf.mxu1  ;;  %v2844_v51 = vld.sshfl [vmem:[#allocation1 + $0x8] sm:$0xff pattern:$0x73625140]  ;;  %v2848_v58 = vld.sshfl [vmem:[#allocation1 + $0x10] sm:$0xff pattern:$0x73625140] }
  0xd1   : > { %1332 = vmatpush.bf16.msra.mxu0 %v2483_v43  ;;  %v1034_v3 = vpop.f32.mrf.mxu2 }
  0xd2   : > { %1345 = vmatpush.bf16.msra.mxu1 %v3079_v31 }
  0xd3   : > { %1358 = vmatpush.bf16.msra.mxu2 %v2650_v36 }
  0xd4   : > { %1389 = vmatpush.bf16.msra.mxu3 %v2264_v4  ;;  %v1047_v4 = vpop.f32.mrf.mxu3  ;;  %v858_v37 = vpop.f32.mrf.mxu0 }
  0xd5   : > { %1333 = vmatpush.bf16.msra.mxu0 %v2507_v48  ;;  %v666_v37 = vadd.f32 %v2795_v63, %v2791_v22  ;;  %v3096_v22 = vld [vmem:[#allocation2_spill] sm:$0xff]  ;;  %v3098_v63 = vld [vmem:[#allocation19_spill] sm:$0xff] }
  0xd6   : > { %1346 = vmatpush.bf16.msra.mxu1 %v3080_v20 }
  0xd7   : > { %1359 = vmatpush.bf16.msra.mxu2 %v2659_v60 }
  0xd8   : > { %1390 = vmatpush.bf16.msra.mxu3 %v2288_v8  ;;  %v871_v6 = vpop.f32.mrf.mxu1  ;;  %v1382_v8 = vld.sshfl [vmem:[#allocation1] sm:$0xff pattern:$0x73625140] }
  0xd9   : > { %1334 = vmatpush.bf16.msra.mxu0 %v2531_v52  ;;  %1428 = vst [vmem:[#allocation1] ss:$4 sm:$0xff] %v2062_v33  ;;  %v1036_v6 = vpop.f32.mrf.mxu2  ;;  %v3095_v33 = vld [vmem:[#allocation38_spill] sm:$0xff] }
  0xda   : > { %1347 = vmatpush.bf16.msra.mxu1 %v3081_v27 }
  0xdb   : > { %1360 = vmatpush.bf16.msra.mxu2 %v2668_v44 }
  0xdc   : > { %1391 = vmatpush.bf16.msra.mxu3 %v2314_v12  ;;  %v3093_v12 = vld [vmem:[#allocation32_spill] sm:$0xff] }
  0xdd   : > { %1335 = vmatpush.bf16.msra.mxu0 %v2556_v59 }
  0xde   : > { %1348 = vmatpush.bf16.msra.mxu1 %v3082_v23  ;;  %v1049_v23 = vpop.f32.mrf.mxu3 }
  0xdf   : > { %1361 = vmatpush.bf16.msra.mxu2 %v2677_v49  ;;  %v3094_v49 = vld [vmem:[#allocation35_spill] sm:$0xff] }
  0xe0   : > { %1392 = vmatpush.bf16.msra.mxu3 %v2339_v16  ;;  %v679_v16 = vadd.f32 %v2803_v34, %v666_v37  ;;  %v3097_v23 = vld [vmem:[#allocation3_spill] sm:$0xff]  ;;  %v3099_v34 = vld [vmem:[#allocation4_spill] sm:$0xff]  ;;  %v3100_v37 = vld [vmem:[#allocation6_spill] sm:$0xff] }
  0xe1   : > { %1336 = vmatpush.bf16.msra.mxu0 %v3093_v12  ;;  %v1429_v6 = vld.sshfl [vmem:[#allocation1] sm:$0xff pattern:$0x73625140] }
  0xe2   : > { %1349 = vmatpush.bf16.msra.mxu1 %v3083_v5 }
  0xe3   : > { %1362 = vmatpush.bf16.msra.mxu2 %v2686_v54 }
  0xe4   : > { %1393 = vmatpush.bf16.msra.mxu3 %v2369_v21  ;;  %v844_v21 = vadd.f32 %v2805_v14, %v679_v16  ;;  %v1430_v16 = vld.sshfl [vmem:[#allocation1 + $0x8] sm:$0xff pattern:$0x73625140] }
  0xe5   : > { %1337 = vmatpush.bf16.msra.mxu0 %v3094_v49 }
  0xe6   : > { %1350 = vmatpush.bf16.msra.mxu1 %v3084_v13 }
  0xe7   : > { %1363 = vmatpush.bf16.msra.mxu2 %v2695_v55 }
  0xe8   : > { %1394 = vmatpush.bf16.msra.mxu3 %v2398_v25  ;;  %v857_v25 = vadd.f32 %v856_v56, %v844_v21 }
  0xe9   : > { %1338 = vmatpush.bf16.msra.mxu0 %v3095_v33 }
  0xea   : > { %1351 = vmatpush.bf16.msra.mxu1 %v3085_v17  ;;  %v870_v14 = vadd.f32 %v869_v0, %v857_v25  ;;  %v2881_v56 = vpop.f32.mrf.mxu1 }
  0xeb   : > { %1364 = vmatpush.bf16.msra.mxu2 %v2705_v18 }
  0xec   : > { %1395 = vmatpush.bf16.msra.mxu3 %v2423_v32  ;;  %1339 = vmatmul.bf16.vlgmr.msra.gmra.mxu0 %v1325_v30  ;;  %v1048_v32 = vadd.f32 %v1047_v4, %v1034_v3  ;;  %v2879_v30 = vld [vmem:[%s2977_s4] ss:$0 sm:$0xff] }
  0xed   : > { %1401 = vmatpush.bf16.msrb.mxu0 %v2247_v1  ;;  %1352 = vmatmul.bf16.vlgmr.msra.gmra.mxu1 %v1326_v62  ;;  %v1060_v1 = vpop.f32.mrf.mxu0  ;;  %v1379_v4 = vld [vmem:[%s329_s22] sm:$0x3f] }
  0xee   : > { %1414 = vmatpush.bf16.msrb.mxu1 %v3096_v22  ;;  %1365 = vmatmul.bf16.vlgmr.msra.gmra.mxu2 %v1327_v42  ;;  %v1061_v62 = vadd.f32 %v1060_v1, %v1048_v32  ;;  %v1431_v22 = vld.sshfl [vmem:[#allocation1 + $0x10] sm:$0xff pattern:$0x73625140] }
  0xef   : > { %1435 = vmatpush.bf16.msrb.mxu2 %v3097_v23  ;;  %1396 = vmatmul.bf16.vlgmr.msra.gmra.mxu3 %v1382_v8  ;;  %v3104_v8 = vld [vmem:[#allocation12_spill] sm:$0xff]  ;;  %1475 = vst [vmem:[#allocation1] ss:$4 sm:$0xff] %v1379_v4  ;;  %v3105_v23 = vld [vmem:[#allocation14_spill] sm:$0xff] }
  0xf0   : > { %1448 = vmatpush.bf16.msrb.mxu3 %v3098_v63 }
  0xf1   : > { %1402 = vmatpush.bf16.msrb.mxu0 %v3099_v34  ;;  %v2892_v42 = vpop.f32.mrf.mxu2 }
  0xf2   : > { %1415 = vmatpush.bf16.msrb.mxu1 %v3086_v35  ;;  %v3101_v35 = vld [vmem:[#allocation8_spill] sm:$0xff]  ;;  %v2894_v3 = vpop.f32.mrf.mxu3 }
  0xf3   : > { %1436 = vmatpush.bf16.msrb.mxu2 %v2281_v7  ;;  %v1064_v7 = vadd.f32 %v1061_v62, %v870_v14 }
  0xf4   : > { %1449 = vmatpush.bf16.msrb.mxu3 %v2471_v41 }
  0xf5   : > { %1403 = vmatpush.bf16.msrb.mxu0 %v3100_v37  ;;  %v1068_v41 = vadd.f32 %v2879_v30, %v1064_v7 }
  0xf6   : > { %1416 = vmatpush.bf16.msrb.mxu1 %v3087_v2  ;;  %v3102_v2 = vld [vmem:[#allocation26_spill] sm:$0xff] }
  0xf7   : > { %1437 = vmatpush.bf16.msrb.mxu2 %v2307_v11  ;;  %v1069_v0 = vmax.f32 %v1068_v41, 0.0  ;;  %v1062_v11 = vpop.f32.mrf.mxu0 }
  0xf8   : > { %1450 = vmatpush.bf16.msrb.mxu3 %v2495_v46 }
  0xf9   : > { %1404 = vmatpush.bf16.msrb.mxu0 %v3101_v35  ;;  %v1070_v46 = vpack.c.bf16 %v1069_v0, %v1069_v0  ;;  %v1109_v21 = vpop.f32.mrf.mxu2 }
  0xfa   : > { %1417 = vmatpush.bf16.msrb.mxu1 %v3088_v9  ;;  %v1096_v9 = vpop.f32.mrf.mxu1 }
  0xfb   : > { %1438 = vmatpush.bf16.msrb.mxu2 %v2332_v15  ;;  %v3103_v15 = vld [vmem:[#allocation10_spill] sm:$0xff]  ;;  %1071 = vst [vmem:[%s2899_s16] sm:$0x3] %v1070_v46 }
  0xfc   : > { %1451 = vmatpush.bf16.msrb.mxu3 %v3102_v2 }
  0xfd   : > { %1405 = vmatpush.bf16.msrb.mxu0 %v3103_v15 }
  0xfe   : > { %1418 = vmatpush.bf16.msrb.mxu1 %v3089_v38  ;;  %v1122_v38 = vpop.f32.mrf.mxu3 }
  0xff   : > { %1439 = vmatpush.bf16.msrb.mxu2 %v2361_v19  ;;  %v3106_v19 = vld [vmem:[#allocation16_spill] sm:$0xff] }
 0x100   : > { %1452 = vmatpush.bf16.msrb.mxu3 %v2544_v57 }
 0x101   : > { %1406 = vmatpush.bf16.msrb.mxu0 %v3104_v8 }
 0x102   : > { %1419 = vmatpush.bf16.msrb.mxu1 %v3090_v47 }
 0x103   : > { %1440 = vmatpush.bf16.msrb.mxu2 %v2386_v24  ;;  %v3107_v24 = vld [vmem:[#allocation20_spill] sm:$0xff] }
 0x104   : > { %1453 = vmatpush.bf16.msrb.mxu3 %v2568_v61  ;;  %v3112_v61 = vld [vmem:[#allocation30_spill] sm:$0xff] }
 0x105   : > { %1407 = vmatpush.bf16.msrb.mxu0 %v3105_v23 }
 0x106   : > { %1420 = vmatpush.bf16.msrb.mxu1 %v3091_v50 }
 0x107   : > { %1441 = vmatpush.bf16.msrb.mxu2 %v2415_v28  ;;  %v3108_v28 = vld [vmem:[#allocation22_spill] sm:$0xff] }
 0x108   : > { %1454 = vmatpush.bf16.msrb.mxu3 %v2592_v29 }
 0x109   : > { %1408 = vmatpush.bf16.msrb.mxu0 %v3106_v19  ;;  %v1141_v47 = vpop.f32.mrf.mxu0 }
 0x10a   : > { %1421 = vmatpush.bf16.msrb.mxu1 %v3092_v26  ;;  %v1154_v50 = vpop.f32.mrf.mxu1 }
 0x10b   : > { %1442 = vmatpush.bf16.msrb.mxu2 %v3077_v10  ;;  %v1478_v10 = vld.sshfl [vmem:[#allocation1 + $0x10] sm:$0xff pattern:$0x73625140] }
 0x10c   : > { %1455 = vmatpush.bf16.msrb.mxu3 %v2616_v45  ;;  %1409 = vmatmul.bf16.vlgmr.msrb.gmra.mxu0 %v2844_v51  ;;  %v3115_v45 = vld [vmem:[#allocation34_spill] sm:$0xff] }
 0x10d   : > { %1461 = vmatpush.bf16.msra.mxu0 %v3107_v24  ;;  %1422 = vmatmul.bf16.vlgmr.msrb.gmra.mxu1 %v2848_v58  ;;  %v3111_v58 = vld [vmem:[#allocation29_spill] sm:$0xff] }
 0x10e   : > { %1482 = vmatpush.bf16.msra.mxu1 %v2455_v39  ;;  %1443 = vmatmul.bf16.vlgmr.msrb.gmra.mxu2 %v1429_v6  ;;  %v3109_v39 = vld [vmem:[#allocation24_spill] sm:$0xff] }
 0x10f   : > { %1495 = vmatpush.bf16.msra.mxu2 %v3078_v40  ;;  %1456 = vmatmul.bf16.vlgmr.msrb.gmra.mxu3 %v1430_v16 }
 0x110   : > { %1508 = vmatpush.bf16.msra.mxu3 %v2638_v53  ;;  %v3110_v53 = vld [vmem:[#allocation27_spill] sm:$0xff] }
 0x111   : > { %1462 = vmatpush.bf16.msra.mxu0 %v3108_v28  ;;  %v1143_v57 = vpop.f32.mrf.mxu0 }
 0x112   : > { %1483 = vmatpush.bf16.msra.mxu1 %v2483_v43  ;;  %v1167_v43 = vpop.f32.mrf.mxu2 }
 0x113   : > { %1496 = vmatpush.bf16.msra.mxu2 %v3079_v31  ;;  %v1108_v31 = vadd.f32 %v2892_v42, %v2881_v56 }
 0x114   : > { %1509 = vmatpush.bf16.msra.mxu3 %v2650_v36  ;;  %v1188_v36 = vpop.f32.mrf.mxu3 }
 0x115   : > { %1463 = vmatpush.bf16.msra.mxu0 %v3109_v39 }
 0x116   : > { %1484 = vmatpush.bf16.msra.mxu1 %v2507_v48  ;;  %v1156_v48 = vpop.f32.mrf.mxu1 }
 0x117   : > { %1497 = vmatpush.bf16.msra.mxu2 %v3080_v20  ;;  %v3113_v20 = vld [vmem:[#allocation40_spill] sm:$0xff] }
 0x118   : > { %1510 = vmatpush.bf16.msra.mxu3 %v2659_v60  ;;  %v3114_v60 = vld [vmem:[#allocation31_spill] sm:$0xff] }
 0x119   : > { %1464 = vmatpush.bf16.msra.mxu0 %v3110_v53 }
 0x11a   : > { %1485 = vmatpush.bf16.msra.mxu1 %v2531_v52  ;;  %v1169_v52 = vpop.f32.mrf.mxu2 }
 0x11b   : > { %1498 = vmatpush.bf16.msra.mxu2 %v3081_v27 }
 0x11c   : > { %1511 = vmatpush.bf16.msra.mxu3 %v2668_v44  ;;  %v1190_v29 = vpop.f32.mrf.mxu3  ;;  %v3116_v44 = vld [vmem:[#allocation37_spill] sm:$0xff] }
 0x11d   : > { %1465 = vmatpush.bf16.msra.mxu0 %v3111_v58 }
 0x11e   : > { %1486 = vmatpush.bf16.msra.mxu1 %v2556_v59  ;;  %v1121_v59 = vadd.f32 %v2894_v3, %v1108_v31 }
 0x11f   : > { %1499 = vmatpush.bf16.msra.mxu2 %v3112_v61 }
 0x120   : > { %1512 = vmatpush.bf16.msra.mxu3 %v3113_v20 }
 0x121   : > { %1466 = vmatpush.bf16.msra.mxu0 %v3114_v60 }
 0x122   : > { %1487 = vmatpush.bf16.msra.mxu1 %v3093_v12 }
 0x123   : > { %1500 = vmatpush.bf16.msra.mxu2 %v3083_v5  ;;  %v1476_v5 = vld.sshfl [vmem:[#allocation1] sm:$0xff pattern:$0x73625140] }
 0x124   : > { %1513 = vmatpush.bf16.msra.mxu3 %v2686_v54  ;;  %v1477_v54 = vld.sshfl [vmem:[#allocation1 + $0x8] sm:$0xff pattern:$0x73625140] }
 0x125   : > { %1467 = vmatpush.bf16.msra.mxu0 %v3115_v45 }
 0x126   : > { %1488 = vmatpush.bf16.msra.mxu1 %v3094_v49  ;;  %v1142_v49 = vadd.f32 %v1141_v47, %v1121_v59 }
 0x127   : > { %1501 = vmatpush.bf16.msra.mxu2 %v3084_v13 }
 0x128   : > { %1514 = vmatpush.bf16.msra.mxu3 %v2695_v55  ;;  %v1155_v13 = vadd.f32 %v1154_v50, %v1142_v49 }
 0x129   : > { %1468 = vmatpush.bf16.msra.mxu0 %v3116_v44  ;;  %v1201_v55 = vpop.f32.mrf.mxu0 }
 0x12a   : > { %1489 = vmatpush.bf16.msra.mxu1 %v3095_v33  ;;  %v1214_v40 = vpop.f32.mrf.mxu1  ;;  %v1202_v27 = vadd.f32 %v1201_v55, %v1188_v36  ;;  %v1168_v26 = vadd.f32 %v1167_v43, %v1155_v13 }
 0x12b   : > { %1502 = vmatpush.bf16.msra.mxu2 %v3085_v17 }
 0x12c   : > { %1515 = vmatpush.bf16.msra.mxu3 %v2705_v18  ;;  %1469 = vmatmul.bf16.vlgmr.msra.gmra.mxu0 %v1431_v22  ;;  %v1215_v51 = vadd.f32 %v1214_v40, %v1202_v27 }
 0x12d   : > { %1490 = vmatmul.bf16.vlgmr.msra.gmra.mxu1 %v1476_v5 }
 0x12e   : > { %1503 = vmatmul.bf16.vlgmr.msra.gmra.mxu2 %v1477_v54  ;;  %v1218_v12 = vadd.f32 %v1215_v51, %v1168_v26 }
 0x12f   : > { %1516 = vmatmul.bf16.vlgmr.msra.gmra.mxu3 %v1478_v10 }
 0x130   : > { %v1219_v33 = vadd.f32 %v2879_v30, %v1218_v12 }
 0x131   : > { %v1246_v17 = vpop.f32.mrf.mxu2  ;;  %v1203_v18 = vpop.f32.mrf.mxu0 }
 0x132   : > { %v1259_v63 = vpop.f32.mrf.mxu3  ;;  %v1216_v25 = vpop.f32.mrf.mxu1  ;;  %v1220_v34 = vmax.f32 %v1219_v33, 0.0 }
 0x133   : > { %v1260_v0 = vadd.f32 %v1259_v63, %v1246_v17 }
 0x134   : > { %v1221_v32 = vpack.c.bf16 %v1220_v34, %v1220_v34 }
 0x136   : > { %2057 = vst [vmem:[%s2899_s16 + $0x2] sm:$0x3] %v1221_v32 }
 0x139   : > { %v1248_v1 = vpop.f32.mrf.mxu2 }
 0x13a   : > { %v1261_v14 = vpop.f32.mrf.mxu3 }
 0x149   : > { %v1272_v37 = vpop.f32.mrf.mxu0 }
 0x14a   : > { %v1293_v62 = vpop.f32.mrf.mxu1  ;;  %v1273_v3 = vadd.f32 %v1272_v37, %v1260_v0 }
 0x14c   : > { %v1294_v11 = vadd.f32 %v1293_v62, %v1273_v3 }
 0x151   : > { %v1306_v56 = vpop.f32.mrf.mxu2  ;;  %v1274_v41 = vpop.f32.mrf.mxu0 }
 0x152   : > { %v1319_v7 = vpop.f32.mrf.mxu3  ;;  %v1295_v35 = vpop.f32.mrf.mxu1  ;;  %v1307_v9 = vadd.f32 %v1306_v56, %v1294_v11 }
 0x154   : > { %v1320_v6 = vadd.f32 %v1319_v7, %v1307_v9 }
 0x159   : > { %v1308_v2 = vpop.f32.mrf.mxu2 }
 0x15a   : > { %v1321_v42 = vpop.f32.mrf.mxu3 }
 0x169   : > { %v1340_v46 = vpop.f32.mrf.mxu0 }
 0x16a   : > { %v1353_v15 = vpop.f32.mrf.mxu1 }
 0x16b   : > { %v1354_v4 = vadd.f32 %v1353_v15, %v1340_v46 }
 0x171   : > { %v1366_v8 = vpop.f32.mrf.mxu2  ;;  %v1342_v22 = vpop.f32.mrf.mxu0 }
 0x172   : > { %v1367_v16 = vadd.f32 %v1366_v8, %v1354_v4  ;;  %v1397_v21 = vpop.f32.mrf.mxu3  ;;  %v1355_v23 = vpop.f32.mrf.mxu1 }
 0x174   : > { %v1370_v38 = vadd.f32 %v1367_v16, %v1320_v6 }
 0x176   : > { %v1371_v19 = vadd.f32 %v2879_v30, %v1370_v38 }
 0x178   : > { %v1372_v24 = vmax.f32 %v1371_v19, 0.0 }
 0x179   : > { %v1368_v28 = vpop.f32.mrf.mxu2 }
 0x17a   : > { %v1373_v47 = vpack.c.bf16 %v1372_v24, %v1372_v24  ;;  %v1399_v39 = vpop.f32.mrf.mxu3 }
 0x17c   : > { %2061 = vst [vmem:[%s2899_s16 + $0x4] sm:$0x3] %v1373_v47 }
 0x189   : > { %v1410_v50 = vpop.f32.mrf.mxu0 }
 0x18a   : > { %v1423_v53 = vpop.f32.mrf.mxu1  ;;  %v1411_v20 = vadd.f32 %v1410_v50, %v1397_v21 }
 0x18c   : > { %v1424_v60 = vadd.f32 %v1423_v53, %v1411_v20 }
 0x191   : > { %v1444_v43 = vpop.f32.mrf.mxu2  ;;  %v1412_v57 = vpop.f32.mrf.mxu0 }
 0x192   : > { %v1457_v36 = vpop.f32.mrf.mxu3  ;;  %v1425_v58 = vpop.f32.mrf.mxu1  ;;  %v1445_v31 = vadd.f32 %v1444_v43, %v1424_v60 }
 0x194   : > { %v1458_v44 = vadd.f32 %v1457_v36, %v1445_v31 }
 0x199   : > { %v1446_v48 = vpop.f32.mrf.mxu2 }
 0x19a   : > { %v1459_v61 = vpop.f32.mrf.mxu3 }
 0x1a9   : > { %v1470_v52 = vpop.f32.mrf.mxu0 }
 0x1aa   : > { %v1491_v29 = vpop.f32.mrf.mxu1  ;;  %v1471_v49 = vadd.f32 %v1470_v52, %v1458_v44 }
 0x1b1   : > { %v1504_v45 = vpop.f32.mrf.mxu2  ;;  %v1472_v54 = vpop.f32.mrf.mxu0 }
 0x1b2   : > { %v1517_v59 = vpop.f32.mrf.mxu3  ;;  %v1505_v5 = vadd.f32 %v1504_v45, %v1491_v29  ;;  %v1493_v10 = vpop.f32.mrf.mxu1 }
 0x1b4   : > { %v1518_v13 = vadd.f32 %v1517_v59, %v1505_v5 }
 0x1b6   : > { %v1521_v55 = vadd.f32 %v1518_v13, %v1471_v49 }
 0x1b8   : > { %v1522_v40 = vadd.f32 %v2879_v30, %v1521_v55 }
 0x1b9   : > { %v1506_v27 = vpop.f32.mrf.mxu2 }
 0x1ba   : > { %v1519_v26 = vpop.f32.mrf.mxu3  ;;  %v1523_v51 = vmax.f32 %v1522_v40, 0.0 }
 0x1bc   : > { %v1524_v12 = vpack.c.bf16 %v1523_v51, %v1523_v51 }
 0x1be   : > { %2064 = vst [vmem:[%s2899_s16 + $0x6] sm:$0x3] %v1524_v12 }
 0x1bf PF: > { %s15_s20 = sadd.s32 1, %s2189_s20   ;;  %s3117_s18 = smov %s2185_s19 }
 0x1c0   : > { %p12_p5 = scmp.ge.s32.totalorder %s15_s20, 4   ;;  %s3118_s19 = smov %s3120_s21 }
 0x1c2   :  { %14 = sbr.rel (!%p12_p5) target bundleno = 2 (0x2), region = 87 }

// kernel: spatial_path_forward.5
= control target key start
LH: loop header
LB: loop body
LE: loop exit
PB: predicated region body
PF: predicated region fallthrough
CT: control target
= control target key end

     0   :  { %s1886_s18 = smov 0   ;;  %s1888_s19 = smov 0   ;;  %s2456_s0 = inlined_call_operand.vmem [shape: bf16[2,2,2,384], index: 0, kind: input, shape index: {}]   ;;  %s2457_s1 = inlined_call_operand.vmem [shape: bf16[2,2,2,384], index: 1, kind: input, shape index: {}]   ;;  %s2458_s2 = inlined_call_operand.vmem [shape: bf16[2,1,2,384], index: 2, kind: input, shape index: {}]   ;;  %s2459_s3 = inlined_call_operand.vmem [shape: bf16[3,384,128], index: 3, kind: input, shape index: {}]   ;;  %s2460_s4 = inlined_call_operand.vmem [shape: f32[1,128], index: 4, kind: input, shape index: {}]   ;;  %s2461_s5 = inlined_call_operand.vmem [shape: f32[2,2,2,128], index: 5, kind: output, shape index: {}]  }
   0x1   :  { %s1890_s20 = smov 0  }
   0x2 LB: > { %s27_s21 = sadd.s32 1, %s1850_s19  ;;  %p1339_p0 = scmp.ge.s32.totalorder %s1854_s20, 1  ;;  %s1854_s20 = sphi %s1890_s20, %s15_s20   ;;  %s1850_s19 = sphi %s1888_s19, %s2484_s19   ;;  %s1846_s18 = sphi %s1886_s18, %s2483_s18  }
   0x3   : > { %p29_p1 = scmp.ge.s32.totalorder %s27_s21, 2  ;;  %p240_p2 = scmp.lt.s32.totalorder %s1854_s20, 3 }
   0x5   : > { %s2486_s21 = smov (%p29_p1, %s27_s21), 0  ;;  %p241_p3 = pnand %p1339_p0, %p240_p2 }
   0x7   : > { %244 = sbr.rel (%p241_p3) target bundleno = 309 (0x135), region = 40 }
   0xc   : > { %v1907_v0 = vld [vmem:[%s2459_s3 + $0xf8] sm:$0xff]  ;;  %p294_p4 = scmp.lt.s32.totalorder %s1846_s18, 1  ;;  %v1924_v3 = vld [vmem:[%s2459_s3 + $0xf0] sm:$0xff]  ;;  %v1949_v7 = vld [vmem:[%s2459_s3 + $0xe8] sm:$0xff] }
   0xd   : > { %v1912_v1 = vld [vmem:[%s2459_s3 + $0x138] sm:$0xff]  ;;  %634 = vmatpush.bf16.msra.mxu0 %v1907_v0  ;;  %v1929_v4 = vld [vmem:[%s2459_s3 + $0x130] sm:$0xff]  ;;  %v1954_v8 = vld [vmem:[%s2459_s3 + $0x128] sm:$0xff] }
   0xe   : > { %v1917_v2 = vld [vmem:[%s2459_s3 + $0x178] sm:$0xff]  ;;  %647 = vmatpush.bf16.msra.mxu1 %v1912_v1  ;;  %v1935_v5 = vld [vmem:[%s2459_s3 + $0x170] sm:$0xff]  ;;  %s2488_s18 = smov (!%p294_p4, %s1846_s18), 1  ;;  %v1960_v9 = vld [vmem:[%s2459_s3 + $0x168] sm:$0xff] }
   0xf   : > { %660 = vmatpush.bf16.msra.mxu2 %v1917_v2  ;;  %v1940_v6 = vld [vmem:[%s2459_s3 + $0x38] sm:$0xff]  ;;  %v1966_v10 = vld [vmem:[%s2459_s3 + $0x30] sm:$0xff]  ;;  %s1805_s23 = smul.u32 6, %s2488_s18  ;;  %v1974_v11 = vld [vmem:[%s2459_s3 + $0xe0] sm:$0xff]  ;;  %s1732_s15 = sshll.u32 %s2488_s18, 2 }
  0x10   : > { %825 = vmatpush.bf16.msra.mxu3 %v1940_v6  ;;  %v1979_v12 = vld [vmem:[%s2459_s3 + $0x120] sm:$0xff]  ;;  %v1991_v14 = vld [vmem:[%s2459_s3 + $0x28] sm:$0xff]  ;;  %v2003_v15 = vld [vmem:[%s2459_s3 + $0xd8] sm:$0xff]  ;;  %s1806_s10 = smul.u32 3, %s2488_s18  ;;  %s2443_s22 = scalar_lea.vmem %s2461_s5, %s1732_s15 }
  0x11   : > { %635 = vmatpush.bf16.msra.mxu0 %v1924_v3  ;;  %v1985_v13 = vld [vmem:[%s2459_s3 + $0x160] sm:$0xff]  ;;  %s1996_s9 = scalar_lea.vmem %s2457_s1, %s1805_s23  ;;  %v2008_v16 = vld [vmem:[%s2459_s3 + $0x118] sm:$0xff]  ;;  %v2028_v20 = vld [vmem:[%s2459_s3 + $0xd0] sm:$0xff]  ;;  %s2050_s8 = scalar_lea.vmem %s2456_s0, %s1805_s23 }
  0x12   : > { %648 = vmatpush.bf16.msra.mxu1 %v1929_v4  ;;  %v2014_v17 = vld [vmem:[%s2459_s3 + $0x158] sm:$0xff]  ;;  %v2020_v18 = vld [vmem:[%s2459_s3 + $0x20] sm:$0xff]  ;;  %v2033_v21 = vld [vmem:[%s2459_s3 + $0x110] sm:$0xff]  ;;  %s320_s14 = scalar_lea.vmem %s2458_s2, %s1806_s10 }
  0x13   : > { %661 = vmatpush.bf16.msra.mxu2 %v1935_v5  ;;  %v479_v19 = vld [vmem:[%s1996_s9] sm:$0x7]  ;;  %v2039_v22 = vld [vmem:[%s2459_s3 + $0x150] sm:$0xff]  ;;  %v2045_v23 = vld [vmem:[%s2459_s3 + $0x18] sm:$0xff] }
  0x14   : > { %826 = vmatpush.bf16.msra.mxu3 %v1966_v10  ;;  %483 = vst [vmem:[#allocation1] ss:$9 sm:$0xff] %v479_v19  ;;  %v2057_v24 = vld [vmem:[%s2459_s3 + $0xc8] sm:$0xff]  ;;  %v2074_v27 = vld [vmem:[%s2459_s3 + $0x10] sm:$0xff]  ;;  %v478_v28 = vld [vmem:[%s2050_s8] sm:$0x7] }
  0x15   : > { %636 = vmatpush.bf16.msra.mxu0 %v1949_v7  ;;  %v2062_v25 = vld [vmem:[%s2459_s3 + $0x108] sm:$0xff]  ;;  %v2082_v32 = vld [vmem:[%s2459_s3 + $0xc0] sm:$0xff]  ;;  %v2098_v35 = vld [vmem:[%s2459_s3 + $0x78] sm:$0xff] }
  0x16   : > { %649 = vmatpush.bf16.msra.mxu1 %v1954_v8  ;;  %v2068_v26 = vld [vmem:[%s2459_s3 + $0x148] sm:$0xff]  ;;  %v2087_v33 = vld [vmem:[%s2459_s3 + $0x100] sm:$0xff]  ;;  %v2104_v36 = vld [vmem:[%s2459_s3 + $0xb8] sm:$0xff] }
  0x17   : > { %662 = vmatpush.bf16.msra.mxu2 %v1960_v9  ;;  %v2093_v34 = vld [vmem:[%s2459_s3 + $0x140] sm:$0xff]  ;;  %v2109_v37 = vld [vmem:[%s2459_s3 + $0x1b8] sm:$0xff]  ;;  %v2114_v38 = vld [vmem:[%s2459_s3 + $0x8] sm:$0xff] }
  0x18   : > { %827 = vmatpush.bf16.msra.mxu3 %v1991_v14  ;;  %v2123_v39 = vld [vmem:[%s2459_s3 + $0x70] sm:$0xff]  ;;  %v1438_v42 = vld [vmem:[%s2050_s8 + $0x3] sm:$0x7]  ;;  %v2147_v44 = vld [vmem:[%s2459_s3 + $0x1f8] sm:$0xff] }
  0x19   : > { %637 = vmatpush.bf16.msra.mxu0 %v1974_v11  ;;  %v2130_v40 = vld [vmem:[%s2459_s3 + $0xb0] sm:$0xff]  ;;  %v2142_v43 = vld [vmem:[%s2459_s3] sm:$0xff]  ;;  %2469 = vst [vmem:[#allocation2_spill] sm:$0xff] %v2147_v44  ;;  %v2157_v48 = vld [vmem:[%s2459_s3 + $0x68] sm:$0xff] }
  0x1a   : > { %650 = vmatpush.bf16.msra.mxu1 %v1979_v12  ;;  %v2135_v41 = vld [vmem:[%s2459_s3 + $0x1b0] sm:$0xff]  ;;  %v2164_v49 = vld [vmem:[%s2459_s3 + $0xa8] sm:$0xff]  ;;  %v2182_v52 = vld [vmem:[%s2459_s3 + $0x60] sm:$0xff] }
  0x1b   : > { %663 = vmatpush.bf16.msra.mxu2 %v1985_v13  ;;  %v484_v29 = vld [vmem:[#allocation1] sm:$0xff]  ;;  %v485_v30 = vld [vmem:[#allocation1 + $0x9] sm:$0xff]  ;;  %v486_v31 = vld [vmem:[#allocation1 + $0x12] sm:$0xff] }
  0x1c   : > { %828 = vmatpush.bf16.msra.mxu3 %v2020_v18  ;;  %674 = vst [vmem:[#allocation1] ss:$9 sm:$0xff] %v478_v28  ;;  %v2169_v50 = vld [vmem:[%s2459_s3 + $0x1a8] sm:$0xff]  ;;  %v2176_v51 = vld [vmem:[%s2459_s3 + $0x1f0] sm:$0xff]  ;;  %v2189_v53 = vld [vmem:[%s2459_s3 + $0xa0] sm:$0xff] }
  0x1d   : > { %638 = vmatpush.bf16.msra.mxu0 %v2003_v15  ;;  %2470 = vst [vmem:[#allocation3_spill] sm:$0xff] %v2176_v51  ;;  %v2194_v54 = vld [vmem:[%s2459_s3 + $0x1a0] sm:$0xff]  ;;  %v2200_v55 = vld [vmem:[%s2459_s3 + $0x1e8] sm:$0xff]  ;;  %v2206_v56 = vld [vmem:[%s2459_s3 + $0x58] sm:$0xff] }
  0x1e   : > { %651 = vmatpush.bf16.msra.mxu1 %v2008_v16  ;;  %2471 = vst [vmem:[#allocation4_spill] sm:$0xff] %v2200_v55  ;;  %v2213_v57 = vld [vmem:[%s2459_s3 + $0x98] sm:$0xff]  ;;  %v2224_v59 = vld [vmem:[%s2459_s3 + $0x1e0] sm:$0xff]  ;;  %v2230_v60 = vld [vmem:[%s2459_s3 + $0x50] sm:$0xff] }
  0x1f   : > { %664 = vmatpush.bf16.msra.mxu2 %v2014_v17  ;;  %v2218_v58 = vld [vmem:[%s2459_s3 + $0x198] sm:$0xff]  ;;  %2472 = vst [vmem:[#allocation5_spill] sm:$0xff] %v2224_v59  ;;  %v2237_v61 = vld [vmem:[%s2459_s3 + $0x90] sm:$0xff]  ;;  %v2254_v19 = vld [vmem:[%s2459_s3 + $0x48] sm:$0xff] }
  0x20   : > { %829 = vmatpush.bf16.msra.mxu3 %v2045_v23  ;;  %v2242_v62 = vld [vmem:[%s2459_s3 + $0x190] sm:$0xff]  ;;  %v2248_v63 = vld [vmem:[%s2459_s3 + $0x1d8] sm:$0xff]  ;;  %v2261_v28 = vld [vmem:[%s2459_s3 + $0x88] sm:$0xff] }
  0x21   : > { %639 = vmatpush.bf16.msra.mxu0 %v2028_v20  ;;  %2473 = vst [vmem:[#allocation6_spill] sm:$0xff] %v2248_v63 }
  0x22   : > { %652 = vmatpush.bf16.msra.mxu1 %v2033_v21 }
  0x23   : > { %665 = vmatpush.bf16.msra.mxu2 %v2039_v22  ;;  %v675_v45 = vld [vmem:[#allocation1] sm:$0xff]  ;;  %v2149_v46 = vld [vmem:[#allocation1 + $0x9] sm:$0xff]  ;;  %v2151_v47 = vld [vmem:[#allocation1 + $0x12] sm:$0xff] }
  0x24   : > { %830 = vmatpush.bf16.msra.mxu3 %v2074_v27  ;;  %865 = vst [vmem:[#allocation1] ss:$9 sm:$0xff] %v1438_v42  ;;  %v2285_v42 = vld [vmem:[%s2459_s3 + $0x80] sm:$0xff] }
  0x25   : > { %640 = vmatpush.bf16.msra.mxu0 %v2057_v24 }
  0x26   : > { %653 = vmatpush.bf16.msra.mxu1 %v2062_v25 }
  0x27   : > { %666 = vmatpush.bf16.msra.mxu2 %v2068_v26 }
  0x28   : > { %831 = vmatpush.bf16.msra.mxu3 %v2114_v38 }
  0x29   : > { %641 = vmatpush.bf16.msra.mxu0 %v2082_v32 }
  0x2a   : > { %654 = vmatpush.bf16.msra.mxu1 %v2087_v33 }
  0x2b   : > { %667 = vmatpush.bf16.msra.mxu2 %v2093_v34 }
  0x2c   : > { %642 = vmatmul.bf16.vlgmr.msra.gmra.mxu0 %v484_v29  ;;  %832 = vmatpush.bf16.msra.mxu3 %v2142_v43  ;;  %v2266_v29 = vld [vmem:[%s2459_s3 + $0x188] sm:$0xff] }
  0x2d   : > { %838 = vmatpush.bf16.msrb.mxu0 %v2098_v35  ;;  %655 = vmatmul.bf16.vlgmr.msra.gmra.mxu1 %v485_v30  ;;  %2474 = vst [vmem:[#allocation7_spill] sm:$0xff] %v2266_v29  ;;  %v2272_v30 = vld [vmem:[%s2459_s3 + $0x1d0] sm:$0xff] }
  0x2e   : > { %851 = vmatpush.bf16.msrb.mxu1 %v2104_v36  ;;  %668 = vmatmul.bf16.vlgmr.msra.gmra.mxu2 %v486_v31  ;;  %2475 = vst [vmem:[#allocation8_spill] sm:$0xff] %v2272_v30  ;;  %v2278_v31 = vld [vmem:[%s2459_s3 + $0x40] sm:$0xff] }
  0x2f   : > { %1016 = vmatpush.bf16.msrb.mxu2 %v2109_v37  ;;  %833 = vmatmul.bf16.vlgmr.msra.gmra.mxu3 %v675_v45  ;;  %v2290_v45 = vld [vmem:[%s2459_s3 + $0x180] sm:$0xff] }
  0x30   : > { %1029 = vmatpush.bf16.msrb.mxu3 %v2147_v44  ;;  %v868_v44 = vld [vmem:[#allocation1 + $0x12] sm:$0xff] }
  0x31   : > { %839 = vmatpush.bf16.msrb.mxu0 %v2123_v39 }
  0x32   : > { %852 = vmatpush.bf16.msrb.mxu1 %v2130_v40 }
  0x33   : > { %1017 = vmatpush.bf16.msrb.mxu2 %v2135_v41 }
  0x34   : > { %1030 = vmatpush.bf16.msrb.mxu3 %v2176_v51  ;;  %v866_v51 = vld [vmem:[#allocation1] sm:$0xff] }
  0x35   : > { %840 = vmatpush.bf16.msrb.mxu0 %v2157_v48 }
  0x36   : > { %853 = vmatpush.bf16.msrb.mxu1 %v2164_v49 }
  0x37   : > { %1018 = vmatpush.bf16.msrb.mxu2 %v2169_v50 }
  0x38   : > { %1031 = vmatpush.bf16.msrb.mxu3 %v2200_v55  ;;  %v2302_v55 = vld [vmem:[%s2459_s3 + $0x1c8] sm:$0xff] }
  0x39   : > { %841 = vmatpush.bf16.msrb.mxu0 %v2182_v52 }
  0x3a   : > { %854 = vmatpush.bf16.msrb.mxu1 %v2189_v53 }
  0x3b   : > { %1019 = vmatpush.bf16.msrb.mxu2 %v2194_v54 }
  0x3c   : > { %1032 = vmatpush.bf16.msrb.mxu3 %v2224_v59  ;;  %v2296_v59 = vld [vmem:[%s2459_s3 + $0x238] sm:$0xff] }
  0x3d   : > { %842 = vmatpush.bf16.msrb.mxu0 %v2206_v56 }
  0x3e   : > { %855 = vmatpush.bf16.msrb.mxu1 %v2213_v57 }
  0x3f   : > { %1020 = vmatpush.bf16.msrb.mxu2 %v2218_v58 }
  0x40   : > { %1033 = vmatpush.bf16.msrb.mxu3 %v2248_v63  ;;  %v1728_v63 = vld [vmem:[%s1996_s9 + $0x3] sm:$0x7] }
  0x41   : > { %843 = vmatpush.bf16.msrb.mxu0 %v2230_v60 }
  0x42   : > { %856 = vmatpush.bf16.msrb.mxu1 %v2237_v61 }
  0x43   : > { %1021 = vmatpush.bf16.msrb.mxu2 %v2242_v62 }
  0x44   : > { %1034 = vmatpush.bf16.msrb.mxu3 %v2272_v30  ;;  %v2312_v30 = vld [vmem:[%s2459_s3 + $0x230] sm:$0xff] }
  0x45   : > { %844 = vmatpush.bf16.msrb.mxu0 %v2254_v19 }
  0x46   : > { %857 = vmatpush.bf16.msrb.mxu1 %v2261_v28 }
  0x47   : > { %1022 = vmatpush.bf16.msrb.mxu2 %v2266_v29  ;;  %v867_v29 = vld [vmem:[#allocation1 + $0x9] sm:$0xff] }
  0x48   : > { %1067 = vst [vmem:[#allocation1] ss:$9 sm:$0xff] %v1728_v63  ;;  %1035 = vmatpush.bf16.msrb.mxu3 %v2302_v55  ;;  %v2321_v63 = vld [vmem:[%s2459_s3 + $0x1c0] sm:$0xff] }
  0x49   : > { %845 = vmatpush.bf16.msrb.mxu0 %v2278_v31 }
  0x4a   : > { %858 = vmatpush.bf16.msrb.mxu1 %v2285_v42 }
  0x4b   : > { %1023 = vmatpush.bf16.msrb.mxu2 %v2290_v45 }
  0x4c   : > { %846 = vmatmul.bf16.vlgmr.msrb.gmra.mxu0 %v2149_v46  ;;  %1036 = vmatpush.bf16.msrb.mxu3 %v2321_v63 }
  0x4d   : > { %1042 = vmatpush.bf16.msra.mxu0 %v2296_v59  ;;  %859 = vmatmul.bf16.vlgmr.msrb.gmra.mxu1 %v2151_v47 }
  0x4e   : > { %1074 = vmatpush.bf16.msra.mxu1 %v1907_v0  ;;  %1024 = vmatmul.bf16.vlgmr.msrb.gmra.mxu2 %v866_v51  ;;  %v2328_v0 = vld [vmem:[%s2459_s3 + $0x228] sm:$0xff] }
  0x4f   : > { %1087 = vmatpush.bf16.msra.mxu2 %v1912_v1  ;;  %v2338_v1 = vld [vmem:[%s2459_s3 + $0x220] sm:$0xff]  ;;  %1037 = vmatmul.bf16.vlgmr.msrb.gmra.mxu3 %v867_v29 }
  0x50   : > { %1100 = vmatpush.bf16.msra.mxu3 %v1917_v2  ;;  %v2347_v2 = vld [vmem:[%s2459_s3 + $0x218] sm:$0xff] }
  0x51   : > { %1043 = vmatpush.bf16.msra.mxu0 %v2312_v30 }
  0x52   : > { %1075 = vmatpush.bf16.msra.mxu1 %v1924_v3  ;;  %v2356_v3 = vld [vmem:[%s2459_s3 + $0x210] sm:$0xff] }
  0x53   : > { %1088 = vmatpush.bf16.msra.mxu2 %v1929_v4  ;;  %v1727_v4 = vld [vmem:[%s2050_s8 + $0x3] sm:$0x7] }
  0x54   : > { %1101 = vmatpush.bf16.msra.mxu3 %v1935_v5  ;;  %v2366_v5 = vld [vmem:[%s2459_s3 + $0x208] sm:$0xff] }
  0x55   : > { %1044 = vmatpush.bf16.msra.mxu0 %v2328_v0 }
  0x56   : > { %1076 = vmatpush.bf16.msra.mxu1 %v1949_v7  ;;  %v1069_v7 = vld [vmem:[#allocation1 + $0x9] sm:$0xff] }
  0x57   : > { %1089 = vmatpush.bf16.msra.mxu2 %v1954_v8  ;;  %v1068_v8 = vld [vmem:[#allocation1] sm:$0xff] }
  0x58   : > { %1102 = vmatpush.bf16.msra.mxu3 %v1960_v9  ;;  %v1070_v9 = vld [vmem:[#allocation1 + $0x12] sm:$0xff] }
  0x59   : > { %1045 = vmatpush.bf16.msra.mxu0 %v2338_v1  ;;  %1114 = vst [vmem:[#allocation1] ss:$9 sm:$0xff] %v1727_v4 }
  0x5a   : > { %1077 = vmatpush.bf16.msra.mxu1 %v1974_v11  ;;  %v2376_v11 = vld [vmem:[%s2459_s3 + $0x200] sm:$0xff] }
  0x5b   : > { %1090 = vmatpush.bf16.msra.mxu2 %v1979_v12  ;;  %v1065_v12 = vld [vmem:[%s320_s14] sm:$0x7] }
  0x5c   : > { %1103 = vmatpush.bf16.msra.mxu3 %v1985_v13 }
  0x5d   : > { %1046 = vmatpush.bf16.msra.mxu0 %v2347_v2 }
  0x5e   : > { %1078 = vmatpush.bf16.msra.mxu1 %v2003_v15 }
  0x5f   : > { %1091 = vmatpush.bf16.msra.mxu2 %v2008_v16 }
  0x60   : > { %1104 = vmatpush.bf16.msra.mxu3 %v2014_v17  ;;  %v1117_v13 = vld [vmem:[#allocation1 + $0x12] sm:$0xff]  ;;  %v1115_v15 = vld [vmem:[#allocation1] sm:$0xff]  ;;  %v1116_v16 = vld [vmem:[#allocation1 + $0x9] sm:$0xff] }
  0x61   : > { %1047 = vmatpush.bf16.msra.mxu0 %v2356_v3  ;;  %1161 = vst [vmem:[#allocation1] ss:$9 sm:$0xff] %v1065_v12 }
  0x62   : > { %1079 = vmatpush.bf16.msra.mxu1 %v2028_v20  ;;  %v2480_v20 = vld [vmem:[#allocation5_spill] sm:$0xff] }
  0x63   : > { %1092 = vmatpush.bf16.msra.mxu2 %v2033_v21  ;;  %v2481_v21 = vld [vmem:[#allocation6_spill] sm:$0xff] }
  0x64   : > { %1105 = vmatpush.bf16.msra.mxu3 %v2039_v22  ;;  %v2482_v22 = vld [vmem:[#allocation8_spill] sm:$0xff] }
  0x65   : > { %1048 = vmatpush.bf16.msra.mxu0 %v2366_v5 }
  0x66   : > { %1080 = vmatpush.bf16.msra.mxu1 %v2057_v24 }
  0x67   : > { %1093 = vmatpush.bf16.msra.mxu2 %v2062_v25 }
  0x68   : > { %1106 = vmatpush.bf16.msra.mxu3 %v2068_v26  ;;  %v1162_v17 = vld [vmem:[#allocation1] sm:$0xff]  ;;  %v1164_v24 = vld [vmem:[#allocation1 + $0x12] sm:$0xff] }
  0x69   : > { %1049 = vmatpush.bf16.msra.mxu0 %v2376_v11 }
  0x6a   : > { %1081 = vmatpush.bf16.msra.mxu1 %v2082_v32 }
  0x6b   : > { %1094 = vmatpush.bf16.msra.mxu2 %v2087_v33 }
  0x6c   : > { %1050 = vmatmul.bf16.vlgmr.msra.gmra.mxu0 %v868_v44  ;;  %1107 = vmatpush.bf16.msra.mxu3 %v2093_v34 }
  0x6d   : > { %1121 = vmatpush.bf16.msrb.mxu0 %v1940_v6  ;;  %1082 = vmatmul.bf16.vlgmr.msra.gmra.mxu1 %v1068_v8  ;;  %v2476_v6 = vld [vmem:[#allocation2_spill] sm:$0xff] }
  0x6e   : > { %1134 = vmatpush.bf16.msrb.mxu1 %v2098_v35  ;;  %1095 = vmatmul.bf16.vlgmr.msra.gmra.mxu2 %v1069_v7 }
  0x6f   : > { %1147 = vmatpush.bf16.msrb.mxu2 %v2104_v36  ;;  %1108 = vmatmul.bf16.vlgmr.msra.gmra.mxu3 %v1070_v9 }
  0x70   : > { %1168 = vmatpush.bf16.msrb.mxu3 %v2109_v37 }
  0x71   : > { %1122 = vmatpush.bf16.msrb.mxu0 %v1966_v10  ;;  %v2477_v10 = vld [vmem:[#allocation7_spill] sm:$0xff] }
  0x72   : > { %1135 = vmatpush.bf16.msrb.mxu1 %v2123_v39 }
  0x73   : > { %1148 = vmatpush.bf16.msrb.mxu2 %v2130_v40 }
  0x74   : > { %1169 = vmatpush.bf16.msrb.mxu3 %v2135_v41 }
  0x75   : > { %1123 = vmatpush.bf16.msrb.mxu0 %v1991_v14  ;;  %v2478_v14 = vld [vmem:[#allocation3_spill] sm:$0xff] }
  0x76   : > { %1136 = vmatpush.bf16.msrb.mxu1 %v2157_v48 }
  0x77   : > { %1149 = vmatpush.bf16.msrb.mxu2 %v2164_v49 }
  0x78   : > { %1170 = vmatpush.bf16.msrb.mxu3 %v2169_v50 }
  0x79   : > { %1124 = vmatpush.bf16.msrb.mxu0 %v2020_v18  ;;  %v2479_v18 = vld [vmem:[#allocation4_spill] sm:$0xff] }
  0x7a   : > { %1137 = vmatpush.bf16.msrb.mxu1 %v2182_v52 }
  0x7b   : > { %1150 = vmatpush.bf16.msrb.mxu2 %v2189_v53 }
  0x7c   : > { %1171 = vmatpush.bf16.msrb.mxu3 %v2194_v54 }
  0x7d   : > { %1125 = vmatpush.bf16.msrb.mxu0 %v2045_v23  ;;  %v1163_v23 = vld [vmem:[#allocation1 + $0x9] sm:$0xff] }
  0x7e   : > { %1138 = vmatpush.bf16.msrb.mxu1 %v2206_v56 }
  0x7f   : > { %1151 = vmatpush.bf16.msrb.mxu2 %v2213_v57 }
  0x80   : > { %1172 = vmatpush.bf16.msrb.mxu3 %v2218_v58 }
  0x81   : > { %1126 = vmatpush.bf16.msrb.mxu0 %v2074_v27 }
  0x82   : > { %1139 = vmatpush.bf16.msrb.mxu1 %v2230_v60 }
  0x83   : > { %1152 = vmatpush.bf16.msrb.mxu2 %v2237_v61 }
  0x84   : > { %1173 = vmatpush.bf16.msrb.mxu3 %v2242_v62 }
  0x85   : > { %1127 = vmatpush.bf16.msrb.mxu0 %v2114_v38 }
  0x86   : > { %1140 = vmatpush.bf16.msrb.mxu1 %v2254_v19 }
  0x87   : > { %1153 = vmatpush.bf16.msrb.mxu2 %v2261_v28 }
  0x88   : > { %1174 = vmatpush.bf16.msrb.mxu3 %v2477_v10 }
  0x89   : > { %1128 = vmatpush.bf16.msrb.mxu0 %v2142_v43 }
  0x8a   : > { %1141 = vmatpush.bf16.msrb.mxu1 %v2278_v31 }
  0x8b   : > { %1154 = vmatpush.bf16.msrb.mxu2 %v2285_v42 }
  0x8c   : > { %1129 = vmatmul.bf16.vlgmr.msrb.gmra.mxu0 %v1115_v15  ;;  %1175 = vmatpush.bf16.msrb.mxu3 %v2290_v45 }
  0x8d   : > { %1181 = vmatpush.bf16.msra.mxu0 %v2476_v6  ;;  %1142 = vmatmul.bf16.vlgmr.msrb.gmra.mxu1 %v1116_v16 }
  0x8e   : > { %1194 = vmatpush.bf16.msra.mxu1 %v2296_v59  ;;  %1155 = vmatmul.bf16.vlgmr.msrb.gmra.mxu2 %v1117_v13 }
  0x8f   : > { %1176 = vmatmul.bf16.vlgmr.msrb.gmra.mxu3 %v1162_v17 }
  0x91   : > { %1182 = vmatpush.bf16.msra.mxu0 %v2478_v14 }
  0x92   : > { %1195 = vmatpush.bf16.msra.mxu1 %v2312_v30 }
  0x95   : > { %1183 = vmatpush.bf16.msra.mxu0 %v2479_v18 }
  0x96   : > { %1196 = vmatpush.bf16.msra.mxu1 %v2328_v0 }
  0x99   : > { %1184 = vmatpush.bf16.msra.mxu0 %v2480_v20 }
  0x9a   : > { %1197 = vmatpush.bf16.msra.mxu1 %v2338_v1 }
  0x9d   : > { %1185 = vmatpush.bf16.msra.mxu0 %v2481_v21 }
  0x9e   : > { %1198 = vmatpush.bf16.msra.mxu1 %v2347_v2 }
  0xa1   : > { %1186 = vmatpush.bf16.msra.mxu0 %v2482_v22 }
  0xa2   : > { %1199 = vmatpush.bf16.msra.mxu1 %v2356_v3 }
  0xa5   : > { %1187 = vmatpush.bf16.msra.mxu0 %v2302_v55  ;;  %v1831_v55 = vld [vmem:[%s2460_s4] ss:$0 sm:$0xff] }
  0xa6   : > { %1200 = vmatpush.bf16.msra.mxu1 %v2366_v5 }
  0xa9   : > { %1188 = vmatpush.bf16.msra.mxu0 %v2321_v63  ;;  %v643_v25 = vpop.f32.mrf.mxu0 }
  0xaa   : > { %1201 = vmatpush.bf16.msra.mxu1 %v2376_v11  ;;  %v656_v26 = vpop.f32.mrf.mxu1 }
  0xab   : > { %v657_v44 = vadd.f32 %v656_v26, %v643_v25 }
  0xac   : > { %1189 = vmatmul.bf16.vlgmr.msra.gmra.mxu0 %v1163_v23 }
  0xad   : > { %1202 = vmatmul.bf16.vlgmr.msra.gmra.mxu1 %v1164_v24 }
  0xb1   : > { %v669_v27 = vpop.f32.mrf.mxu2  ;;  %v645_v32 = vpop.f32.mrf.mxu0 }
  0xb2   : > { %v658_v33 = vpop.f32.mrf.mxu1  ;;  %v834_v34 = vpop.f32.mrf.mxu3  ;;  %v670_v47 = vadd.f32 %v669_v27, %v657_v44 }
  0xb4   : > { %v835_v49 = vadd.f32 %v834_v34, %v670_v47 }
  0xb9   : > { %v671_v35 = vpop.f32.mrf.mxu2 }
  0xba   : > { %v836_v36 = vpop.f32.mrf.mxu3 }
  0xc9   : > { %v847_v37 = vpop.f32.mrf.mxu0 }
  0xca   : > { %v860_v38 = vpop.f32.mrf.mxu1  ;;  %v848_v50 = vadd.f32 %v847_v37, %v835_v49 }
  0xcc   : > { %v861_v53 = vadd.f32 %v860_v38, %v848_v50 }
  0xd1   : > { %v849_v39 = vpop.f32.mrf.mxu0  ;;  %v1025_v40 = vpop.f32.mrf.mxu2 }
  0xd2   : > { %v862_v41 = vpop.f32.mrf.mxu1  ;;  %v1038_v43 = vpop.f32.mrf.mxu3 }
  0xd3   : > { %v1039_v51 = vadd.f32 %v1038_v43, %v1025_v40 }
  0xd9   : > { %v1027_v46 = vpop.f32.mrf.mxu2 }
  0xda   : > { %v1040_v48 = vpop.f32.mrf.mxu3 }
  0xe9   : > { %v1051_v52 = vpop.f32.mrf.mxu0 }
  0xea   : > { %v1052_v54 = vadd.f32 %v1051_v52, %v1039_v51  ;;  %v1083_v56 = vpop.f32.mrf.mxu1 }
  0xec   : > { %v1055_v57 = vadd.f32 %v1052_v54, %v861_v53 }
  0xee   : > { %v1059_v58 = vadd.f32 %v1831_v55, %v1055_v57 }
  0xf0   : > { %v1060_v59 = vmax.f32 %v1059_v58, 0.0 }
  0xf1   : > { %v1096_v60 = vpop.f32.mrf.mxu2  ;;  %v1053_v61 = vpop.f32.mrf.mxu0 }
  0xf2   : > { %1061 = vst [vmem:[%s2443_s22] sm:$0x3] %v1060_v59  ;;  %v1085_v62 = vpop.f32.mrf.mxu1  ;;  %v1109_v19 = vpop.f32.mrf.mxu3  ;;  %v1097_v2 = vadd.f32 %v1096_v60, %v1083_v56 }
  0xf4   : > { %v1110_v3 = vadd.f32 %v1109_v19, %v1097_v2 }
  0xf9   : > { %v1098_v28 = vpop.f32.mrf.mxu2 }
  0xfa   : > { %v1111_v29 = vpop.f32.mrf.mxu3 }
 0x109   : > { %v1130_v30 = vpop.f32.mrf.mxu0 }
 0x10a   : > { %v1143_v31 = vpop.f32.mrf.mxu1  ;;  %v1131_v5 = vadd.f32 %v1130_v30, %v1110_v3 }
 0x10c   : > { %v1144_v7 = vadd.f32 %v1143_v31, %v1131_v5 }
 0x111   : > { %v1156_v42 = vpop.f32.mrf.mxu2  ;;  %v1132_v45 = vpop.f32.mrf.mxu0 }
 0x112   : > { %v1145_v63 = vpop.f32.mrf.mxu1  ;;  %v1177_v0 = vpop.f32.mrf.mxu3  ;;  %v1157_v12 = vadd.f32 %v1156_v42, %v1144_v7 }
 0x119   : > { %v1158_v1 = vpop.f32.mrf.mxu2 }
 0x11a   : > { %v1179_v4 = vpop.f32.mrf.mxu3 }
 0x129   : > { %v1190_v8 = vpop.f32.mrf.mxu0 }
 0x12a   : > { %v1203_v9 = vpop.f32.mrf.mxu1  ;;  %v1191_v11 = vadd.f32 %v1190_v8, %v1177_v0 }
 0x12c   : > { %v1204_v13 = vadd.f32 %v1203_v9, %v1191_v11 }
 0x12e   : > { %v1207_v15 = vadd.f32 %v1204_v13, %v1157_v12 }
 0x130   : > { %v1208_v16 = vadd.f32 %v1831_v55, %v1207_v15 }
 0x131   : > { %v1192_v6 = vpop.f32.mrf.mxu0 }
 0x132   : > { %v1205_v10 = vpop.f32.mrf.mxu1  ;;  %v1209_v14 = vmax.f32 %v1208_v16, 0.0 }
 0x134   : > { %1729 = vst [vmem:[%s2443_s22 + $0x2] sm:$0x3] %v1209_v14 }
 0x135 PF: > { %s15_s20 = sadd.s32 1, %s1854_s20   ;;  %s2483_s18 = smov %s1850_s19 }
 0x136   : > { %p12_p5 = scmp.ge.s32.totalorder %s15_s20, 4   ;;  %s2484_s19 = smov %s2486_s21 }
 0x138   :  { %14 = sbr.rel (!%p12_p5) target bundleno = 2 (0x2), region = 81 }

</bundles_post_ra>
